<compile_context>
chip_gen: v7x
topology: tpu7x:2x2x1
jax: 0.10.0
libtpu: 0.0.40
codegen_flags: <defaults>
</compile_context>

<pallas_src>
import jax
import jax.numpy as jnp
from jax import lax
from jax.experimental import pallas as pl
from jax.experimental.pallas import tpu as pltpu

EPS = 1e-5


# ---------------------------------------------------------------------------
# Small layout helpers (traced inside kernels; nb is a static Python int).
# ---------------------------------------------------------------------------
def _cf_to_rows(x_cf):
    """(nb, C, hw) channels-first -> (nb*hw, C) pixel-major rows."""
    nb, c, hw = x_cf.shape
    if nb == 1:
        return x_cf[0].T
    return jnp.swapaxes(x_cf, 1, 2).reshape(nb * hw, c)


def _rows_to_cf(y_rows, nb, hw):
    """(nb*hw, C) pixel-major rows -> (nb, C, hw) channels-first."""
    c = y_rows.shape[-1]
    if nb == 1:
        return y_rows.T[None]
    return jnp.swapaxes(y_rows.reshape(nb, hw, c), 1, 2)


def _partial_stats(y_rows):
    """(rows, C) f32 -> (1, 2, C) partial [sum, sum_of_squares] over rows."""
    s = jnp.sum(y_rows, axis=0, keepdims=True)
    ss = jnp.sum(y_rows * y_rows, axis=0, keepdims=True)
    return jnp.concatenate([s, ss], axis=0)[None]


# ---------------------------------------------------------------------------
# Kernels.
# ---------------------------------------------------------------------------
def _conv1_kernel(x_ref, w1_ref, h1_ref, s1_ref):
    # 1x1 conv == channel matmul.  x arrives channels-first (free NCHW
    # reshape); the pixel-major view is made in-kernel (XLU transpose).
    x_rows = _cf_to_rows(x_ref[...])                          # (rt, Cin) f32
    h1 = jnp.dot(x_rows.astype(jnp.bfloat16), w1_ref[...],
                 preferred_element_type=jnp.float32)          # (rt, P) f32
    s1_ref[...] = _partial_stats(h1)
    h1_ref[...] = h1.astype(h1_ref.dtype)


def _conv2_kernel(h1_ref, sc1_ref, bi1_ref, w2_ref, h2_ref, s2_ref,
                  pad_ref, col_ref):
    nb, hp2, wp2, p = pad_ref.shape
    h, w = hp2 - 2, wp2 - 2
    rows = nb * h * w

    # bn1 (pre-folded global scale/bias) + relu, in f32.
    a = jnp.maximum(h1_ref[...].astype(jnp.float32) * sc1_ref[...]
                    + bi1_ref[...], 0.0)

    # Interior written exactly once; only the 1-pixel halo is zeroed.
    # Kept unconditional: under a "parallel" grid each TensorCore owns its own
    # scratch, so a program_id()==0 gate would leave one core's halo garbage.
    pad_ref[:, 1:h + 1, 1:w + 1, :] = a.reshape(nb, h, w, p)
    zrow = jnp.zeros((nb, 1, wp2, p), pad_ref.dtype)
    pad_ref[:, 0:1, :, :] = zrow
    pad_ref[:, h + 1:h + 2, :, :] = zrow
    zcol = jnp.zeros((nb, h, 1, p), pad_ref.dtype)
    pad_ref[:, 1:h + 1, 0:1, :] = zcol
    pad_ref[:, 1:h + 1, w + 1:w + 2, :] = zcol

    # im2col: write each of the nine shifted taps straight into its lane range
    # of the preallocated bf16 col scratch (no tap temporaries + concatenate,
    # no big f32->bf16 cast), then ONE MXU matmul with contraction K = 9*P.
    t = 0
    for dy in range(3):
        for dx in range(3):
            tap = pad_ref[:, dy:dy + h, dx:dx + w, :].reshape(rows, p)
            col_ref[:, t * p:(t + 1) * p] = tap.astype(jnp.bfloat16)
            t += 1
    h2 = jnp.dot(col_ref[...], w2_ref[...],
                 preferred_element_type=jnp.float32)          # (rows, P)

    s2_ref[...] = _partial_stats(h2)
    h2_ref[...] = h2.astype(h2_ref.dtype)


def _conv3_kernel(h2_ref, sc2_ref, bi2_ref, w3_ref, h3_ref, s3_ref):
    nb, cin, hw = h3_ref.shape
    a = jnp.maximum(h2_ref[...].astype(jnp.float32) * sc2_ref[...]
                    + bi2_ref[...], 0.0)
    h3 = jnp.dot(a.astype(jnp.bfloat16), w3_ref[...],
                 preferred_element_type=jnp.float32)          # (rt, 4P)
    s3_ref[...] = _partial_stats(h3)
    # Store channels-first (lane-dense over hw) so pass 4 and the final output
    # need no further relayout.
    h3_ref[...] = _rows_to_cf(h3, nb, hw).astype(h3_ref.dtype)


def _residual_kernel(h3_ref, x_ref, sc3_ref, bi3_ref, o_ref):
    # bn3 + residual add + relu, entirely channels-first: the output IS the
    # original NCHW layout (modulo a free reshape) and aliases x's buffer.
    y = (h3_ref[...].astype(jnp.float32) * sc3_ref[...][None]
         + bi3_ref[...][None])
    o_ref[...] = jnp.maximum(y + x_ref[...], 0.0)


# ---------------------------------------------------------------------------
# Wrapper helpers.
# ---------------------------------------------------------------------------
def _vmem_capacity_bytes():
    try:
        cap = int(getattr(pltpu.get_tpu_info(), "vmem_capacity_bytes", 0))
        if cap > 0:
            return cap
    except Exception:
        pass
    return 64 << 20        # conservative fallback (v7x per-TensorCore VMEM)


def _pick_batch_tile(n, h, w, cin, planes, cap):
    """Largest images-per-step whose working set fits a generation-aware
    budget (24 MiB on 128-MiB-VMEM parts, 8 MiB on v7x), while keeping at
    least two grid steps so the HBM<->VMEM pipeline overlaps (and v7x's two
    TensorCores both get work)."""
    budget = (24 << 20) if cap >= (100 << 20) else (8 << 20)
    per_img = h * w * (16 * cin + 56 * planes)
    best = 1
    for nb in range(1, n + 1):
        if n % nb:
            continue
        if nb * per_img > budget:
            break
        if n >= 2 and n // nb < 2:
            continue
        best = nb
    return best


def _compiler_params(pipelined_bytes, scratch_bytes, cap):
    # Explicit scoped-VMEM limit from the actual block sizes (x2 for double
    # buffering) + scratch/temporaries + slack, with a generation-aware cap.
    limit = 2 * pipelined_bytes + scratch_bytes + (2 << 20)
    ceiling = (96 << 20) if cap >= (100 << 20) else (48 << 20)
    limit = int(min(max(limit, 16 << 20), ceiling))
    return pltpu.CompilerParams(dimension_semantics=("parallel",),
                                vmem_limit_bytes=limit)


def _fold_bn(partial_stats, gamma, beta, count):
    """Global (N,H,W) training-mode BN fold into per-channel scale/bias.
    NOTE: E[x^2]-E[x]^2 in f32; fine at these scales (activations are
    BN-normalized each stage), documented as a known precision trade-off."""
    s = jnp.sum(partial_stats[:, 0, :], axis=0)
    ss = jnp.sum(partial_stats[:, 1, :], axis=0)
    mean = s / count
    var = jnp.maximum(ss / count - mean * mean, 0.0)   # clamp: never negative
    inv = lax.rsqrt(var + EPS)
    g = gamma.reshape(-1)
    scale = (g * inv).reshape(1, -1).astype(jnp.float32)
    bias = (beta.reshape(-1) - mean * g * inv).reshape(1, -1).astype(jnp.float32)
    return scale, bias


@jax.jit
def bottleneck_forward(x_nchw, params):
    """x_nchw: (N, Cin, H, W) like PyTorch.  Returns (N, Cin, H, W)."""
    w1, g1, b1, w2, g2, b2, w3, g3, b3 = params
    n, cin, h, w = x_nchw.shape
    p = w1.shape[1]
    assert cin == 4 * p, "downsample=None requires inplanes == 4*planes"
    hw = h * w
    r = n * hw

    cap = _vmem_capacity_bytes()
    nb = _pick_batch_tile(n, h, w, cin, p, cap)
    g = n // nb
    rt = nb * hw
    assert rt % 16 == 0, "bf16 (rows, planes) blocks need rows % 16 == 0"

    fp32, bf16 = jnp.float32, jnp.bfloat16

    # Channels-first activations: a FREE reshape of NCHW (no HBM relayout).
    x_cf = x_nchw.reshape(n, cin, hw)

    # Weights pre-cast to bf16; conv2 pre-reshaped to its (9P, P) im2col form.
    w1b = w1.astype(bf16)                           # (Cin, P)
    w2b = w2.reshape(9 * p, p).astype(bf16)         # HWIO (3,3,P,P) -> (9P, P)
    w3b = w3.astype(bf16)                           # (P, 4P)

    def cf_spec(c):
        return pl.BlockSpec((nb, c, hw), lambda i: (i, 0, 0))

    def rows_spec(c):
        return pl.BlockSpec((rt, c), lambda i: (i, 0))

    def full_spec(shape):
        nd = len(shape)
        return pl.BlockSpec(tuple(shape), lambda i: (0,) * nd)

    def stats_spec(c):
        return pl.BlockSpec((1, 2, c), lambda i: (i, 0, 0))

    # ---- pass 1: conv1 (1x1) + partial bn1 stats --------------------------
    h1, s1 = pl.pallas_call(
        _conv1_kernel, grid=(g,),
        in_specs=[cf_spec(cin), full_spec(w1b.shape)],
        out_specs=(rows_spec(p), stats_spec(p)),
        out_shape=(jax.ShapeDtypeStruct((r, p), bf16),
                   jax.ShapeDtypeStruct((g, 2, p), fp32)),
        compiler_params=_compiler_params(
            rt * cin * 4 + cin * p * 2 + rt * p * 2 + 2 * p * 4,
            rt * cin * 6 + rt * p * 4, cap),
    )(x_cf, w1b)
    sc1, bi1 = _fold_bn(s1, g1, b1, float(r))

    # ---- pass 2: bn1 + relu, 3x3 conv as one K=9P matmul, bn2 stats -------
    h2, s2 = pl.pallas_call(
        _conv2_kernel, grid=(g,),
        in_specs=[rows_spec(p), full_spec(sc1.shape), full_spec(bi1.shape),
                  full_spec(w2b.shape)],
        out_specs=(rows_spec(p), stats_spec(p)),
        out_shape=(jax.ShapeDtypeStruct((r, p), bf16),
                   jax.ShapeDtypeStruct((g, 2, p), fp32)),
        scratch_shapes=[pltpu.VMEM((nb, h + 2, w + 2, p), fp32),
                        pltpu.VMEM((rt, 9 * p), bf16)],
        compiler_params=_compiler_params(
            rt * p * 2 + 9 * p * p * 2 + rt * p * 2 + 2 * p * 4,
            nb * (h + 2) * (w + 2) * p * 4 + rt * 9 * p * 2 + rt * p * 8,
            cap),
    )(h1, sc1, bi1, w2b)
    sc2, bi2 = _fold_bn(s2, g2, b2, float(r))

    # ---- pass 3: bn2 + relu, conv3 (1x1), partial bn3 stats; h3 stored
    # channels-first (lane-dense) so pass 4 needs no transpose. -------------
    h3, s3 = pl.pallas_call(
        _conv3_kernel, grid=(g,),
        in_specs=[rows_spec(p), full_spec(sc2.shape), full_spec(bi2.shape),
                  full_spec(w3b.shape)],
        out_specs=(cf_spec(cin), stats_spec(cin)),
        out_shape=(jax.ShapeDtypeStruct((n, cin, hw), bf16),
                   jax.ShapeDtypeStruct((g, 2, cin), fp32)),
        compiler_params=_compiler_params(
            rt * p * 2 + p * cin * 2 + rt * cin * 2 + 2 * cin * 4,
            rt * p * 4 + rt * cin * 8, cap),
    )(h2, sc2, bi2, w3b)
    sc3, bi3 = _fold_bn(s3, g3, b3, float(r))

    # ---- pass 4: bn3 + residual + relu, written straight back in the NCHW
    # layout (output aliases x's buffer). -----------------------------------
    out_cf = pl.pallas_call(
        _residual_kernel, grid=(g,),
        in_specs=[cf_spec(cin), cf_spec(cin),
                  full_spec((cin, 1)), full_spec((cin, 1))],
        out_specs=cf_spec(cin),
        out_shape=jax.ShapeDtypeStruct((n, cin, hw), fp32),
        input_output_aliases={1: 0},
        compiler_params=_compiler_params(
            rt * cin * (2 + 4 + 4) + cin * 8, rt * cin * 8, cap),
    )(h3, x_cf, sc3.reshape(cin, 1), bi3.reshape(cin, 1))

    return out_cf.reshape(n, cin, h, w)


# ---------------------------------------------------------------------------
# Synthetic parameters + pure-JAX reference.
# ---------------------------------------------------------------------------
def make_params(key, inplanes, planes):
    k1, k2, k3, k4, k5, k6, k7, k8, k9 = jax.random.split(key, 9)
    w1 = 0.2 * jax.random.normal(k1, (inplanes, planes), jnp.float32)
    w2_pt = 0.2 * jax.random.normal(k2, (planes, planes, 3, 3), jnp.float32)
    w2 = jnp.transpose(w2_pt, (2, 3, 1, 0))            # HWIO (3,3,P,P)
    w3 = 0.2 * jax.random.normal(k3, (planes, 4 * planes), jnp.float32)
    g1 = 1.0 + 0.1 * jax.random.normal(k4, (1, planes), jnp.float32)
    b1 = 0.1 * jax.random.normal(k5, (1, planes), jnp.float32)
    g2 = 1.0 + 0.1 * jax.random.normal(k6, (1, planes), jnp.float32)
    b2 = 0.1 * jax.random.normal(k7, (1, planes), jnp.float32)
    g3 = 1.0 + 0.1 * jax.random.normal(k8, (1, 4 * planes), jnp.float32)
    b3 = 0.1 * jax.random.normal(k9, (1, 4 * planes), jnp.float32)
    return (w1, g1, b1, w2, g2, b2, w3, g3, b3)


def reference_forward(x_nchw, params):
    """Pure-JAX f32 reference (training-mode BN, NHWC convs)."""
    w1, g1, b1, w2, g2, b2, w3, g3, b3 = params
    x = jnp.transpose(x_nchw, (0, 2, 3, 1))

    def bn(y, g, b, relu=True):
        mean = jnp.mean(y, axis=(0, 1, 2), keepdims=True)
        var = jnp.mean((y - mean) ** 2, axis=(0, 1, 2), keepdims=True)
        out = (y - mean) * lax.rsqrt(var + EPS) * g.reshape(1, 1, 1, -1) \
              + b.reshape(1, 1, 1, -1)
        return jnp.maximum(out, 0.0) if relu else out

    dn = lax.conv_dimension_numbers(x.shape, (1, 1, 1, 1),
                                    ("NHWC", "HWIO", "NHWC"))
    h = lax.conv_general_dilated(x, w1[None, None], (1, 1), "VALID",
                                 dimension_numbers=dn)
    h = bn(h, g1, b1)
    dn2 = lax.conv_dimension_numbers(h.shape, w2.shape,
                                     ("NHWC", "HWIO", "NHWC"))
    h = lax.conv_general_dilated(h, w2, (1, 1), ((1, 1), (1, 1)),
                                 dimension_numbers=dn2)
    h = bn(h, g2, b2)
    h = lax.conv_general_dilated(h, w3[None, None], (1, 1), "VALID",
                                 dimension_numbers=dn)
    h = bn(h, g3, b3, relu=False)
    out = jnp.maximum(h + x, 0.0)
    return jnp.transpose(out, (0, 3, 1, 2))


if __name__ == "__main__":
    # downsample=None requires inplanes == 4*planes.
    N, planes, H, W = 2, 4, 16, 16
    inplanes = 4 * planes  # 16

    key = jax.random.PRNGKey(0)
    kx, kp = jax.random.split(key)
    x = jax.random.normal(kx, (N, inplanes, H, W), jnp.float32)
    params = make_params(kp, inplanes, planes)

    out = jax.block_until_ready(bottleneck_forward(x, params))
    ref = reference_forward(x, params)

    assert out.shape == (N, inplanes, H, W)
    # bf16 MXU operands / bf16 intermediate storage vs. an all-f32 reference
    # across three BN-normalized stages: expect well under 1% relative error.
    rel_err = float(jnp.linalg.norm(out - ref) / jnp.linalg.norm(ref))
    max_abs = float(jnp.max(jnp.abs(out - ref)))
    assert rel_err < 3e-2, rel_err
    assert max_abs < 2.5e-1, max_abs

    print("KERNEL_OK")
</pallas_src>

<mosaic_0001>
module attributes {stable_mosaic.version = 11 : i64} {
  func.func @_conv1_kernel(%arg0: i32, %arg1: memref<1x16x256xf32, #tpu.memory_space<vmem>>, %arg2: memref<16x4xbf16, #tpu.memory_space<vmem>>, %arg3: memref<256x4xbf16, #tpu.memory_space<vmem>>, %arg4: memref<1x2x4xf32, #tpu.memory_space<vmem>>) attributes {dimension_semantics = [#tpu.dimension_semantics<parallel>], iteration_bounds = array<i64: 2>, scalar_prefetch = 0 : i64, scratch_operands = 0 : i64, tpu.core_type = #tpu.core_type<tc>, window_params = [{transform_indices = @transform_0, window_bounds = array<i64: 1, 16, 256>}, {pipeline_mode = #tpu.pipeline_mode<synchronous>, transform_indices = @transform_1, window_bounds = array<i64: 16, 4>}, {transform_indices = @transform_2, window_bounds = array<i64: 256, 4>}, {transform_indices = @transform_3, window_bounds = array<i64: 1, 2, 4>}]} {
    %c0 = arith.constant 0 : index
    %c0_0 = arith.constant 0 : index
    %c0_1 = arith.constant 0 : index
    %0 = vector.load %arg1[%c0, %c0_0, %c0_1] : memref<1x16x256xf32, #tpu.memory_space<vmem>>, vector<1x16x256xf32>
    %1 = vector.shape_cast %0 : vector<1x16x256xf32> to vector<16x256xf32>
    %2 = tpu.transpose %1, [1, 0] : vector<16x256xf32> -> vector<256x16xf32>
    %3 = arith.truncf %2 : vector<256x16xf32> to vector<256x16xbf16>
    %c0_2 = arith.constant 0 : index
    %c0_3 = arith.constant 0 : index
    %4 = vector.load %arg2[%c0_2, %c0_3] : memref<16x4xbf16, #tpu.memory_space<vmem>>, vector<16x4xbf16>
    %cst = arith.constant dense<0.000000e+00> : vector<256x4xf32>
    %5 = tpu.matmul %3, %4, %cst {dimension_numbers = #tpu.dot_dimension_numbers<[1], [0], [0], [1], [0, 0, 1, 1], [], []>} : vector<256x16xbf16>, vector<16x4xbf16>, vector<256x4xf32> -> vector<256x4xf32>
    %cst_4 = arith.constant dense<0.000000e+00> : vector<4xf32>
    %6 = vector.multi_reduction <add>, %5, %cst_4 [0] : vector<256x4xf32> to vector<4xf32>
    %7 = vector.shape_cast %6 : vector<4xf32> to vector<1x4xf32>
    %8 = arith.mulf %5, %5 : vector<256x4xf32>
    %cst_5 = arith.constant dense<0.000000e+00> : vector<4xf32>
    %9 = vector.multi_reduction <add>, %8, %cst_5 [0] : vector<256x4xf32> to vector<4xf32>
    %10 = vector.shape_cast %9 : vector<4xf32> to vector<1x4xf32>
    %11 = tpu.concatenate %7, %10 in 0 : vector<1x4xf32>, vector<1x4xf32> -> vector<2x4xf32>
    %12 = vector.shape_cast %11 : vector<2x4xf32> to vector<1x2x4xf32>
    %c0_6 = arith.constant 0 : index
    %c0_7 = arith.constant 0 : index
    %c0_8 = arith.constant 0 : index
    %13 = vector.load %arg4[%c0_6, %c0_7, %c0_8] : memref<1x2x4xf32, #tpu.memory_space<vmem>>, vector<1x2x4xf32>
    tpu.vector_store %arg4[%c0_6, %c0_7, %c0_8], %12 {strides = array<i32>} : memref<1x2x4xf32, #tpu.memory_space<vmem>>, vector<1x2x4xf32>,
    %14 = arith.truncf %5 : vector<256x4xf32> to vector<256x4xbf16>
    %c0_9 = arith.constant 0 : index
    %c0_10 = arith.constant 0 : index
    %15 = vector.load %arg3[%c0_9, %c0_10] : memref<256x4xbf16, #tpu.memory_space<vmem>>, vector<256x4xbf16>
    tpu.vector_store %arg3[%c0_9, %c0_10], %14 {strides = array<i32>} : memref<256x4xbf16, #tpu.memory_space<vmem>>, vector<256x4xbf16>,
    return
  }
  func.func @transform_0(%arg0: i32) -> (i32, i32, i32) {
    %c0_i32 = arith.constant 0 : i32
    %c0_i32_0 = arith.constant 0 : i32
    %c0_i32_1 = arith.constant 0 : i32
    return %arg0, %c0_i32, %c0_i32_0 : i32, i32, i32
  }
  func.func @transform_1(%arg0: i32) -> (i32, i32) {
    %c0_i32 = arith.constant 0 : i32
    %c0_i32_0 = arith.constant 0 : i32
    %c0_i32_1 = arith.constant 0 : i32
    return %c0_i32, %c0_i32_0 : i32, i32
  }
  func.func @transform_2(%arg0: i32) -> (i32, i32) {
    %c0_i32 = arith.constant 0 : i32
    %c0_i32_0 = arith.constant 0 : i32
    return %arg0, %c0_i32 : i32, i32
  }
  func.func @transform_3(%arg0: i32) -> (i32, i32, i32) {
    %c0_i32 = arith.constant 0 : i32
    %c0_i32_0 = arith.constant 0 : i32
    %c0_i32_1 = arith.constant 0 : i32
    return %arg0, %c0_i32, %c0_i32_0 : i32, i32, i32
  }
}

module attributes {stable_mosaic.version = 11 : i64} {
  func.func @_conv3_kernel(%arg0: i32, %arg1: memref<256x4xbf16, #tpu.memory_space<vmem>>, %arg2: memref<1x4xf32, #tpu.memory_space<vmem>>, %arg3: memref<1x4xf32, #tpu.memory_space<vmem>>, %arg4: memref<4x16xbf16, #tpu.memory_space<vmem>>, %arg5: memref<1x16x256xbf16, #tpu.memory_space<vmem>>, %arg6: memref<1x2x16xf32, #tpu.memory_space<vmem>>) attributes {dimension_semantics = [#tpu.dimension_semantics<parallel>], iteration_bounds = array<i64: 2>, scalar_prefetch = 0 : i64, scratch_operands = 0 : i64, tpu.core_type = #tpu.core_type<tc>, window_params = [{transform_indices = @transform_0, window_bounds = array<i64: 256, 4>}, {pipeline_mode = #tpu.pipeline_mode<synchronous>, transform_indices = @transform_1, window_bounds = array<i64: 1, 4>}, {pipeline_mode = #tpu.pipeline_mode<synchronous>, transform_indices = @transform_2, window_bounds = array<i64: 1, 4>}, {pipeline_mode = #tpu.pipeline_mode<synchronous>, transform_indices = @transform_3, window_bounds = array<i64: 4, 16>}, {transform_indices = @transform_4, window_bounds = array<i64: 1, 16, 256>}, {transform_indices = @transform_5, window_bounds = array<i64: 1, 2, 16>}]} {
    %c0 = arith.constant 0 : index
    %c0_0 = arith.constant 0 : index
    %0 = vector.load %arg1[%c0, %c0_0] : memref<256x4xbf16, #tpu.memory_space<vmem>>, vector<256x4xbf16>
    %1 = arith.extf %0 : vector<256x4xbf16> to vector<256x4xf32>
    %c0_1 = arith.constant 0 : index
    %c0_2 = arith.constant 0 : index
    %2 = vector.load %arg2[%c0_1, %c0_2] : memref<1x4xf32, #tpu.memory_space<vmem>>, vector<1x4xf32>
    %3 = vector.broadcast %2 : vector<1x4xf32> to vector<256x4xf32>
    %4 = arith.mulf %1, %3 : vector<256x4xf32>
    %c0_3 = arith.constant 0 : index
    %c0_4 = arith.constant 0 : index
    %5 = vector.load %arg3[%c0_3, %c0_4] : memref<1x4xf32, #tpu.memory_space<vmem>>, vector<1x4xf32>
    %6 = vector.broadcast %5 : vector<1x4xf32> to vector<256x4xf32>
    %7 = arith.addf %4, %6 : vector<256x4xf32>
    %cst = arith.constant 0.000000e+00 : f32
    %8 = vector.broadcast %cst : f32 to vector<256x4xf32>
    %9 = arith.maximumf %7, %8 : vector<256x4xf32>
    %10 = arith.truncf %9 : vector<256x4xf32> to vector<256x4xbf16>
    %c0_5 = arith.constant 0 : index
    %c0_6 = arith.constant 0 : index
    %11 = vector.load %arg4[%c0_5, %c0_6] : memref<4x16xbf16, #tpu.memory_space<vmem>>, vector<4x16xbf16>
    %cst_7 = arith.constant dense<0.000000e+00> : vector<256x16xf32>
    %12 = tpu.matmul %10, %11, %cst_7 {dimension_numbers = #tpu.dot_dimension_numbers<[1], [0], [0], [1], [0, 0, 1, 1], [], []>} : vector<256x4xbf16>, vector<4x16xbf16>, vector<256x16xf32> -> vector<256x16xf32>
    %cst_8 = arith.constant dense<0.000000e+00> : vector<16xf32>
    %13 = vector.multi_reduction <add>, %12, %cst_8 [0] : vector<256x16xf32> to vector<16xf32>
    %14 = vector.shape_cast %13 : vector<16xf32> to vector<1x16xf32>
    %15 = arith.mulf %12, %12 : vector<256x16xf32>
    %cst_9 = arith.constant dense<0.000000e+00> : vector<16xf32>
    %16 = vector.multi_reduction <add>, %15, %cst_9 [0] : vector<256x16xf32> to vector<16xf32>
    %17 = vector.shape_cast %16 : vector<16xf32> to vector<1x16xf32>
    %18 = tpu.concatenate %14, %17 in 0 : vector<1x16xf32>, vector<1x16xf32> -> vector<2x16xf32>
    %19 = vector.shape_cast %18 : vector<2x16xf32> to vector<1x2x16xf32>
    %c0_10 = arith.constant 0 : index
    %c0_11 = arith.constant 0 : index
    %c0_12 = arith.constant 0 : index
    %20 = vector.load %arg6[%c0_10, %c0_11, %c0_12] : memref<1x2x16xf32, #tpu.memory_space<vmem>>, vector<1x2x16xf32>
    tpu.vector_store %arg6[%c0_10, %c0_11, %c0_12], %19 {strides = array<i32>} : memref<1x2x16xf32, #tpu.memory_space<vmem>>, vector<1x2x16xf32>,
    %21 = tpu.transpose %12, [1, 0] : vector<256x16xf32> -> vector<16x256xf32>
    %22 = vector.shape_cast %21 : vector<16x256xf32> to vector<1x16x256xf32>
    %23 = arith.truncf %22 : vector<1x16x256xf32> to vector<1x16x256xbf16>
    %c0_13 = arith.constant 0 : index
    %c0_14 = arith.constant 0 : index
    %c0_15 = arith.constant 0 : index
    %24 = vector.load %arg5[%c0_13, %c0_14, %c0_15] : memref<1x16x256xbf16, #tpu.memory_space<vmem>>, vector<1x16x256xbf16>
    tpu.vector_store %arg5[%c0_13, %c0_14, %c0_15], %23 {strides = array<i32>} : memref<1x16x256xbf16, #tpu.memory_space<vmem>>, vector<1x16x256xbf16>,
    return
  }
  func.func @transform_0(%arg0: i32) -> (i32, i32) {
    %c0_i32 = arith.constant 0 : i32
    %c0_i32_0 = arith.constant 0 : i32
    return %arg0, %c0_i32 : i32, i32
  }
  func.func @transform_1(%arg0: i32) -> (i32, i32) {
    %c0_i32 = arith.constant 0 : i32
    %c0_i32_0 = arith.constant 0 : i32
    %c0_i32_1 = arith.constant 0 : i32
    return %c0_i32, %c0_i32_0 : i32, i32
  }
  func.func @transform_2(%arg0: i32) -> (i32, i32) {
    %c0_i32 = arith.constant 0 : i32
    %c0_i32_0 = arith.constant 0 : i32
    %c0_i32_1 = arith.constant 0 : i32
    return %c0_i32, %c0_i32_0 : i32, i32
  }
  func.func @transform_3(%arg0: i32) -> (i32, i32) {
    %c0_i32 = arith.constant 0 : i32
    %c0_i32_0 = arith.constant 0 : i32
    %c0_i32_1 = arith.constant 0 : i32
    return %c0_i32, %c0_i32_0 : i32, i32
  }
  func.func @transform_4(%arg0: i32) -> (i32, i32, i32) {
    %c0_i32 = arith.constant 0 : i32
    %c0_i32_0 = arith.constant 0 : i32
    %c0_i32_1 = arith.constant 0 : i32
    return %arg0, %c0_i32, %c0_i32_0 : i32, i32, i32
  }
  func.func @transform_5(%arg0: i32) -> (i32, i32, i32) {
    %c0_i32 = arith.constant 0 : i32
    %c0_i32_0 = arith.constant 0 : i32
    %c0_i32_1 = arith.constant 0 : i32
    return %arg0, %c0_i32, %c0_i32_0 : i32, i32, i32
  }
}

module attributes {stable_mosaic.version = 11 : i64} {
  func.func @_conv2_kernel(%arg0: i32, %arg1: memref<256x4xbf16, #tpu.memory_space<vmem>>, %arg2: memref<1x4xf32, #tpu.memory_space<vmem>>, %arg3: memref<1x4xf32, #tpu.memory_space<vmem>>, %arg4: memref<36x4xbf16, #tpu.memory_space<vmem>>, %arg5: memref<256x4xbf16, #tpu.memory_space<vmem>>, %arg6: memref<1x2x4xf32, #tpu.memory_space<vmem>>, %arg7: memref<1x18x18x4xf32, #tpu.memory_space<vmem>>, %arg8: memref<256x36xbf16, #tpu.memory_space<vmem>>) attributes {dimension_semantics = [#tpu.dimension_semantics<parallel>], iteration_bounds = array<i64: 2>, scalar_prefetch = 0 : i64, scratch_operands = 2 : i64, tpu.core_type = #tpu.core_type<tc>, window_params = [{transform_indices = @transform_0, window_bounds = array<i64: 256, 4>}, {pipeline_mode = #tpu.pipeline_mode<synchronous>, transform_indices = @transform_1, window_bounds = array<i64: 1, 4>}, {pipeline_mode = #tpu.pipeline_mode<synchronous>, transform_indices = @transform_2, window_bounds = array<i64: 1, 4>}, {pipeline_mode = #tpu.pipeline_mode<synchronous>, transform_indices = @transform_3, window_bounds = array<i64: 36, 4>}, {transform_indices = @transform_4, window_bounds = array<i64: 256, 4>}, {transform_indices = @transform_5, window_bounds = array<i64: 1, 2, 4>}]} {
    %c0 = arith.constant 0 : index
    %c0_0 = arith.constant 0 : index
    %0 = vector.load %arg1[%c0, %c0_0] : memref<256x4xbf16, #tpu.memory_space<vmem>>, vector<256x4xbf16>
    %1 = arith.extf %0 : vector<256x4xbf16> to vector<256x4xf32>
    %c0_1 = arith.constant 0 : index
    %c0_2 = arith.constant 0 : index
    %2 = vector.load %arg2[%c0_1, %c0_2] : memref<1x4xf32, #tpu.memory_space<vmem>>, vector<1x4xf32>
    %3 = vector.broadcast %2 : vector<1x4xf32> to vector<256x4xf32>
    %4 = arith.mulf %1, %3 : vector<256x4xf32>
    %c0_3 = arith.constant 0 : index
    %c0_4 = arith.constant 0 : index
    %5 = vector.load %arg3[%c0_3, %c0_4] : memref<1x4xf32, #tpu.memory_space<vmem>>, vector<1x4xf32>
    %6 = vector.broadcast %5 : vector<1x4xf32> to vector<256x4xf32>
    %7 = arith.addf %4, %6 : vector<256x4xf32>
    %cst = arith.constant 0.000000e+00 : f32
    %8 = vector.broadcast %cst : f32 to vector<256x4xf32>
    %9 = arith.maximumf %7, %8 : vector<256x4xf32>
    %10 = vector.shape_cast %9 : vector<256x4xf32> to vector<1x16x16x4xf32>
    %c0_5 = arith.constant 0 : index
    %c1 = arith.constant 1 : index
    %c1_6 = arith.constant 1 : index
    %c0_7 = arith.constant 0 : index
    %11 = vector.load %arg7[%c0_5, %c1, %c1_6, %c0_7] : memref<1x18x18x4xf32, #tpu.memory_space<vmem>>, vector<1x16x16x4xf32>
    tpu.vector_store %arg7[%c0_5, %c1, %c1_6, %c0_7], %10 {strides = array<i32>} : memref<1x18x18x4xf32, #tpu.memory_space<vmem>>, vector<1x16x16x4xf32>,
    %cst_8 = arith.constant 0.000000e+00 : f32
    %12 = vector.broadcast %cst_8 : f32 to vector<1x1x18x4xf32>
    %c0_9 = arith.constant 0 : index
    %c0_10 = arith.constant 0 : index
    %c0_11 = arith.constant 0 : index
    %c0_12 = arith.constant 0 : index
    %13 = vector.load %arg7[%c0_9, %c0_10, %c0_11, %c0_12] : memref<1x18x18x4xf32, #tpu.memory_space<vmem>>, vector<1x1x18x4xf32>
    tpu.vector_store %arg7[%c0_9, %c0_10, %c0_11, %c0_12], %12 {strides = array<i32>} : memref<1x18x18x4xf32, #tpu.memory_space<vmem>>, vector<1x1x18x4xf32>,
    %c0_13 = arith.constant 0 : index
    %c17 = arith.constant 17 : index
    %c0_14 = arith.constant 0 : index
    %c0_15 = arith.constant 0 : index
    %14 = vector.load %arg7[%c0_13, %c17, %c0_14, %c0_15] : memref<1x18x18x4xf32, #tpu.memory_space<vmem>>, vector<1x1x18x4xf32>
    tpu.vector_store %arg7[%c0_13, %c17, %c0_14, %c0_15], %12 {strides = array<i32>} : memref<1x18x18x4xf32, #tpu.memory_space<vmem>>, vector<1x1x18x4xf32>,
    %cst_16 = arith.constant 0.000000e+00 : f32
    %15 = vector.broadcast %cst_16 : f32 to vector<1x16x1x4xf32>
    %c0_17 = arith.constant 0 : index
    %c1_18 = arith.constant 1 : index
    %c0_19 = arith.constant 0 : index
    %c0_20 = arith.constant 0 : index
    %16 = vector.load %arg7[%c0_17, %c1_18, %c0_19, %c0_20] : memref<1x18x18x4xf32, #tpu.memory_space<vmem>>, vector<1x16x1x4xf32>
    tpu.vector_store %arg7[%c0_17, %c1_18, %c0_19, %c0_20], %15 {strides = array<i32>} : memref<1x18x18x4xf32, #tpu.memory_space<vmem>>, vector<1x16x1x4xf32>,
    %c0_21 = arith.constant 0 : index
    %c1_22 = arith.constant 1 : index
    %c17_23 = arith.constant 17 : index
    %c0_24 = arith.constant 0 : index
    %17 = vector.load %arg7[%c0_21, %c1_22, %c17_23, %c0_24] : memref<1x18x18x4xf32, #tpu.memory_space<vmem>>, vector<1x16x1x4xf32>
    tpu.vector_store %arg7[%c0_21, %c1_22, %c17_23, %c0_24], %15 {strides = array<i32>} : memref<1x18x18x4xf32, #tpu.memory_space<vmem>>, vector<1x16x1x4xf32>,
    %c0_25 = arith.constant 0 : index
    %c0_26 = arith.constant 0 : index
    %c0_27 = arith.constant 0 : index
    %c0_28 = arith.constant 0 : index
    %18 = vector.load %arg7[%c0_25, %c0_26, %c0_27, %c0_28] : memref<1x18x18x4xf32, #tpu.memory_space<vmem>>, vector<1x16x16x4xf32>
    %19 = vector.shape_cast %18 : vector<1x16x16x4xf32> to vector<256x4xf32>
    %20 = arith.truncf %19 : vector<256x4xf32> to vector<256x4xbf16>
    %c0_29 = arith.constant 0 : index
    %c0_30 = arith.constant 0 : index
    %21 = vector.load %arg8[%c0_29, %c0_30] : memref<256x36xbf16, #tpu.memory_space<vmem>>, vector<256x4xbf16>
    tpu.vector_store %arg8[%c0_29, %c0_30], %20 {strides = array<i32>} : memref<256x36xbf16, #tpu.memory_space<vmem>>, vector<256x4xbf16>,
    %c0_31 = arith.constant 0 : index
    %c0_32 = arith.constant 0 : index
    %c1_33 = arith.constant 1 : index
    %c0_34 = arith.constant 0 : index
    %22 = vector.load %arg7[%c0_31, %c0_32, %c1_33, %c0_34] : memref<1x18x18x4xf32, #tpu.memory_space<vmem>>, vector<1x16x16x4xf32>
    %23 = vector.shape_cast %22 : vector<1x16x16x4xf32> to vector<256x4xf32>
    %24 = arith.truncf %23 : vector<256x4xf32> to vector<256x4xbf16>
    %c0_35 = arith.constant 0 : index
    %c4 = arith.constant 4 : index
    %25 = vector.load %arg8[%c0_35, %c4] : memref<256x36xbf16, #tpu.memory_space<vmem>>, vector<256x4xbf16>
    tpu.vector_store %arg8[%c0_35, %c4], %24 {strides = array<i32>} : memref<256x36xbf16, #tpu.memory_space<vmem>>, vector<256x4xbf16>,
    %c0_36 = arith.constant 0 : index
    %c0_37 = arith.constant 0 : index
    %c2 = arith.constant 2 : index
    %c0_38 = arith.constant 0 : index
    %26 = vector.load %arg7[%c0_36, %c0_37, %c2, %c0_38] : memref<1x18x18x4xf32, #tpu.memory_space<vmem>>, vector<1x16x16x4xf32>
    %27 = vector.shape_cast %26 : vector<1x16x16x4xf32> to vector<256x4xf32>
    %28 = arith.truncf %27 : vector<256x4xf32> to vector<256x4xbf16>
    %c0_39 = arith.constant 0 : index
    %c8 = arith.constant 8 : index
    %29 = vector.load %arg8[%c0_39, %c8] : memref<256x36xbf16, #tpu.memory_space<vmem>>, vector<256x4xbf16>
    tpu.vector_store %arg8[%c0_39, %c8], %28 {strides = array<i32>} : memref<256x36xbf16, #tpu.memory_space<vmem>>, vector<256x4xbf16>,
    %c0_40 = arith.constant 0 : index
    %c1_41 = arith.constant 1 : index
    %c0_42 = arith.constant 0 : index
    %c0_43 = arith.constant 0 : index
    %30 = vector.load %arg7[%c0_40, %c1_41, %c0_42, %c0_43] : memref<1x18x18x4xf32, #tpu.memory_space<vmem>>, vector<1x16x16x4xf32>
    %31 = vector.shape_cast %30 : vector<1x16x16x4xf32> to vector<256x4xf32>
    %32 = arith.truncf %31 : vector<256x4xf32> to vector<256x4xbf16>
    %c0_44 = arith.constant 0 : index
    %c12 = arith.constant 12 : index
    %33 = vector.load %arg8[%c0_44, %c12] : memref<256x36xbf16, #tpu.memory_space<vmem>>, vector<256x4xbf16>
    tpu.vector_store %arg8[%c0_44, %c12], %32 {strides = array<i32>} : memref<256x36xbf16, #tpu.memory_space<vmem>>, vector<256x4xbf16>,
    %c0_45 = arith.constant 0 : index
    %c1_46 = arith.constant 1 : index
    %c1_47 = arith.constant 1 : index
    %c0_48 = arith.constant 0 : index
    %34 = vector.load %arg7[%c0_45, %c1_46, %c1_47, %c0_48] : memref<1x18x18x4xf32, #tpu.memory_space<vmem>>, vector<1x16x16x4xf32>
    %35 = vector.shape_cast %34 : vector<1x16x16x4xf32> to vector<256x4xf32>
    %36 = arith.truncf %35 : vector<256x4xf32> to vector<256x4xbf16>
    %c0_49 = arith.constant 0 : index
    %c16 = arith.constant 16 : index
    %37 = vector.load %arg8[%c0_49, %c16] : memref<256x36xbf16, #tpu.memory_space<vmem>>, vector<256x4xbf16>
    tpu.vector_store %arg8[%c0_49, %c16], %36 {strides = array<i32>} : memref<256x36xbf16, #tpu.memory_space<vmem>>, vector<256x4xbf16>,
    %c0_50 = arith.constant 0 : index
    %c1_51 = arith.constant 1 : index
    %c2_52 = arith.constant 2 : index
    %c0_53 = arith.constant 0 : index
    %38 = vector.load %arg7[%c0_50, %c1_51, %c2_52, %c0_53] : memref<1x18x18x4xf32, #tpu.memory_space<vmem>>, vector<1x16x16x4xf32>
    %39 = vector.shape_cast %38 : vector<1x16x16x4xf32> to vector<256x4xf32>
    %40 = arith.truncf %39 : vector<256x4xf32> to vector<256x4xbf16>
    %c0_54 = arith.constant 0 : index
    %c20 = arith.constant 20 : index
    %41 = vector.load %arg8[%c0_54, %c20] : memref<256x36xbf16, #tpu.memory_space<vmem>>, vector<256x4xbf16>
    tpu.vector_store %arg8[%c0_54, %c20], %40 {strides = array<i32>} : memref<256x36xbf16, #tpu.memory_space<vmem>>, vector<256x4xbf16>,
    %c0_55 = arith.constant 0 : index
    %c2_56 = arith.constant 2 : index
    %c0_57 = arith.constant 0 : index
    %c0_58 = arith.constant 0 : index
    %42 = vector.load %arg7[%c0_55, %c2_56, %c0_57, %c0_58] : memref<1x18x18x4xf32, #tpu.memory_space<vmem>>, vector<1x16x16x4xf32>
    %43 = vector.shape_cast %42 : vector<1x16x16x4xf32> to vector<256x4xf32>
    %44 = arith.truncf %43 : vector<256x4xf32> to vector<256x4xbf16>
    %c0_59 = arith.constant 0 : index
    %c24 = arith.constant 24 : index
    %45 = vector.load %arg8[%c0_59, %c24] : memref<256x36xbf16, #tpu.memory_space<vmem>>, vector<256x4xbf16>
    tpu.vector_store %arg8[%c0_59, %c24], %44 {strides = array<i32>} : memref<256x36xbf16, #tpu.memory_space<vmem>>, vector<256x4xbf16>,
    %c0_60 = arith.constant 0 : index
    %c2_61 = arith.constant 2 : index
    %c1_62 = arith.constant 1 : index
    %c0_63 = arith.constant 0 : index
    %46 = vector.load %arg7[%c0_60, %c2_61, %c1_62, %c0_63] : memref<1x18x18x4xf32, #tpu.memory_space<vmem>>, vector<1x16x16x4xf32>
    %47 = vector.shape_cast %46 : vector<1x16x16x4xf32> to vector<256x4xf32>
    %48 = arith.truncf %47 : vector<256x4xf32> to vector<256x4xbf16>
    %c0_64 = arith.constant 0 : index
    %c28 = arith.constant 28 : index
    %49 = vector.load %arg8[%c0_64, %c28] : memref<256x36xbf16, #tpu.memory_space<vmem>>, vector<256x4xbf16>
    tpu.vector_store %arg8[%c0_64, %c28], %48 {strides = array<i32>} : memref<256x36xbf16, #tpu.memory_space<vmem>>, vector<256x4xbf16>,
    %c0_65 = arith.constant 0 : index
    %c2_66 = arith.constant 2 : index
    %c2_67 = arith.constant 2 : index
    %c0_68 = arith.constant 0 : index
    %50 = vector.load %arg7[%c0_65, %c2_66, %c2_67, %c0_68] : memref<1x18x18x4xf32, #tpu.memory_space<vmem>>, vector<1x16x16x4xf32>
    %51 = vector.shape_cast %50 : vector<1x16x16x4xf32> to vector<256x4xf32>
    %52 = arith.truncf %51 : vector<256x4xf32> to vector<256x4xbf16>
    %c0_69 = arith.constant 0 : index
    %c32 = arith.constant 32 : index
    %53 = vector.load %arg8[%c0_69, %c32] : memref<256x36xbf16, #tpu.memory_space<vmem>>, vector<256x4xbf16>
    tpu.vector_store %arg8[%c0_69, %c32], %52 {strides = array<i32>} : memref<256x36xbf16, #tpu.memory_space<vmem>>, vector<256x4xbf16>,
    %c0_70 = arith.constant 0 : index
    %c0_71 = arith.constant 0 : index
    %54 = vector.load %arg8[%c0_70, %c0_71] : memref<256x36xbf16, #tpu.memory_space<vmem>>, vector<256x36xbf16>
    %c0_72 = arith.constant 0 : index
    %c0_73 = arith.constant 0 : index
    %55 = vector.load %arg4[%c0_72, %c0_73] : memref<36x4xbf16, #tpu.memory_space<vmem>>, vector<36x4xbf16>
    %cst_74 = arith.constant dense<0.000000e+00> : vector<256x4xf32>
    %56 = tpu.matmul %54, %55, %cst_74 {dimension_numbers = #tpu.dot_dimension_numbers<[1], [0], [0], [1], [0, 0, 1, 1], [], []>} : vector<256x36xbf16>, vector<36x4xbf16>, vector<256x4xf32> -> vector<256x4xf32>
    %cst_75 = arith.constant dense<0.000000e+00> : vector<4xf32>
    %57 = vector.multi_reduction <add>, %56, %cst_75 [0] : vector<256x4xf32> to vector<4xf32>
    %58 = vector.shape_cast %57 : vector<4xf32> to vector<1x4xf32>
    %59 = arith.mulf %56, %56 : vector<256x4xf32>
    %cst_76 = arith.constant dense<0.000000e+00> : vector<4xf32>
    %60 = vector.multi_reduction <add>, %59, %cst_76 [0] : vector<256x4xf32> to vector<4xf32>
    %61 = vector.shape_cast %60 : vector<4xf32> to vector<1x4xf32>
    %62 = tpu.concatenate %58, %61 in 0 : vector<1x4xf32>, vector<1x4xf32> -> vector<2x4xf32>
    %63 = vector.shape_cast %62 : vector<2x4xf32> to vector<1x2x4xf32>
    %c0_77 = arith.constant 0 : index
    %c0_78 = arith.constant 0 : index
    %c0_79 = arith.constant 0 : index
    %64 = vector.load %arg6[%c0_77, %c0_78, %c0_79] : memref<1x2x4xf32, #tpu.memory_space<vmem>>, vector<1x2x4xf32>
    tpu.vector_store %arg6[%c0_77, %c0_78, %c0_79], %63 {strides = array<i32>} : memref<1x2x4xf32, #tpu.memory_space<vmem>>, vector<1x2x4xf32>,
    %65 = arith.truncf %56 : vector<256x4xf32> to vector<256x4xbf16>
    %c0_80 = arith.constant 0 : index
    %c0_81 = arith.constant 0 : index
    %66 = vector.load %arg5[%c0_80, %c0_81] : memref<256x4xbf16, #tpu.memory_space<vmem>>, vector<256x4xbf16>
    tpu.vector_store %arg5[%c0_80, %c0_81], %65 {strides = array<i32>} : memref<256x4xbf16, #tpu.memory_space<vmem>>, vector<256x4xbf16>,
    return
  }
  func.func @transform_0(%arg0: i32) -> (i32, i32) {
    %c0_i32 = arith.constant 0 : i32
    %c0_i32_0 = arith.constant 0 : i32
    return %arg0, %c0_i32 : i32, i32
  }
  func.func @transform_1(%arg0: i32) -> (i32, i32) {
    %c0_i32 = arith.constant 0 : i32
    %c0_i32_0 = arith.constant 0 : i32
    %c0_i32_1 = arith.constant 0 : i32
    return %c0_i32, %c0_i32_0 : i32, i32
  }
  func.func @transform_2(%arg0: i32) -> (i32, i32) {
    %c0_i32 = arith.constant 0 : i32
    %c0_i32_0 = arith.constant 0 : i32
    %c0_i32_1 = arith.constant 0 : i32
    return %c0_i32, %c0_i32_0 : i32, i32
  }
  func.func @transform_3(%arg0: i32) -> (i32, i32) {
    %c0_i32 = arith.constant 0 : i32
    %c0_i32_0 = arith.constant 0 : i32
    %c0_i32_1 = arith.constant 0 : i32
    return %c0_i32, %c0_i32_0 : i32, i32
  }
  func.func @transform_4(%arg0: i32) -> (i32, i32) {
    %c0_i32 = arith.constant 0 : i32
    %c0_i32_0 = arith.constant 0 : i32
    return %arg0, %c0_i32 : i32, i32
  }
  func.func @transform_5(%arg0: i32) -> (i32, i32, i32) {
    %c0_i32 = arith.constant 0 : i32
    %c0_i32_0 = arith.constant 0 : i32
    %c0_i32_1 = arith.constant 0 : i32
    return %arg0, %c0_i32, %c0_i32_0 : i32, i32, i32
  }
}

module attributes {stable_mosaic.version = 11 : i64} {
  func.func @_residual_kernel(%arg0: i32, %arg1: memref<1x16x256xbf16, #tpu.memory_space<vmem>>, %arg2: memref<1x16x256xf32, #tpu.memory_space<vmem>>, %arg3: memref<16x1xf32, #tpu.memory_space<vmem>>, %arg4: memref<16x1xf32, #tpu.memory_space<vmem>>, %arg5: memref<1x16x256xf32, #tpu.memory_space<vmem>>) attributes {dimension_semantics = [#tpu.dimension_semantics<parallel>], iteration_bounds = array<i64: 2>, scalar_prefetch = 0 : i64, scratch_operands = 0 : i64, tpu.core_type = #tpu.core_type<tc>, window_params = [{transform_indices = @transform_0, window_bounds = array<i64: 1, 16, 256>}, {transform_indices = @transform_1, window_bounds = array<i64: 1, 16, 256>}, {pipeline_mode = #tpu.pipeline_mode<synchronous>, transform_indices = @transform_2, window_bounds = array<i64: 16, 1>}, {pipeline_mode = #tpu.pipeline_mode<synchronous>, transform_indices = @transform_3, window_bounds = array<i64: 16, 1>}, {transform_indices = @transform_4, window_bounds = array<i64: 1, 16, 256>}]} {
    %c0 = arith.constant 0 : index
    %c0_0 = arith.constant 0 : index
    %c0_1 = arith.constant 0 : index
    %0 = vector.load %arg1[%c0, %c0_0, %c0_1] : memref<1x16x256xbf16, #tpu.memory_space<vmem>>, vector<1x16x256xbf16>
    %1 = arith.extf %0 : vector<1x16x256xbf16> to vector<1x16x256xf32>
    %c0_2 = arith.constant 0 : index
    %c0_3 = arith.constant 0 : index
    %2 = vector.load %arg3[%c0_2, %c0_3] : memref<16x1xf32, #tpu.memory_space<vmem>>, vector<16x1xf32>
    %3 = vector.shape_cast %2 : vector<16x1xf32> to vector<1x16x1xf32>
    %4 = vector.broadcast %3 : vector<1x16x1xf32> to vector<1x16x256xf32>
    %5 = arith.mulf %1, %4 : vector<1x16x256xf32>
    %c0_4 = arith.constant 0 : index
    %c0_5 = arith.constant 0 : index
    %6 = vector.load %arg4[%c0_4, %c0_5] : memref<16x1xf32, #tpu.memory_space<vmem>>, vector<16x1xf32>
    %7 = vector.shape_cast %6 : vector<16x1xf32> to vector<1x16x1xf32>
    %8 = vector.broadcast %7 : vector<1x16x1xf32> to vector<1x16x256xf32>
    %9 = arith.addf %5, %8 : vector<1x16x256xf32>
    %c0_6 = arith.constant 0 : index
    %c0_7 = arith.constant 0 : index
    %c0_8 = arith.constant 0 : index
    %10 = vector.load %arg2[%c0_6, %c0_7, %c0_8] : memref<1x16x256xf32, #tpu.memory_space<vmem>>, vector<1x16x256xf32>
    %11 = arith.addf %9, %10 : vector<1x16x256xf32>
    %cst = arith.constant 0.000000e+00 : f32
    %12 = vector.broadcast %cst : f32 to vector<1x16x256xf32>
    %13 = arith.maximumf %11, %12 : vector<1x16x256xf32>
    %c0_9 = arith.constant 0 : index
    %c0_10 = arith.constant 0 : index
    %c0_11 = arith.constant 0 : index
    %14 = vector.load %arg5[%c0_9, %c0_10, %c0_11] : memref<1x16x256xf32, #tpu.memory_space<vmem>>, vector<1x16x256xf32>
    tpu.vector_store %arg5[%c0_9, %c0_10, %c0_11], %13 {strides = array<i32>} : memref<1x16x256xf32, #tpu.memory_space<vmem>>, vector<1x16x256xf32>,
    return
  }
  func.func @transform_0(%arg0: i32) -> (i32, i32, i32) {
    %c0_i32 = arith.constant 0 : i32
    %c0_i32_0 = arith.constant 0 : i32
    %c0_i32_1 = arith.constant 0 : i32
    return %arg0, %c0_i32, %c0_i32_0 : i32, i32, i32
  }
  func.func @transform_1(%arg0: i32) -> (i32, i32, i32) {
    %c0_i32 = arith.constant 0 : i32
    %c0_i32_0 = arith.constant 0 : i32
    %c0_i32_1 = arith.constant 0 : i32
    return %arg0, %c0_i32, %c0_i32_0 : i32, i32, i32
  }
  func.func @transform_2(%arg0: i32) -> (i32, i32) {
    %c0_i32 = arith.constant 0 : i32
    %c0_i32_0 = arith.constant 0 : i32
    %c0_i32_1 = arith.constant 0 : i32
    return %c0_i32, %c0_i32_0 : i32, i32
  }
  func.func @transform_3(%arg0: i32) -> (i32, i32) {
    %c0_i32 = arith.constant 0 : i32
    %c0_i32_0 = arith.constant 0 : i32
    %c0_i32_1 = arith.constant 0 : i32
    return %c0_i32, %c0_i32_0 : i32, i32
  }
  func.func @transform_4(%arg0: i32) -> (i32, i32, i32) {
    %c0_i32 = arith.constant 0 : i32
    %c0_i32_0 = arith.constant 0 : i32
    %c0_i32_1 = arith.constant 0 : i32
    return %arg0, %c0_i32, %c0_i32_0 : i32, i32, i32
  }
}

</mosaic_0001>

<bundles_post_ra>
// kernel: bottleneck_forward.4
= control target key start
LH: loop header
LB: loop body
LE: loop exit
PB: predicated region body
PF: predicated region fallthrough
CT: control target
= control target key end

     0   :  { %s1094_s12 = smov 0   ;;  %s1384_s0 = inlined_call_operand.vmem [shape: f32[2,16,256], index: 0, kind: input, shape index: {}]   ;;  %s1385_s1 = inlined_call_operand.vmem [shape: bf16[16,4], index: 1, kind: input, shape index: {}]   ;;  %s1386_s2 = inlined_call_operand.vmem [shape: bf16[512,4], index: 2, kind: output, shape index: {0}]   ;;  %s1387_s3 = inlined_call_operand.vmem [shape: f32[2,2,4], index: 3, kind: output, shape index: {1}]  }
   0x1 LB: > { %s1100_s13 = sadd.s32 4294967295, %s1072_s12   ;;  %p913_p0 = scmp.ge.s32.totalorder %s1072_s12, 1  ;;  %s1072_s12 = sphi %s1094_s12, %s14_s12  }
   0x2   : > { %p140_p1 = scmp.lt.s32.totalorder %s1072_s12, 3 }
   0x4   : > { %p141_p2 = pnand %p913_p0, %p140_p1 }
   0x5   : > { %p168_p3 = scmp.lt.s32.totalorder (!%p141_p2), %s1100_s13, 1  ;;  %v1065_v4 = vld [vmem:[%s1385_s1] sm:$0xff] (!%p141_p2)   ;;  %vm276_vm0 = vcmask (!%p141_p2), 130048   ;;  %s916_s21 = sshll.u32 (!%p141_p2), %s1100_s13, 5  ;;  %vm789_vm1 = vcmask (!%p141_p2), 27648   ;;  %vm486_vm2 = vcmask (!%p141_p2), 31744  }
   0x6   : > { %144 = sbr.rel (%p141_p2) target bundleno = 479 (0x1df), region = 28  ;;  %1020 = vmatprep.subr.bf16.mxu0 (!%p141_p2), %v1065_v4  ;;  %1054 = vmatprep.subr.bf16.mxu1 (!%p141_p2), %v1065_v4  ;;  %p174_p4 = scmp.lt.s32.totalorder (!%p141_p2), %s916_s21, 63  ;;  %vm657_vm3 = vcmask (!%p141_p2), 1040384   ;;  %vm659_vm4 = vcmask (!%p141_p2), 25600  }
   0x7   : > { %1021 = vmatpush3.bf16.msra.mxu0 (!%p141_p2), %v1065_v4  ;;  %1055 = vmatpush3.bf16.msra.mxu1 (!%p141_p2), %v1065_v4 }
   0xd   : > { %s1106_s14 = scalar_select %p168_p3, %s1100_s13, 1 }
   0xe   : > { %s1389_s21 = smov (!%p174_p4, %s916_s21), 63 }
   0xf   : > { %s970_s15 = sshll.u32 %s1106_s14, 5  ;;  %s917_s22 = sshll.u32 %s1389_s21, 2 }
  0x10   : > { %s172_s18 = scalar_lea.vmem %s1384_s0, %s970_s15  ;;  %s1135_s25 = scalar_lea.vmem %s1386_s2, %s917_s22 }
  0x11   : > { %v184_v0 = vld [vmem:[%s172_s18] sm:$0xff]  ;;  %v185_v1 = vld [vmem:[%s172_s18 + $0x8] sm:$0xff]  ;;  %v186_v2 = vld [vmem:[%s172_s18 + $0x10] sm:$0xff]  ;;  %s918_s26 = sshll.u32 %s1106_s14, 1 }
  0x12   : > { %188 = vxpose.xlu0.b32.start [1/2] (short) %v184_v0, 128  ;;  %220 = vxpose.xlu1.b32.start [1/2] (short) %v185_v1, 128  ;;  %v187_v3 = vld [vmem:[%s172_s18 + $0x18] sm:$0xff]  ;;  %s182_s29 = scalar_lea.vmem %s1387_s3, %s918_s26 }
  0x16   : > { %189 = vxpose.xlu0.b32.end [2/2] (short) %v186_v2, 128  ;;  %221 = vxpose.xlu1.b32.end [2/2] (short) %v187_v3, 128 }
  0x92   : > { %v204_v5 = vpop.trf.xlu0  ;;  %v236_v6 = vpop.trf.xlu1 }
  0x96   : > { %v205_v7 = vpop.trf.xlu0  ;;  %v237_v8 = vpop.trf.xlu1 }
  0x97   : > { %v252_v9 = vpack.c.bf16 %v205_v7, %v204_v5  ;;  %v260_v10 = vpack.c.bf16 %v237_v8, %v236_v6 }
  0x99   : > { %1022 = vmatprep.mubr.msk.bf16.mxu0 %vm276_vm0, %v252_v9  ;;  %1038 = vmatprep.mubr.msk.bf16.mxu1 %vm276_vm0, %v260_v10 }
  0x9a   : > { %v206_v11 = vpop.trf.xlu0  ;;  %v238_v12 = vpop.trf.xlu1 }
  0x9e   : > { %v207_v13 = vpop.trf.xlu0  ;;  %v239_v14 = vpop.trf.xlu1 }
  0x9f   : > { %v253_v15 = vpack.c.bf16 %v207_v13, %v206_v11  ;;  %v261_v16 = vpack.c.bf16 %v239_v14, %v238_v12 }
  0xa1   : > { %1023 = vmatmul.mubr.msk.bf16.vlgmr.msra.gmra.mrb[0].mxu0 %vm276_vm0, %v253_v15  ;;  %1039 = vmatmul.mubr.msk.bf16.vlgmr.msra.gmra.mrb[0].mxu1 %vm276_vm0, %v261_v16 }
  0xa2   : > { %v208_v17 = vpop.trf.xlu0  ;;  %v240_v18 = vpop.trf.xlu1 }
  0xa6   : > { %v209_v19 = vpop.trf.xlu0  ;;  %v241_v20 = vpop.trf.xlu1 }
  0xa7   : > { %v254_v21 = vpack.c.bf16 %v209_v19, %v208_v17  ;;  %v262_v22 = vpack.c.bf16 %v241_v20, %v240_v18 }
  0xa9   : > { %1026 = vmatprep.mubr.msk.bf16.mxu0 %vm276_vm0, %v254_v21  ;;  %1042 = vmatprep.mubr.msk.bf16.mxu1 %vm276_vm0, %v262_v22 }
  0xaa   : > { %v210_v23 = vpop.trf.xlu0  ;;  %v242_v24 = vpop.trf.xlu1 }
  0xae   : > { %v211_v25 = vpop.trf.xlu0  ;;  %v243_v26 = vpop.trf.xlu1 }
  0xaf   : > { %v255_v27 = vpack.c.bf16 %v211_v25, %v210_v23  ;;  %v263_v28 = vpack.c.bf16 %v243_v26, %v242_v24 }
  0xb1   : > { %1027 = vmatmul.mubr.msk.bf16.gmra.mrb[4].mxu0 %vm276_vm0, %v255_v27  ;;  %1043 = vmatmul.mubr.msk.bf16.gmra.mrb[4].mxu1 %vm276_vm0, %v263_v28 }
  0xb2   : > { %v212_v29 = vpop.trf.xlu0  ;;  %v244_v30 = vpop.trf.xlu1 }
  0xb6   : > { %v213_v31 = vpop.trf.xlu0  ;;  %v245_v32 = vpop.trf.xlu1 }
  0xb7   : > { %v256_v33 = vpack.c.bf16 %v213_v31, %v212_v29  ;;  %v264_v34 = vpack.c.bf16 %v245_v32, %v244_v30 }
  0xb9   : > { %1030 = vmatprep.mubr.msk.bf16.mxu0 %vm276_vm0, %v256_v33  ;;  %1046 = vmatprep.mubr.msk.bf16.mxu1 %vm276_vm0, %v264_v34 }
  0xba   : > { %v214_v35 = vpop.trf.xlu0  ;;  %v246_v36 = vpop.trf.xlu1 }
  0xbe   : > { %v215_v37 = vpop.trf.xlu0  ;;  %v247_v38 = vpop.trf.xlu1 }
  0xbf   : > { %v257_v39 = vpack.c.bf16 %v215_v37, %v214_v35  ;;  %v265_v40 = vpack.c.bf16 %v247_v38, %v246_v36 }
  0xc1   : > { %1031 = vmatmul.mubr.msk.bf16.gmra.mrb[8].mxu0 %vm276_vm0, %v257_v39  ;;  %1047 = vmatmul.mubr.msk.bf16.gmra.mrb[8].mxu1 %vm276_vm0, %v265_v40 }
  0xc2   : > { %v216_v41 = vpop.trf.xlu0  ;;  %v248_v42 = vpop.trf.xlu1 }
  0xc6   : > { %v217_v43 = vpop.trf.xlu0  ;;  %v249_v44 = vpop.trf.xlu1 }
  0xc7   : > { %v258_v45 = vpack.c.bf16 %v217_v43, %v216_v41  ;;  %v266_v46 = vpack.c.bf16 %v249_v44, %v248_v42 }
  0xc9   : > { %1034 = vmatprep.mubr.msk.bf16.mxu0 %vm276_vm0, %v258_v45  ;;  %1050 = vmatprep.mubr.msk.bf16.mxu1 %vm276_vm0, %v266_v46 }
  0xca   : > { %v218_v47 = vpop.trf.xlu0  ;;  %v250_v48 = vpop.trf.xlu1 }
  0xce   : > { %v219_v49 = vpop.trf.xlu0  ;;  %v251_v50 = vpop.trf.xlu1 }
  0xcf   : > { %v259_v51 = vpack.c.bf16 %v219_v49, %v218_v47  ;;  %v267_v52 = vpack.c.bf16 %v251_v50, %v250_v48 }
  0xd1   : > { %1035 = vmatmul.mubr.msk.bf16.gmra.mrb[12].mxu0 %vm276_vm0, %v259_v51  ;;  %1051 = vmatmul.mubr.msk.bf16.gmra.mrb[12].mxu1 %vm276_vm0, %v267_v52 }
 0x174   : > { %v1024_v53 = vpop.f32.mrb[0].mxu0  ;;  %v1137_v54 = vpop.f32.mrb[0].mxu1 }
 0x175   : > { %v973_v55 = vpack.c.bf16 %v1024_v53, %v1024_v53  ;;  %v359_v56 = vpop.f32.mrb[1].mxu0  ;;  %v1139_v57 = vpop.f32.mrb[1].mxu1  ;;  %v558_v62 = vmul.f32 %v1024_v53, %v1024_v53  ;;  %v490_v6 = vsel %vm486_vm2, %v1024_v53, 0.0  ;;  %v989_v8 = vpack.c.bf16 %v1137_v54, %v1137_v54 }
 0x176   : > { %v556_v58 = vmul.f32 %v359_v56, %v359_v56  ;;  %v971_v59 = vpack.c.bf16 %v359_v56, %v359_v56  ;;  %v1025_v60 = vpop.f32.mrb[2].mxu0  ;;  %v1141_v61 = vpop.f32.mrb[2].mxu1  ;;  %v487_v2 = vsel %vm486_vm2, %v359_v56, 0.0  ;;  %v987_v12 = vpack.c.bf16 %v1139_v57, %v1139_v57 }
 0x177   : > { %792 = vst.msk [vmem:[%s1135_s25 + $0x8] sm:$0xf] %vm789_vm1, %v973_v55  ;;  %v974_v63 = vpack.c.bf16 %v1025_v60, %v1025_v60  ;;  %v362_v0 = vpop.f32.mrb[3].mxu0  ;;  %v1145_v1 = vpop.f32.mrb[3].mxu1  ;;  %v559_v10 = vmul.f32 %v1025_v60, %v1025_v60  ;;  %808 = vst.msk [vmem:[%s1135_s25 + $0x48] sm:$0xf] %vm789_vm1, %v989_v8  ;;  %v990_v17 = vpack.c.bf16 %v1141_v61, %v1141_v61 }
 0x178   : > { %790 = vst.msk [vmem:[%s1135_s25] sm:$0xf] %vm789_vm1, %v971_v59  ;;  %v488_v3 = vsel %vm486_vm2, %v362_v0, 0.0  ;;  %v557_v4 = vmul.f32 %v362_v0, %v362_v0  ;;  %v972_v5 = vpack.c.bf16 %v362_v0, %v362_v0  ;;  %v588_v9 = vsel %vm486_vm2, %v556_v58, 0.0  ;;  %806 = vst.msk [vmem:[%s1135_s25 + $0x40] sm:$0xf] %vm789_vm1, %v987_v12 }
 0x179   : > { %793 = vst.msk [vmem:[%s1135_s25 + $0xc] sm:$0xf] %vm789_vm1, %v974_v63  ;;  %v489_v7 = vadd.f32 %v488_v3, %v487_v2  ;;  %v591_v15 = vsel %vm486_vm2, %v558_v62, 0.0  ;;  %v492_v16 = vsel %vm486_vm2, %v1025_v60, 0.0  ;;  %v988_v20 = vpack.c.bf16 %v1145_v1, %v1145_v1  ;;  %809 = vst.msk [vmem:[%s1135_s25 + $0x4c] sm:$0xf] %vm789_vm1, %v990_v17 }
 0x17a   : > { %v589_v11 = vsel %vm486_vm2, %v557_v4, 0.0  ;;  %791 = vst.msk [vmem:[%s1135_s25 + $0x4] sm:$0xf] %vm789_vm1, %v972_v5  ;;  %v593_v21 = vsel %vm486_vm2, %v559_v10, 0.0 }
 0x17b   : > { %v491_v13 = vadd.f32 %v490_v6, %v489_v7  ;;  %v590_v14 = vadd.f32 %v589_v11, %v588_v9  ;;  %807 = vst.msk [vmem:[%s1135_s25 + $0x44] sm:$0xf] %vm789_vm1, %v988_v20 }
 0x17d   : > { %v592_v18 = vadd.f32 %v591_v15, %v590_v14  ;;  %v493_v19 = vadd.f32 %v492_v16, %v491_v13 }
 0x17f   : > { %v594_v22 = vadd.f32 %v593_v21, %v592_v18 }
 0x184   : > { %v1028_v23 = vpop.f32.mrb[4].mxu0  ;;  %v1177_v24 = vpop.f32.mrb[4].mxu1 }
 0x185   : > { %v977_v25 = vpack.c.bf16 %v1028_v23, %v1028_v23  ;;  %v375_v26 = vpop.f32.mrb[5].mxu0  ;;  %v1179_v27 = vpop.f32.mrb[5].mxu1  ;;  %v562_v33 = vmul.f32 %v1028_v23, %v1028_v23  ;;  %v498_v44 = vsel %vm486_vm2, %v1028_v23, 0.0  ;;  %v993_v47 = vpack.c.bf16 %v1177_v24, %v1177_v24 }
 0x186   : > { %v494_v28 = vsel %vm486_vm2, %v375_v26, 0.0  ;;  %v560_v29 = vmul.f32 %v375_v26, %v375_v26  ;;  %v975_v30 = vpack.c.bf16 %v375_v26, %v375_v26  ;;  %v1029_v31 = vpop.f32.mrb[6].mxu0  ;;  %v1182_v32 = vpop.f32.mrb[6].mxu1  ;;  %v991_v50 = vpack.c.bf16 %v1179_v27, %v1179_v27 }
 0x187   : > { %796 = vst.msk [vmem:[%s1135_s25 + $0x18] sm:$0xf] %vm789_vm1, %v977_v25  ;;  %v495_v34 = vadd.f32 %v494_v28, %v493_v19  ;;  %v378_v35 = vpop.f32.mrb[7].mxu0  ;;  %v1186_v36 = vpop.f32.mrb[7].mxu1  ;;  %v978_v38 = vpack.c.bf16 %v1029_v31, %v1029_v31  ;;  %v563_v45 = vmul.f32 %v1029_v31, %v1029_v31  ;;  %v599_v51 = vsel %vm486_vm2, %v562_v33, 0.0 }
 0x188   : > { %v595_v37 = vsel %vm486_vm2, %v560_v29, 0.0  ;;  %794 = vst.msk [vmem:[%s1135_s25 + $0x10] sm:$0xf] %vm789_vm1, %v975_v30  ;;  %v496_v39 = vsel %vm486_vm2, %v378_v35, 0.0  ;;  %v561_v40 = vmul.f32 %v378_v35, %v378_v35  ;;  %v976_v43 = vpack.c.bf16 %v378_v35, %v378_v35  ;;  %812 = vst.msk [vmem:[%s1135_s25 + $0x58] sm:$0xf] %vm789_vm1, %v993_v47 }
 0x189   : > { %v596_v41 = vadd.f32 %v595_v37, %v594_v22  ;;  %v497_v42 = vadd.f32 %v496_v39, %v495_v34  ;;  %797 = vst.msk [vmem:[%s1135_s25 + $0x1c] sm:$0xf] %vm789_vm1, %v978_v38  ;;  %v500_v52 = vsel %vm486_vm2, %v1029_v31, 0.0  ;;  %v994_v53 = vpack.c.bf16 %v1182_v32, %v1182_v32  ;;  %810 = vst.msk [vmem:[%s1135_s25 + $0x50] sm:$0xf] %vm789_vm1, %v991_v50 }
 0x18a   : > { %v597_v46 = vsel %vm486_vm2, %v561_v40, 0.0  ;;  %795 = vst.msk [vmem:[%s1135_s25 + $0x14] sm:$0xf] %vm789_vm1, %v976_v43  ;;  %v601_v58 = vsel %vm486_vm2, %v563_v45, 0.0  ;;  %v992_v59 = vpack.c.bf16 %v1186_v36, %v1186_v36 }
 0x18b   : > { %v499_v48 = vadd.f32 %v498_v44, %v497_v42  ;;  %v598_v49 = vadd.f32 %v597_v46, %v596_v41  ;;  %813 = vst.msk [vmem:[%s1135_s25 + $0x5c] sm:$0xf] %vm789_vm1, %v994_v53 }
 0x18c   : > { %811 = vst.msk [vmem:[%s1135_s25 + $0x54] sm:$0xf] %vm789_vm1, %v992_v59 }
 0x18d   : > { %v600_v55 = vadd.f32 %v599_v51, %v598_v49  ;;  %v501_v56 = vadd.f32 %v500_v52, %v499_v48 }
 0x18f   : > { %v602_v60 = vadd.f32 %v601_v58, %v600_v55 }
 0x194   : > { %v1032_v62 = vpop.f32.mrb[8].mxu0  ;;  %v1217_v63 = vpop.f32.mrb[8].mxu1 }
 0x195   : > { %v981_v0 = vpack.c.bf16 %v1032_v62, %v1032_v62  ;;  %v391_v2 = vpop.f32.mrb[9].mxu0  ;;  %v1219_v3 = vpop.f32.mrb[9].mxu1  ;;  %v566_v9 = vmul.f32 %v1032_v62, %v1032_v62  ;;  %v506_v20 = vsel %vm486_vm2, %v1032_v62, 0.0  ;;  %v997_v23 = vpack.c.bf16 %v1217_v63, %v1217_v63 }
 0x196   : > { %v502_v4 = vsel %vm486_vm2, %v391_v2, 0.0  ;;  %v564_v5 = vmul.f32 %v391_v2, %v391_v2  ;;  %v979_v6 = vpack.c.bf16 %v391_v2, %v391_v2  ;;  %v1033_v7 = vpop.f32.mrb[10].mxu0  ;;  %v1222_v8 = vpop.f32.mrb[10].mxu1  ;;  %v995_v28 = vpack.c.bf16 %v1219_v3, %v1219_v3 }
 0x197   : > { %800 = vst.msk [vmem:[%s1135_s25 + $0x28] sm:$0xf] %vm789_vm1, %v981_v0  ;;  %v503_v10 = vadd.f32 %v502_v4, %v501_v56  ;;  %v394_v11 = vpop.f32.mrb[11].mxu0  ;;  %v1226_v12 = vpop.f32.mrb[11].mxu1  ;;  %v982_v14 = vpack.c.bf16 %v1033_v7, %v1033_v7  ;;  %v567_v21 = vmul.f32 %v1033_v7, %v1033_v7  ;;  %v607_v29 = vsel %vm486_vm2, %v566_v9, 0.0 }
 0x198   : > { %v603_v13 = vsel %vm486_vm2, %v564_v5, 0.0  ;;  %798 = vst.msk [vmem:[%s1135_s25 + $0x20] sm:$0xf] %vm789_vm1, %v979_v6  ;;  %v504_v15 = vsel %vm486_vm2, %v394_v11, 0.0  ;;  %v565_v16 = vmul.f32 %v394_v11, %v394_v11  ;;  %v980_v19 = vpack.c.bf16 %v394_v11, %v394_v11  ;;  %816 = vst.msk [vmem:[%s1135_s25 + $0x68] sm:$0xf] %vm789_vm1, %v997_v23 }
 0x199   : > { %v604_v17 = vadd.f32 %v603_v13, %v602_v60  ;;  %v505_v18 = vadd.f32 %v504_v15, %v503_v10  ;;  %801 = vst.msk [vmem:[%s1135_s25 + $0x2c] sm:$0xf] %vm789_vm1, %v982_v14  ;;  %v508_v30 = vsel %vm486_vm2, %v1033_v7, 0.0  ;;  %v998_v31 = vpack.c.bf16 %v1222_v8, %v1222_v8  ;;  %814 = vst.msk [vmem:[%s1135_s25 + $0x60] sm:$0xf] %vm789_vm1, %v995_v28 }
 0x19a   : > { %v605_v22 = vsel %vm486_vm2, %v565_v16, 0.0  ;;  %799 = vst.msk [vmem:[%s1135_s25 + $0x24] sm:$0xf] %vm789_vm1, %v980_v19  ;;  %v609_v35 = vsel %vm486_vm2, %v567_v21, 0.0  ;;  %v996_v37 = vpack.c.bf16 %v1226_v12, %v1226_v12  ;;  %v572_v10 = vmul.f32 %v1139_v57, %v1139_v57 }
 0x19b   : > { %v507_v25 = vadd.f32 %v506_v20, %v505_v18  ;;  %v606_v26 = vadd.f32 %v605_v22, %v604_v17  ;;  %817 = vst.msk [vmem:[%s1135_s25 + $0x6c] sm:$0xf] %vm789_vm1, %v998_v31  ;;  %v518_v17 = vsel %vm486_vm2, %v1139_v57, 0.0  ;;  %v573_v18 = vmul.f32 %v1145_v1, %v1145_v1 }
 0x19c   : > { %815 = vst.msk [vmem:[%s1135_s25 + $0x64] sm:$0xf] %vm789_vm1, %v996_v37  ;;  %v574_v23 = vmul.f32 %v1137_v54, %v1137_v54  ;;  %v520_v57 = vsel %vm486_vm2, %v1145_v1, 0.0  ;;  %v524_v37 = vsel %vm486_vm2, %v1141_v61, 0.0  ;;  %v576_v1 = vmul.f32 %v1179_v27, %v1179_v27 }
 0x19d   : > { %v608_v33 = vadd.f32 %v607_v29, %v606_v26  ;;  %v509_v34 = vadd.f32 %v508_v30, %v507_v25  ;;  %v619_v25 = vsel %vm486_vm2, %v572_v10, 0.0  ;;  %v522_v29 = vsel %vm486_vm2, %v1137_v54, 0.0 }
 0x19e   : > { %v575_v30 = vmul.f32 %v1141_v61, %v1141_v61  ;;  %v621_v31 = vsel %vm486_vm2, %v573_v18, 0.0  ;;  %v526_v54 = vsel %vm486_vm2, %v1179_v27, 0.0  ;;  %v627_v61 = vsel %vm486_vm2, %v576_v1, 0.0 }
 0x19f   : > { %v610_v38 = vadd.f32 %v609_v35, %v608_v33  ;;  %v623_v35 = vsel %vm486_vm2, %v574_v23, 0.0  ;;  %v579_v27 = vmul.f32 %v1182_v32, %v1182_v32 }
 0x1a4   : > { %v1036_v39 = vpop.f32.mrb[12].mxu0  ;;  %v1257_v40 = vpop.f32.mrb[12].mxu1 }
 0x1a5   : > { %v985_v41 = vpack.c.bf16 %v1036_v39, %v1036_v39  ;;  %v407_v42 = vpop.f32.mrb[13].mxu0  ;;  %v1259_v43 = vpop.f32.mrb[13].mxu1  ;;  %v570_v49 = vmul.f32 %v1036_v39, %v1036_v39  ;;  %v514_v0 = vsel %vm486_vm2, %v1036_v39, 0.0  ;;  %v1001_v5 = vpack.c.bf16 %v1257_v40, %v1257_v40 }
 0x1a6   : > { %v510_v44 = vsel %vm486_vm2, %v407_v42, 0.0  ;;  %v568_v45 = vmul.f32 %v407_v42, %v407_v42  ;;  %v983_v46 = vpack.c.bf16 %v407_v42, %v407_v42  ;;  %v1037_v47 = vpop.f32.mrb[14].mxu0  ;;  %v1262_v48 = vpop.f32.mrb[14].mxu1  ;;  %v999_v9 = vpack.c.bf16 %v1259_v43, %v1259_v43 }
 0x1a7   : > { %804 = vst.msk [vmem:[%s1135_s25 + $0x38] sm:$0xf] %vm789_vm1, %v985_v41  ;;  %v511_v50 = vadd.f32 %v510_v44, %v509_v34  ;;  %v410_v51 = vpop.f32.mrb[15].mxu0  ;;  %v1266_v52 = vpop.f32.mrb[15].mxu1  ;;  %v986_v55 = vpack.c.bf16 %v1037_v47, %v1037_v47  ;;  %v571_v2 = vmul.f32 %v1037_v47, %v1037_v47  ;;  %v615_v11 = vsel %vm486_vm2, %v570_v49, 0.0 }
 0x1a8   : > { %v611_v53 = vsel %vm486_vm2, %v568_v45, 0.0  ;;  %802 = vst.msk [vmem:[%s1135_s25 + $0x30] sm:$0xf] %vm789_vm1, %v983_v46  ;;  %v512_v56 = vsel %vm486_vm2, %v410_v51, 0.0  ;;  %v569_v58 = vmul.f32 %v410_v51, %v410_v51  ;;  %v984_v62 = vpack.c.bf16 %v410_v51, %v410_v51  ;;  %820 = vst.msk [vmem:[%s1135_s25 + $0x78] sm:$0xf] %vm789_vm1, %v1001_v5 }
 0x1a9   : > { %v612_v59 = vadd.f32 %v611_v53, %v610_v38  ;;  %v513_v60 = vadd.f32 %v512_v56, %v511_v50  ;;  %805 = vst.msk [vmem:[%s1135_s25 + $0x3c] sm:$0xf] %vm789_vm1, %v986_v55  ;;  %v516_v13 = vsel %vm486_vm2, %v1037_v47, 0.0  ;;  %v1002_v14 = vpack.c.bf16 %v1262_v48, %v1262_v48  ;;  %818 = vst.msk [vmem:[%s1135_s25 + $0x70] sm:$0xf] %vm789_vm1, %v999_v9 }
 0x1aa   : > { %v613_v4 = vsel %vm486_vm2, %v569_v58, 0.0  ;;  %803 = vst.msk [vmem:[%s1135_s25 + $0x34] sm:$0xf] %vm789_vm1, %v984_v62  ;;  %v617_v19 = vsel %vm486_vm2, %v571_v2, 0.0  ;;  %v1000_v20 = vpack.c.bf16 %v1266_v52, %v1266_v52  ;;  %v625_v41 = vsel %vm486_vm2, %v575_v30, 0.0 }
 0x1ab   : > { %v515_v6 = vadd.f32 %v514_v0, %v513_v60  ;;  %v614_v7 = vadd.f32 %v613_v4, %v612_v59  ;;  %821 = vst.msk [vmem:[%s1135_s25 + $0x7c] sm:$0xf] %vm789_vm1, %v1002_v14  ;;  %v577_v42 = vmul.f32 %v1186_v36, %v1186_v36  ;;  %v578_v46 = vmul.f32 %v1177_v24, %v1177_v24 }
 0x1ac   : > { %819 = vst.msk [vmem:[%s1135_s25 + $0x74] sm:$0xf] %vm789_vm1, %v1000_v20  ;;  %v528_v47 = vsel %vm486_vm2, %v1186_v36, 0.0  ;;  %v530_v51 = vsel %vm486_vm2, %v1177_v24, 0.0  ;;  %v532_v59 = vsel %vm486_vm2, %v1182_v32, 0.0  ;;  %v580_v36 = vmul.f32 %v1219_v3, %v1219_v3 }
 0x1ad   : > { %v517_v15 = vadd.f32 %v516_v13, %v515_v6  ;;  %v616_v16 = vadd.f32 %v615_v11, %v614_v7  ;;  %v629_v53 = vsel %vm486_vm2, %v577_v42, 0.0  ;;  %v631_v58 = vsel %vm486_vm2, %v578_v46, 0.0 }
 0x1ae   : > { %v633_v0 = vsel %vm486_vm2, %v579_v27, 0.0  ;;  %v534_v24 = vsel %vm486_vm2, %v1219_v3, 0.0  ;;  %v581_v2 = vmul.f32 %v1226_v12, %v1226_v12  ;;  %v582_v6 = vmul.f32 %v1217_v63, %v1217_v63 }
 0x1af   : > { %v519_v21 = vadd.f32 %v518_v17, %v517_v15  ;;  %v618_v22 = vadd.f32 %v617_v19, %v616_v16  ;;  %v635_v32 = vsel %vm486_vm2, %v580_v36, 0.0  ;;  %v536_v7 = vsel %vm486_vm2, %v1226_v12, 0.0 }
 0x1b0   : > { %v538_v11 = vsel %vm486_vm2, %v1217_v63, 0.0  ;;  %v583_v3 = vmul.f32 %v1222_v8, %v1222_v8  ;;  %v637_v13 = vsel %vm486_vm2, %v581_v2, 0.0  ;;  %v639_v16 = vsel %vm486_vm2, %v582_v6, 0.0 }
 0x1b1   : > { %v521_v26 = vadd.f32 %v520_v57, %v519_v21  ;;  %v620_v28 = vadd.f32 %v619_v25, %v618_v22  ;;  %v540_v17 = vsel %vm486_vm2, %v1222_v8, 0.0  ;;  %v584_v12 = vmul.f32 %v1259_v43, %v1259_v43 }
 0x1b2   : > { %v641_v20 = vsel %vm486_vm2, %v583_v3, 0.0  ;;  %v542_v63 = vsel %vm486_vm2, %v1259_v43, 0.0  ;;  %v585_v21 = vmul.f32 %v1266_v52, %v1266_v52  ;;  %v586_v25 = vmul.f32 %v1257_v40, %v1257_v40 }
 0x1b3   : > { %v523_v33 = vadd.f32 %v522_v29, %v521_v26  ;;  %v622_v34 = vadd.f32 %v621_v31, %v620_v28  ;;  %v643_v8 = vsel %vm486_vm2, %v584_v12, 0.0  ;;  %v544_v57 = vsel %vm486_vm2, %v1266_v52, 0.0 }
 0x1b4   : > { %v546_v29 = vsel %vm486_vm2, %v1257_v40, 0.0  ;;  %v587_v43 = vmul.f32 %v1262_v48, %v1262_v48  ;;  %v645_v30 = vsel %vm486_vm2, %v585_v21, 0.0 }
 0x1b5   : > { %v624_v38 = vadd.f32 %v623_v35, %v622_v34  ;;  %v525_v39 = vadd.f32 %v524_v37, %v523_v33  ;;  %v647_v34 = vsel %vm486_vm2, %v586_v25, 0.0  ;;  %v548_v35 = vsel %vm486_vm2, %v1262_v48, 0.0 }
 0x1b6   : > { %v649_v1 = vsel %vm486_vm2, %v587_v43, 0.0 }
 0x1b7   : > { %v527_v44 = vadd.f32 %v526_v54, %v525_v39  ;;  %v626_v45 = vadd.f32 %v625_v41, %v624_v38 }
 0x1b9   : > { %v529_v49 = vadd.f32 %v528_v47, %v527_v44  ;;  %v628_v50 = vadd.f32 %v627_v61, %v626_v45 }
 0x1bb   : > { %v531_v55 = vadd.f32 %v530_v51, %v529_v49  ;;  %v630_v56 = vadd.f32 %v629_v53, %v628_v50 }
 0x1bd   : > { %v533_v60 = vadd.f32 %v532_v59, %v531_v55  ;;  %v632_v62 = vadd.f32 %v631_v58, %v630_v56 }
 0x1bf   : > { %v535_v4 = vadd.f32 %v534_v24, %v533_v60  ;;  %v634_v5 = vadd.f32 %v633_v0, %v632_v62 }
 0x1c1   : > { %v636_v9 = vadd.f32 %v635_v32, %v634_v5  ;;  %v537_v10 = vadd.f32 %v536_v7, %v535_v4 }
 0x1c3   : > { %v539_v14 = vadd.f32 %v538_v11, %v537_v10  ;;  %v638_v15 = vadd.f32 %v637_v13, %v636_v9 }
 0x1c5   : > { %v640_v18 = vadd.f32 %v639_v16, %v638_v15  ;;  %v541_v19 = vadd.f32 %v540_v17, %v539_v14 }
 0x1c7   : > { %v543_v22 = vadd.f32 %v542_v63, %v541_v19  ;;  %v642_v23 = vadd.f32 %v641_v20, %v640_v18 }
 0x1c9   : > { %v644_v26 = vadd.f32 %v643_v8, %v642_v23  ;;  %v545_v28 = vadd.f32 %v544_v57, %v543_v22 }
 0x1cb   : > { %v547_v31 = vadd.f32 %v546_v29, %v545_v28  ;;  %v646_v33 = vadd.f32 %v645_v30, %v644_v26 }
 0x1cd   : > { %v549_v37 = vadd.f32 %v548_v35, %v547_v31  ;;  %v648_v52 = vadd.f32 %v647_v34, %v646_v33 }
 0x1cf   : > { %v550_v38 = vrot.slane %v549_v37, 4  ;;  %v650_v39 = vadd.f32 %v649_v1, %v648_v52 }
 0x1d1   : > { %v551_v40 = vadd.f32 %v550_v38, %v549_v37  ;;  %v651_v41 = vrot.slane %v650_v39, 4 }
 0x1d3   : > { %v552_v54 = vrot.slane %v551_v40, 2  ;;  %v652_v42 = vadd.f32 %v651_v41, %v650_v39 }
 0x1d5   : > { %v553_v44 = vadd.f32 %v552_v54, %v551_v40  ;;  %v653_v45 = vrot.slane %v652_v42, 2 }
 0x1d7   : > { %v554_v46 = vrot.slane %v553_v44, 1  ;;  %v654_v61 = vadd.f32 %v653_v45, %v652_v42 }
 0x1d9   : > { %v655_v47 = vrot.slane %v654_v61, 1  ;;  %v555_v48 = vadd.f32 %v554_v46, %v553_v44 }
 0x1db   : > { %v656_v49 = vadd.f32 %v655_v47, %v654_v61 }
 0x1dd   : > { %v658_v50 = vsel %vm657_vm3, %v555_v48, %v656_v49 }
 0x1de   : > { %660 = vst.msk [vmem:[%s182_s29] sm:$0x3] %vm659_vm4, %v658_v50 }
 0x1df PF: > { %s14_s12 = sadd.s32 1, %s1072_s12  }
 0x1e0   : > { %p11_p5 = scmp.ge.s32.totalorder %s14_s12, 4  }
 0x1e2   :  { %13 = sbr.rel (!%p11_p5) target bundleno = 1 (0x1), region = 70 }

// kernel: bottleneck_forward.6
= control target key start
LH: loop header
LB: loop body
LE: loop exit
PB: predicated region body
PF: predicated region fallthrough
CT: control target
= control target key end

     0   :  { %s1240_s18 = smov 0   ;;  %s1608_s0 = inlined_call_operand.vmem [shape: bf16[512,4], index: 0, kind: input, shape index: {}]   ;;  %s1609_s1 = inlined_call_operand.vmem [shape: f32[1,4], index: 1, kind: input, shape index: {}]   ;;  %s1610_s2 = inlined_call_operand.vmem [shape: f32[1,4], index: 2, kind: input, shape index: {}]   ;;  %s1611_s3 = inlined_call_operand.vmem [shape: bf16[4,16], index: 3, kind: input, shape index: {}]   ;;  %s1612_s4 = inlined_call_operand.vmem [shape: bf16[2,16,256], index: 4, kind: output, shape index: {0}]   ;;  %s1613_s5 = inlined_call_operand.vmem [shape: f32[2,2,16], index: 5, kind: output, shape index: {1}]  }
   0x1 LB: > { %s1246_s19 = sadd.s32 4294967295, %s1208_s18   ;;  %p987_p0 = scmp.ge.s32.totalorder %s1208_s18, 1  ;;  %s1208_s18 = sphi %s1240_s18, %s16_s18  }
   0x2   : > { %p191_p1 = scmp.lt.s32.totalorder %s1208_s18, 3 }
   0x4   : > { %p192_p2 = pnand %p987_p0, %p191_p1 }
   0x5   : > { %v429_v0 = vld [vmem:[%s1611_s3] sm:$0x3] (!%p192_p2)  ;;  %vm479_vm0 = vcmask (!%p192_p2), 1041408   ;;  %s988_s22 = sshll.u32 (!%p192_p2), %s1246_s19, 5  ;;  %vm430_vm1 = vcmask (!%p192_p2), 31744   ;;  %vm644_vm2 = vcmask (!%p192_p2), 130048  }
   0x6   : > { %195 = sbr.rel (%p192_p2) target bundleno = 382 (0x17e), region = 36  ;;  %1150 = vmatprep.subr.msk.bf16.mxu0 (!%p192_p2), %vm479_vm0, %v429_v0  ;;  %1151 = vmatprep.subr.msk.bf16.mxu1 (!%p192_p2), %vm479_vm0, %v429_v0  ;;  %v481_v1 = vsel (!%p192_p2), %vm479_vm0, %v429_v0, 0  ;;  %p224_p3 = scmp.lt.s32.totalorder (!%p192_p2), %s988_s22, 63  ;;  %v1262_v2 = vld [vmem:[%s1609_s1] ss:$0 sm:$0xff] (!%p192_p2)  ;;  %vm815_vm3 = vcmask (!%p192_p2), 1040384  }
   0x7   : > { %1115 = vmatpush3.bf16.msra.mxu0 (!%p192_p2), %v481_v1  ;;  %1149 = vmatpush3.bf16.msra.mxu1 (!%p192_p2), %v481_v1  ;;  %v1271_v11 = vld [vmem:[%s1610_s2] ss:$0 sm:$0xff] (!%p192_p2)  ;;  %p229_p4 = scmp.lt.s32.totalorder (!%p192_p2), %s1246_s19, 1  ;;  %vm817_vm4 = vcmask (!%p192_p2), 123904  }
   0xd   : > { %s1615_s22 = smov (!%p224_p3, %s988_s22), 63  ;;  %s1617_s19 = smov (!%p229_p4, %s1246_s19), 1 }
   0xe   : > { %s989_s23 = sshll.u32 %s1615_s22, 2  ;;  %s992_s6 = sshll.u32 %s1617_s19, 1 }
   0xf   : > { %s1257_s26 = scalar_lea.vmem %s1608_s0, %s989_s23  ;;  %s237_s9 = scalar_lea.vmem %s1613_s5, %s992_s6 }
  0x10   : > { %v1019_v3 = vld [vmem:[%s1257_s26] sm:$0xff]   ;;  %v1082_v5 = vld [vmem:[%s1257_s26 + $0x8] sm:$0xff]   ;;  %v1083_v32 = vld [vmem:[%s1257_s26 + $0x10] sm:$0xff]   ;;  %s1015_s10 = sshll.u32 %s1617_s19, 4 }
  0x11   : > { %v1089_v4 = vld [vmem:[%s1257_s26 + $0x40] sm:$0xff]   ;;  %v1020_v6 = vunpack.c.l.bf16 %v1019_v3  ;;  %v1021_v7 = vunpack.c.h.bf16 %v1019_v3  ;;  %v1090_v10 = vld [vmem:[%s1257_s26 + $0x48] sm:$0xff]   ;;  %v1024_v12 = vunpack.c.l.bf16 %v1082_v5  ;;  %v1025_v13 = vunpack.c.h.bf16 %v1082_v5  ;;  %v1084_v37 = vld [vmem:[%s1257_s26 + $0x18] sm:$0xff]   ;;  %s233_s13 = scalar_lea.vmem %s1612_s4, %s1015_s10 }
  0x12   : > { %v1052_v8 = vunpack.c.l.bf16 %v1089_v4  ;;  %v1053_v9 = vunpack.c.h.bf16 %v1089_v4  ;;  %v1056_v14 = vunpack.c.l.bf16 %v1090_v10  ;;  %v1057_v15 = vunpack.c.h.bf16 %v1090_v10  ;;  %v1091_v42 = vld [vmem:[%s1257_s26 + $0x50] sm:$0xff]   ;;  %v1092_v47 = vld [vmem:[%s1257_s26 + $0x58] sm:$0xff]   ;;  %v1085_v5 = vld [vmem:[%s1257_s26 + $0x20] sm:$0xff]  }
  0x13   : > { %v310_v16 = vmul.f32 %v1020_v6, %v1262_v2  ;;  %v311_v17 = vmul.f32 %v1021_v7, %v1262_v2  ;;  %v312_v20 = vmul.f32 %v1024_v12, %v1262_v2  ;;  %v313_v21 = vmul.f32 %v1025_v13, %v1262_v2 }
  0x14   : > { %v326_v18 = vmul.f32 %v1052_v8, %v1262_v2  ;;  %v327_v19 = vmul.f32 %v1053_v9, %v1262_v2  ;;  %v328_v22 = vmul.f32 %v1056_v14, %v1262_v2  ;;  %v329_v23 = vmul.f32 %v1057_v15, %v1262_v2  ;;  %v1086_v15 = vld [vmem:[%s1257_s26 + $0x28] sm:$0xff]  }
  0x15   : > { %v349_v24 = vadd.f32 %v1271_v11, %v310_v16  ;;  %v350_v25 = vadd.f32 %v1271_v11, %v311_v17  ;;  %v351_v28 = vadd.f32 %v1271_v11, %v312_v20  ;;  %v352_v29 = vadd.f32 %v1271_v11, %v313_v21  ;;  %v1087_v20 = vld [vmem:[%s1257_s26 + $0x30] sm:$0xff]  }
  0x16   : > { %v365_v26 = vadd.f32 %v1271_v11, %v326_v18  ;;  %v366_v27 = vadd.f32 %v1271_v11, %v327_v19  ;;  %v367_v30 = vadd.f32 %v1271_v11, %v328_v22  ;;  %v368_v31 = vadd.f32 %v1271_v11, %v329_v23 }
  0x17   : > { %v381_v33 = vmax.f32 %v349_v24, 0.0  ;;  %v382_v34 = vmax.f32 %v350_v25, 0.0  ;;  %v383_v38 = vmax.f32 %v351_v28, 0.0  ;;  %v384_v39 = vmax.f32 %v352_v29, 0.0  ;;  %v1088_v25 = vld [vmem:[%s1257_s26 + $0x38] sm:$0xff]  }
  0x18   : > { %v397_v35 = vmax.f32 %v365_v26, 0.0  ;;  %v398_v36 = vmax.f32 %v366_v27, 0.0  ;;  %v399_v40 = vmax.f32 %v367_v30, 0.0  ;;  %v400_v41 = vmax.f32 %v368_v31, 0.0 }
  0x19   : > { %v413_v43 = vpack.c.bf16 %v382_v34, %v381_v33  ;;  %v1028_v45 = vunpack.c.l.bf16 %v1083_v32  ;;  %v1029_v46 = vunpack.c.h.bf16 %v1083_v32  ;;  %v414_v48 = vpack.c.bf16 %v384_v39, %v383_v38 }
  0x1a   : > { %v421_v44 = vpack.c.bf16 %v398_v36, %v397_v35  ;;  %v422_v49 = vpack.c.bf16 %v400_v41, %v399_v40  ;;  %v1032_v50 = vunpack.c.l.bf16 %v1084_v37  ;;  %v1033_v51 = vunpack.c.h.bf16 %v1084_v37 }
  0x1b   : > { %1116 = vmatprep.mubr.msk.bf16.mxu0 %vm430_vm1, %v413_v43  ;;  %v314_v52 = vmul.f32 %v1028_v45, %v1262_v2  ;;  %v315_v53 = vmul.f32 %v1029_v46, %v1262_v2  ;;  %v1060_v54 = vunpack.c.l.bf16 %v1091_v42  ;;  %v1061_v55 = vunpack.c.h.bf16 %v1091_v42  ;;  %v1093_v42 = vld [vmem:[%s1257_s26 + $0x60] sm:$0xff]  }
  0x1c   : > { %1132 = vmatprep.mubr.msk.bf16.mxu1 %vm430_vm1, %v421_v44  ;;  %1117 = vmatmul.mubr.msk.bf16.vlgmr.msra.gmra.mrb[0].mxu0 %vm430_vm1, %v414_v48  ;;  %v316_v56 = vmul.f32 %v1032_v50, %v1262_v2  ;;  %v317_v57 = vmul.f32 %v1033_v51, %v1262_v2  ;;  %v1064_v58 = vunpack.c.l.bf16 %v1092_v47  ;;  %v1065_v59 = vunpack.c.h.bf16 %v1092_v47 }
  0x1d   : > { %1133 = vmatmul.mubr.msk.bf16.vlgmr.msra.gmra.mrb[0].mxu1 %vm430_vm1, %v422_v49  ;;  %v353_v60 = vadd.f32 %v1271_v11, %v314_v52  ;;  %v354_v61 = vadd.f32 %v1271_v11, %v315_v53  ;;  %v330_v62 = vmul.f32 %v1060_v54, %v1262_v2  ;;  %v331_v63 = vmul.f32 %v1061_v55, %v1262_v2  ;;  %v1094_v55 = vld [vmem:[%s1257_s26 + $0x68] sm:$0xff]  }
  0x1e   : > { %v355_v0 = vadd.f32 %v1271_v11, %v316_v56  ;;  %v356_v1 = vadd.f32 %v1271_v11, %v317_v57  ;;  %v332_v3 = vmul.f32 %v1064_v58, %v1262_v2  ;;  %v333_v4 = vmul.f32 %v1065_v59, %v1262_v2 }
  0x1f   : > { %v385_v6 = vmax.f32 %v353_v60, 0.0  ;;  %v386_v7 = vmax.f32 %v354_v61, 0.0  ;;  %v369_v8 = vadd.f32 %v1271_v11, %v330_v62  ;;  %v370_v9 = vadd.f32 %v1271_v11, %v331_v63  ;;  %v1095_v60 = vld [vmem:[%s1257_s26 + $0x70] sm:$0xff]  }
  0x20   : > { %v387_v10 = vmax.f32 %v355_v0, 0.0  ;;  %v388_v12 = vmax.f32 %v356_v1, 0.0  ;;  %v371_v13 = vadd.f32 %v1271_v11, %v332_v3  ;;  %v372_v14 = vadd.f32 %v1271_v11, %v333_v4  ;;  %v1096_v1 = vld [vmem:[%s1257_s26 + $0x78] sm:$0xff]  }
  0x21   : > { %v415_v16 = vpack.c.bf16 %v386_v7, %v385_v6  ;;  %v401_v17 = vmax.f32 %v369_v8, 0.0  ;;  %v402_v18 = vmax.f32 %v370_v9, 0.0  ;;  %v1036_v19 = vunpack.c.l.bf16 %v1085_v5 }
  0x22   : > { %v416_v21 = vpack.c.bf16 %v388_v12, %v387_v10  ;;  %v403_v22 = vmax.f32 %v371_v13, 0.0  ;;  %v404_v23 = vmax.f32 %v372_v14, 0.0  ;;  %v1037_v24 = vunpack.c.h.bf16 %v1085_v5 }
  0x23   : > { %1120 = vmatprep.mubr.msk.bf16.mxu0 %vm430_vm1, %v415_v16  ;;  %v423_v26 = vpack.c.bf16 %v402_v18, %v401_v17  ;;  %v318_v27 = vmul.f32 %v1036_v19, %v1262_v2  ;;  %v1040_v28 = vunpack.c.l.bf16 %v1086_v15  ;;  %v1041_v29 = vunpack.c.h.bf16 %v1086_v15 }
  0x24   : > { %1121 = vmatmul.mubr.msk.bf16.gmra.mrb[4].mxu0 %vm430_vm1, %v416_v21  ;;  %v424_v30 = vpack.c.bf16 %v404_v23, %v403_v22  ;;  %v319_v31 = vmul.f32 %v1037_v24, %v1262_v2  ;;  %v1044_v32 = vunpack.c.l.bf16 %v1087_v20  ;;  %v1045_v33 = vunpack.c.h.bf16 %v1087_v20 }
  0x25   : > { %1136 = vmatprep.mubr.msk.bf16.mxu1 %vm430_vm1, %v423_v26  ;;  %v357_v34 = vadd.f32 %v1271_v11, %v318_v27  ;;  %v320_v35 = vmul.f32 %v1040_v28, %v1262_v2  ;;  %v321_v36 = vmul.f32 %v1041_v29, %v1262_v2  ;;  %v1048_v37 = vunpack.c.l.bf16 %v1088_v25 }
  0x26   : > { %1137 = vmatmul.mubr.msk.bf16.gmra.mrb[4].mxu1 %vm430_vm1, %v424_v30  ;;  %v358_v38 = vadd.f32 %v1271_v11, %v319_v31  ;;  %v322_v39 = vmul.f32 %v1044_v32, %v1262_v2  ;;  %v323_v40 = vmul.f32 %v1045_v33, %v1262_v2  ;;  %v1049_v41 = vunpack.c.h.bf16 %v1088_v25 }
  0x27   : > { %v389_v43 = vmax.f32 %v357_v34, 0.0  ;;  %v359_v44 = vadd.f32 %v1271_v11, %v320_v35  ;;  %v360_v45 = vadd.f32 %v1271_v11, %v321_v36  ;;  %v324_v46 = vmul.f32 %v1048_v37, %v1262_v2 }
  0x28   : > { %v390_v47 = vmax.f32 %v358_v38, 0.0  ;;  %v361_v48 = vadd.f32 %v1271_v11, %v322_v39  ;;  %v362_v49 = vadd.f32 %v1271_v11, %v323_v40  ;;  %v325_v50 = vmul.f32 %v1049_v41, %v1262_v2 }
  0x29   : > { %v391_v51 = vmax.f32 %v359_v44, 0.0  ;;  %v392_v52 = vmax.f32 %v360_v45, 0.0  ;;  %v363_v53 = vadd.f32 %v1271_v11, %v324_v46  ;;  %v1068_v54 = vunpack.c.l.bf16 %v1093_v42 }
  0x2a   : > { %v417_v56 = vpack.c.bf16 %v390_v47, %v389_v43  ;;  %v393_v57 = vmax.f32 %v361_v48, 0.0  ;;  %v394_v58 = vmax.f32 %v362_v49, 0.0  ;;  %v364_v59 = vadd.f32 %v1271_v11, %v325_v50 }
  0x2b   : > { %v418_v61 = vpack.c.bf16 %v392_v52, %v391_v51  ;;  %v395_v62 = vmax.f32 %v363_v53, 0.0  ;;  %v1069_v63 = vunpack.c.h.bf16 %v1093_v42  ;;  %v334_v0 = vmul.f32 %v1068_v54, %v1262_v2 }
  0x2c   : > { %1124 = vmatprep.mubr.msk.bf16.mxu0 %vm430_vm1, %v417_v56  ;;  %v419_v3 = vpack.c.bf16 %v394_v58, %v393_v57  ;;  %v396_v4 = vmax.f32 %v364_v59, 0.0  ;;  %v1072_v5 = vunpack.c.l.bf16 %v1094_v55  ;;  %v1073_v6 = vunpack.c.h.bf16 %v1094_v55 }
  0x2d   : > { %1125 = vmatmul.mubr.msk.bf16.gmra.mrb[8].mxu0 %vm430_vm1, %v418_v61  ;;  %v335_v7 = vmul.f32 %v1069_v63, %v1262_v2  ;;  %v373_v8 = vadd.f32 %v1271_v11, %v334_v0  ;;  %v1076_v9 = vunpack.c.l.bf16 %v1095_v60  ;;  %v1077_v10 = vunpack.c.h.bf16 %v1095_v60 }
  0x2e   : > { %1128 = vmatprep.mubr.msk.bf16.mxu0 %vm430_vm1, %v419_v3  ;;  %v336_v12 = vmul.f32 %v1072_v5, %v1262_v2  ;;  %v337_v13 = vmul.f32 %v1073_v6, %v1262_v2  ;;  %v1080_v14 = vunpack.c.l.bf16 %v1096_v1  ;;  %v1081_v21 = vunpack.c.h.bf16 %v1096_v1 }
  0x2f   : > { %v374_v15 = vadd.f32 %v1271_v11, %v335_v7  ;;  %v405_v16 = vmax.f32 %v373_v8, 0.0  ;;  %v338_v17 = vmul.f32 %v1076_v9, %v1262_v2  ;;  %v339_v18 = vmul.f32 %v1077_v10, %v1262_v2 }
  0x30   : > { %v375_v19 = vadd.f32 %v1271_v11, %v336_v12  ;;  %v376_v20 = vadd.f32 %v1271_v11, %v337_v13  ;;  %v340_v22 = vmul.f32 %v1080_v14, %v1262_v2  ;;  %v420_v23 = vpack.c.bf16 %v396_v4, %v395_v62 }
  0x31   : > { %v406_v24 = vmax.f32 %v374_v15, 0.0  ;;  %v377_v25 = vadd.f32 %v1271_v11, %v338_v17  ;;  %v378_v26 = vadd.f32 %v1271_v11, %v339_v18  ;;  %v341_v29 = vmul.f32 %v1081_v21, %v1262_v2 }
  0x32   : > { %v407_v27 = vmax.f32 %v375_v19, 0.0  ;;  %v408_v28 = vmax.f32 %v376_v20, 0.0  ;;  %v379_v30 = vadd.f32 %v1271_v11, %v340_v22 }
  0x33   : > { %v425_v31 = vpack.c.bf16 %v406_v24, %v405_v16  ;;  %v409_v32 = vmax.f32 %v377_v25, 0.0  ;;  %v410_v33 = vmax.f32 %v378_v26, 0.0  ;;  %v380_v35 = vadd.f32 %v1271_v11, %v341_v29 }
  0x34   : > { %v426_v34 = vpack.c.bf16 %v408_v28, %v407_v27  ;;  %v411_v37 = vmax.f32 %v379_v30, 0.0 }
  0x35   : > { %1129 = vmatmul.mubr.msk.bf16.gmra.mrb[12].mxu0 %vm430_vm1, %v420_v23  ;;  %1140 = vmatprep.mubr.msk.bf16.mxu1 %vm430_vm1, %v425_v31  ;;  %v427_v36 = vpack.c.bf16 %v410_v33, %v409_v32  ;;  %v412_v38 = vmax.f32 %v380_v35, 0.0 }
  0x36   : > { %1141 = vmatmul.mubr.msk.bf16.gmra.mrb[8].mxu1 %vm430_vm1, %v426_v34 }
  0x37   : > { %1144 = vmatprep.mubr.msk.bf16.mxu1 %vm430_vm1, %v427_v36  ;;  %v428_v2 = vpack.c.bf16 %v412_v38, %v411_v37 }
  0x3e   : > { %1145 = vmatmul.mubr.msk.bf16.gmra.mrb[12].mxu1 %vm430_vm1, %v428_v2 }
  0xef   : > { %v1118_v39 = vpop.f32.mrb[0].mxu0 }
  0xf0   : > { %v1365_v40 = vpop.f32.mrb[0].mxu1  ;;  %v517_v41 = vpop.f32.mrb[1].mxu0  ;;  %v648_v47 = vsel %vm644_vm2, %v1118_v39, 0.0  ;;  %v716_v48 = vmul.f32 %v1118_v39, %v1118_v39 }
  0xf1   : > { %v1367_v11 = vpop.f32.mrb[1].mxu1  ;;  %v714_v42 = vmul.f32 %v517_v41, %v517_v41  ;;  %v1369_v43 = vpop.f32.mrb[2].mxu0  ;;  %v645_v49 = vsel %vm644_vm2, %v517_v41, 0.0  ;;  %v1164_v58 = vpack.i.bf16 %v1365_v40, %v1118_v39 }
  0xf2   : > { %v1371_v44 = vpop.f32.mrb[2].mxu1  ;;  %v520_v45 = vpop.f32.mrb[3].mxu0  ;;  %v717_v53 = vmul.f32 %v1369_v43, %v1369_v43  ;;  %v1160_v55 = vpack.i.bf16 %v1367_v11, %v517_v41  ;;  %v749_v63 = vsel %vm644_vm2, %v716_v48, 0.0  ;;  %v650_v0 = vsel %vm644_vm2, %v1369_v43, 0.0 }
  0xf3   : > { %v1373_v46 = vpop.f32.mrb[3].mxu1  ;;  %v646_v50 = vsel %vm644_vm2, %v520_v45, 0.0  ;;  %v715_v51 = vmul.f32 %v520_v45, %v520_v45  ;;  %v746_v52 = vsel %vm644_vm2, %v714_v42, 0.0  ;;  %v1166_v59 = vpack.i.bf16 %v1371_v44, %v1369_v43 }
  0xf4   : > { %v647_v54 = vadd.f32 %v646_v50, %v645_v49  ;;  %v1162_v57 = vpack.i.bf16 %v1373_v46, %v520_v45  ;;  %1161 = vxpose.xlu0.b32.start [1/16] (narrow) %v1160_v55, 16  ;;  %v751_v9 = vsel %vm644_vm2, %v717_v53, 0.0 }
  0xf5   : > { %v747_v56 = vsel %vm644_vm2, %v715_v51, 0.0 }
  0xf6   : > { %v649_v60 = vadd.f32 %v648_v47, %v647_v54  ;;  %v748_v61 = vadd.f32 %v747_v56, %v746_v52 }
  0xf7   : > { %v1387_v62 = vpop.f32.mrb[4].mxu0 }
  0xf8   : > { %v533_v1 = vpop.f32.mrb[5].mxu0  ;;  %v750_v3 = vadd.f32 %v749_v63, %v748_v61  ;;  %v651_v4 = vadd.f32 %v650_v0, %v649_v60  ;;  %v720_v10 = vmul.f32 %v1387_v62, %v1387_v62  ;;  %1163 = vxpose.xlu0.b32.cont [2/16] (narrow) %v1162_v57, 16  ;;  %v656_v19 = vsel %vm644_vm2, %v1387_v62, 0.0 }
  0xf9   : > { %v652_v5 = vsel %vm644_vm2, %v533_v1, 0.0  ;;  %v718_v6 = vmul.f32 %v533_v1, %v533_v1  ;;  %v1393_v7 = vpop.f32.mrb[6].mxu0  ;;  %v1395_v8 = vpop.f32.mrb[4].mxu1 }
  0xfa   : > { %v536_v12 = vpop.f32.mrb[7].mxu0  ;;  %v1400_v13 = vpop.f32.mrb[5].mxu1  ;;  %v653_v14 = vadd.f32 %v652_v5, %v651_v4  ;;  %v752_v15 = vadd.f32 %v751_v9, %v750_v3  ;;  %v721_v20 = vmul.f32 %v1393_v7, %v1393_v7  ;;  %v757_v25 = vsel %vm644_vm2, %v720_v10, 0.0 }
  0xfb   : > { %v753_v16 = vsel %vm644_vm2, %v718_v6, 0.0  ;;  %v654_v17 = vsel %vm644_vm2, %v536_v12, 0.0  ;;  %v1404_v18 = vpop.f32.mrb[6].mxu1  ;;  %v719_v21 = vmul.f32 %v536_v12, %v536_v12  ;;  %v658_v27 = vsel %vm644_vm2, %v1393_v7, 0.0 }
  0xfc   : > { %v1410_v22 = vpop.f32.mrb[7].mxu1  ;;  %v754_v23 = vadd.f32 %v753_v16, %v752_v15  ;;  %v655_v24 = vadd.f32 %v654_v17, %v653_v14  ;;  %1165 = vxpose.xlu0.b32.cont [3/16] (narrow) %v1164_v58, 16  ;;  %v759_v30 = vsel %vm644_vm2, %v721_v20, 0.0  ;;  %v1168_v32 = vpack.i.bf16 %v1400_v13, %v533_v1 }
  0xfd   : > { %v755_v26 = vsel %vm644_vm2, %v719_v21, 0.0  ;;  %v1170_v33 = vpack.i.bf16 %v1410_v22, %v536_v12  ;;  %v1172_v34 = vpack.i.bf16 %v1395_v8, %v1387_v62  ;;  %v1174_v42 = vpack.i.bf16 %v1404_v18, %v1393_v7 }
  0xfe   : > { %v657_v28 = vadd.f32 %v656_v19, %v655_v24  ;;  %v756_v29 = vadd.f32 %v755_v26, %v754_v23 }
 0x100   : > { %v1417_v31 = vpop.f32.mrb[8].mxu0  ;;  %v758_v35 = vadd.f32 %v757_v25, %v756_v29  ;;  %v659_v38 = vadd.f32 %v658_v27, %v657_v28  ;;  %1167 = vxpose.xlu0.b32.cont [4/16] (narrow) %v1166_v59, 16  ;;  %v730_v29 = vmul.f32 %v1367_v11, %v1367_v11 }
 0x101   : > { %v724_v36 = vmul.f32 %v1417_v31, %v1417_v31  ;;  %v1425_v37 = vpop.f32.mrb[9].mxu0  ;;  %v664_v52 = vsel %vm644_vm2, %v1417_v31, 0.0 }
 0x102   : > { %v660_v2 = vsel %vm644_vm2, %v1425_v37, 0.0  ;;  %v722_v39 = vmul.f32 %v1425_v37, %v1425_v37  ;;  %v1431_v41 = vpop.f32.mrb[10].mxu0  ;;  %v760_v43 = vadd.f32 %v759_v30, %v758_v35 }
 0x103   : > { %v725_v45 = vmul.f32 %v1431_v41, %v1431_v41  ;;  %v1437_v47 = vpop.f32.mrb[11].mxu0  ;;  %v661_v48 = vadd.f32 %v660_v2, %v659_v38  ;;  %v765_v54 = vsel %vm644_vm2, %v724_v36, 0.0  ;;  %v666_v57 = vsel %vm644_vm2, %v1431_v41, 0.0 }
 0x104   : > { %v761_v49 = vsel %vm644_vm2, %v722_v39, 0.0  ;;  %v662_v50 = vsel %vm644_vm2, %v1437_v47, 0.0  ;;  %v723_v51 = vmul.f32 %v1437_v47, %v1437_v47  ;;  %1169 = vxpose.xlu0.b32.cont [5/16] (narrow) %v1168_v32, 16 }
 0x105   : > { %v762_v53 = vadd.f32 %v761_v49, %v760_v43  ;;  %v663_v55 = vadd.f32 %v662_v50, %v661_v48  ;;  %v767_v59 = vsel %vm644_vm2, %v725_v45, 0.0  ;;  %v676_v45 = vsel %vm644_vm2, %v1367_v11, 0.0 }
 0x106   : > { %v763_v56 = vsel %vm644_vm2, %v723_v51, 0.0  ;;  %v777_v49 = vsel %vm644_vm2, %v730_v29, 0.0  ;;  %v678_v11 = vsel %vm644_vm2, %v1373_v46, 0.0 }
 0x107   : > { %v764_v58 = vadd.f32 %v763_v56, %v762_v53  ;;  %v665_v60 = vadd.f32 %v664_v52, %v663_v55  ;;  %v733_v52 = vmul.f32 %v1371_v44, %v1371_v44  ;;  %v680_v56 = vsel %vm644_vm2, %v1365_v40, 0.0 }
 0x108   : > { %v1451_v61 = vpop.f32.mrb[12].mxu0  ;;  %1171 = vxpose.xlu0.b32.cont [6/16] (narrow) %v1170_v33, 16 }
 0x109   : > { %v766_v62 = vadd.f32 %v765_v54, %v764_v58  ;;  %v1453_v63 = vpop.f32.mrb[13].mxu0  ;;  %v1455_v0 = vpop.f32.mrb[8].mxu1  ;;  %v728_v1 = vmul.f32 %v1451_v61, %v1451_v61  ;;  %v667_v3 = vadd.f32 %v666_v57, %v665_v60  ;;  %v672_v21 = vsel %vm644_vm2, %v1451_v61, 0.0 }
 0x10a   : > { %v668_v4 = vsel %vm644_vm2, %v1453_v63, 0.0  ;;  %v726_v5 = vmul.f32 %v1453_v63, %v1453_v63  ;;  %v1463_v6 = vpop.f32.mrb[14].mxu0  ;;  %v1465_v7 = vpop.f32.mrb[9].mxu1  ;;  %v1180_v38 = vpack.i.bf16 %v1455_v0, %v1417_v31  ;;  %v732_v31 = vmul.f32 %v1365_v40, %v1365_v40 }
 0x10b   : > { %v768_v9 = vadd.f32 %v767_v59, %v766_v62  ;;  %v729_v10 = vmul.f32 %v1463_v6, %v1463_v6  ;;  %v1469_v12 = vpop.f32.mrb[15].mxu0  ;;  %v1471_v14 = vpop.f32.mrb[10].mxu1  ;;  %v669_v15 = vadd.f32 %v668_v4, %v667_v3  ;;  %v773_v24 = vsel %vm644_vm2, %v728_v1, 0.0 }
 0x10c   : > { %v769_v16 = vsel %vm644_vm2, %v726_v5, 0.0  ;;  %v670_v17 = vsel %vm644_vm2, %v1469_v12, 0.0  ;;  %v727_v19 = vmul.f32 %v1469_v12, %v1469_v12  ;;  %v1478_v20 = vpop.f32.mrb[11].mxu1  ;;  %v674_v27 = vsel %vm644_vm2, %v1463_v6, 0.0  ;;  %1173 = vxpose.xlu0.b32.cont [7/16] (narrow) %v1172_v34, 16 }
 0x10d   : > { %v770_v23 = vadd.f32 %v769_v16, %v768_v9  ;;  %v671_v25 = vadd.f32 %v670_v17, %v669_v15  ;;  %v775_v30 = vsel %vm644_vm2, %v729_v10, 0.0  ;;  %v1176_v33 = vpack.i.bf16 %v1465_v7, %v1425_v37 }
 0x10e   : > { %v771_v26 = vsel %vm644_vm2, %v727_v19, 0.0  ;;  %v1178_v36 = vpack.i.bf16 %v1478_v20, %v1437_v47  ;;  %v731_v34 = vmul.f32 %v1373_v46, %v1373_v46  ;;  %v1182_v47 = vpack.i.bf16 %v1471_v14, %v1431_v41 }
 0x10f   : > { %v772_v28 = vadd.f32 %v771_v26, %v770_v23  ;;  %v673_v32 = vadd.f32 %v672_v21, %v671_v25  ;;  %v781_v59 = vsel %vm644_vm2, %v732_v31, 0.0  ;;  %v734_v60 = vmul.f32 %v1400_v13, %v1400_v13 }
 0x110   : > { %1175 = vxpose.xlu0.b32.cont [8/16] (narrow) %v1174_v42, 16  ;;  %v779_v53 = vsel %vm644_vm2, %v731_v34, 0.0  ;;  %v783_v40 = vsel %vm644_vm2, %v733_v52, 0.0  ;;  %v735_v3 = vmul.f32 %v1410_v22, %v1410_v22  ;;  %v684_v5 = vsel %vm644_vm2, %v1400_v13, 0.0 }
 0x111   : > { %v774_v35 = vadd.f32 %v773_v24, %v772_v28  ;;  %v1495_v2 = vpop.f32.mrb[12].mxu1  ;;  %v675_v39 = vadd.f32 %v674_v27, %v673_v32  ;;  %v736_v10 = vmul.f32 %v1395_v8, %v1395_v8  ;;  %v737_v17 = vmul.f32 %v1404_v18, %v1404_v18 }
 0x112   : > { %v1499_v43 = vpop.f32.mrb[13].mxu1  ;;  %v1188_v58 = vpack.i.bf16 %v1495_v2, %v1451_v61  ;;  %v787_v19 = vsel %vm644_vm2, %v735_v3, 0.0  ;;  %v688_v13 = vsel %vm644_vm2, %v1395_v8, 0.0  ;;  %v738_v26 = vmul.f32 %v1465_v7, %v1465_v7 }
 0x113   : > { %v776_v48 = vadd.f32 %v775_v30, %v774_v35  ;;  %v1503_v37 = vpop.f32.mrb[14].mxu1  ;;  %v677_v50 = vadd.f32 %v676_v45, %v675_v39  ;;  %v1184_v41 = vpack.i.bf16 %v1499_v43, %v1453_v63  ;;  %v682_v63 = vsel %vm644_vm2, %v1371_v44, 0.0 }
 0x114   : > { %v1510_v51 = vpop.f32.mrb[15].mxu1  ;;  %1177 = vxpose.xlu0.b32.cont [9/16] (narrow) %v1176_v33, 16  ;;  %v1190_v46 = vpack.i.bf16 %v1503_v37, %v1463_v6  ;;  %v686_v44 = vsel %vm644_vm2, %v1410_v22, 0.0  ;;  %v789_v24 = vsel %vm644_vm2, %v736_v10, 0.0  ;;  %v690_v22 = vsel %vm644_vm2, %v1404_v18, 0.0 }
 0x115   : > { %v778_v42 = vadd.f32 %v777_v49, %v776_v48  ;;  %v679_v54 = vadd.f32 %v678_v11, %v677_v50  ;;  %v1186_v55 = vpack.i.bf16 %v1510_v51, %v1469_v12  ;;  %v785_v12 = vsel %vm644_vm2, %v734_v60, 0.0 }
 0x116   : > { %v791_v28 = vsel %vm644_vm2, %v737_v17, 0.0  ;;  %v739_v30 = vmul.f32 %v1478_v20, %v1478_v20  ;;  %v692_v8 = vsel %vm644_vm2, %v1465_v7, 0.0  ;;  %v740_v33 = vmul.f32 %v1455_v0, %v1455_v0 }
 0x117   : > { %v780_v57 = vadd.f32 %v779_v53, %v778_v42  ;;  %v681_v62 = vadd.f32 %v680_v56, %v679_v54  ;;  %v694_v18 = vsel %vm644_vm2, %v1478_v20, 0.0  ;;  %v741_v34 = vmul.f32 %v1471_v14, %v1471_v14 }
 0x118   : > { %1179 = vxpose.xlu0.b32.cont [10/16] (narrow) %v1178_v36, 16  ;;  %v793_v36 = vsel %vm644_vm2, %v738_v26, 0.0  ;;  %v795_v45 = vsel %vm644_vm2, %v739_v30, 0.0  ;;  %v696_v7 = vsel %vm644_vm2, %v1455_v0, 0.0  ;;  %v742_v49 = vmul.f32 %v1499_v43, %v1499_v43 }
 0x119   : > { %v782_v1 = vadd.f32 %v781_v59, %v780_v57  ;;  %v683_v4 = vadd.f32 %v682_v63, %v681_v62  ;;  %v698_v20 = vsel %vm644_vm2, %v1471_v14, 0.0  ;;  %v799_v52 = vsel %vm644_vm2, %v741_v34, 0.0 }
 0x11a   : > { %v743_v42 = vmul.f32 %v1510_v51, %v1510_v51  ;;  %v700_v0 = vsel %vm644_vm2, %v1499_v43, 0.0  ;;  %v744_v54 = vmul.f32 %v1495_v2, %v1495_v2  ;;  %v801_v56 = vsel %vm644_vm2, %v742_v49, 0.0 }
 0x11b   : > { %v784_v9 = vadd.f32 %v783_v40, %v782_v1  ;;  %v685_v15 = vadd.f32 %v684_v5, %v683_v4  ;;  %v702_v14 = vsel %vm644_vm2, %v1510_v51, 0.0  ;;  %v745_v59 = vmul.f32 %v1503_v37, %v1503_v37 }
 0x11c   : > { %1181 = vxpose.xlu0.b32.cont [11/16] (narrow) %v1180_v38, 16  ;;  %v803_v62 = vsel %vm644_vm2, %v743_v42, 0.0  ;;  %v704_v43 = vsel %vm644_vm2, %v1495_v2, 0.0  ;;  %v805_v63 = vsel %vm644_vm2, %v744_v54, 0.0  ;;  %v706_v51 = vsel %vm644_vm2, %v1503_v37, 0.0 }
 0x11d   : > { %v786_v16 = vadd.f32 %v785_v12, %v784_v9  ;;  %v687_v21 = vadd.f32 %v686_v44, %v685_v15  ;;  %v807_v3 = vsel %vm644_vm2, %v745_v59, 0.0 }
 0x11f   : > { %v788_v23 = vadd.f32 %v787_v19, %v786_v16  ;;  %v689_v25 = vadd.f32 %v688_v13, %v687_v21 }
 0x120   : > { %1183 = vxpose.xlu0.b32.cont [12/16] (narrow) %v1182_v47, 16  ;;  %v797_v47 = vsel %vm644_vm2, %v740_v33, 0.0 }
 0x121   : > { %v790_v27 = vadd.f32 %v789_v24, %v788_v23  ;;  %v691_v29 = vadd.f32 %v690_v22, %v689_v25 }
 0x123   : > { %v792_v32 = vadd.f32 %v791_v28, %v790_v27  ;;  %v693_v35 = vadd.f32 %v692_v8, %v691_v29 }
 0x124   : > { %1185 = vxpose.xlu0.b32.cont [13/16] (narrow) %v1184_v41, 16 }
 0x125   : > { %v794_v38 = vadd.f32 %v793_v36, %v792_v32  ;;  %v695_v39 = vadd.f32 %v694_v18, %v693_v35 }
 0x127   : > { %v796_v48 = vadd.f32 %v795_v45, %v794_v38  ;;  %v697_v31 = vadd.f32 %v696_v7, %v695_v39 }
 0x128   : > { %1187 = vxpose.xlu0.b32.cont [14/16] (narrow) %v1186_v55, 16 }
 0x129   : > { %v798_v50 = vadd.f32 %v797_v47, %v796_v48  ;;  %v699_v11 = vadd.f32 %v698_v20, %v697_v31 }
 0x12b   : > { %v800_v53 = vadd.f32 %v799_v52, %v798_v50  ;;  %v701_v41 = vadd.f32 %v700_v0, %v699_v11 }
 0x12c   : > { %1189 = vxpose.xlu0.b32.cont [15/16] (narrow) %v1188_v58, 16 }
 0x12d   : > { %v802_v57 = vadd.f32 %v801_v56, %v800_v53  ;;  %v703_v60 = vadd.f32 %v702_v14, %v701_v41 }
 0x12f   : > { %v804_v55 = vadd.f32 %v803_v62, %v802_v57  ;;  %v705_v1 = vadd.f32 %v704_v43, %v703_v60 }
 0x130   : > { %1191 = vxpose.xlu0.b32.end [16/16] (narrow) %v1190_v46, 16 }
 0x131   : > { %v806_v40 = vadd.f32 %v805_v63, %v804_v55  ;;  %v707_v4 = vadd.f32 %v706_v51, %v705_v1 }
 0x133   : > { %v808_v5 = vadd.f32 %v807_v3, %v806_v40  ;;  %v708_v9 = vrot.slane %v707_v4, 4 }
 0x135   : > { %v809_v61 = vrot.slane %v808_v5, 4  ;;  %v709_v2 = vadd.f32 %v708_v9, %v707_v4 }
 0x137   : > { %v810_v58 = vadd.f32 %v809_v61, %v808_v5  ;;  %v710_v10 = vrot.slane %v709_v2, 2 }
 0x139   : > { %v811_v12 = vrot.slane %v810_v58, 2  ;;  %v711_v15 = vadd.f32 %v710_v10, %v709_v2 }
 0x13b   : > { %v812_v44 = vadd.f32 %v811_v12, %v810_v58  ;;  %v712_v16 = vrot.slane %v711_v15, 1 }
 0x13d   : > { %v813_v17 = vrot.slane %v812_v44, 1  ;;  %v713_v19 = vadd.f32 %v712_v16, %v711_v15 }
 0x13f   : > { %v814_v21 = vadd.f32 %v813_v17, %v812_v44 }
 0x141   : > { %v816_v6 = vsel %vm815_vm3, %v713_v19, %v814_v21 }
 0x142   : > { %818 = vst.msk [vmem:[%s237_s9] sm:$0x3] %vm817_vm4, %v816_v6 }
 0x174   : > { %v1192_v37 = vpop.trf.xlu0 }
 0x175   : > { %v1196_v46 = vunpack.i.h.bf16 %v1192_v37  ;;  %v1193_v13 = vunpack.i.l.bf16 %v1192_v37 }
 0x177   : > { %v1016_v23 = vpack.c.bf16 %v1196_v46, %v1193_v13 }
 0x178   : > { %v1197_v24 = vpop.trf.xlu0 }
 0x179   : > { %v1201_v25 = vunpack.i.h.bf16 %v1197_v24  ;;  %v1198_v26 = vunpack.i.l.bf16 %v1197_v24  ;;  %895 = vst [vmem:[%s233_s13] sm:$0xff] %v1016_v23 }
 0x17b   : > { %v1017_v22 = vpack.c.bf16 %v1201_v25, %v1198_v26 }
 0x17d   : > { %896 = vst [vmem:[%s233_s13 + $0x8] sm:$0xff] %v1017_v22 }
 0x17e PF: > { %s16_s18 = sadd.s32 1, %s1208_s18  }
 0x17f   : > { %p13_p5 = scmp.ge.s32.totalorder %s16_s18, 4  }
 0x181   :  { %15 = sbr.rel (!%p13_p5) target bundleno = 1 (0x1), region = 78 }

// kernel: bottleneck_forward.7
= control target key start
LH: loop header
LB: loop body
LE: loop exit
PB: predicated region body
PF: predicated region fallthrough
CT: control target
= control target key end

     0   :  { %s400_s15 = smov 0   ;;  %s432_s0 = inlined_call_operand.vmem [shape: bf16[2,16,256], index: 0, kind: input, shape index: {}]   ;;  %s433_s1 = inlined_call_operand.vmem [shape: f32[2,16,256], index: 1, kind: input, shape index: {}, may-alias: {1,4}]   ;;  %s434_s2 = inlined_call_operand.vmem [shape: f32[16,1], index: 2, kind: input, shape index: {}]   ;;  %s435_s3 = inlined_call_operand.vmem [shape: f32[16,1], index: 3, kind: input, shape index: {}]   ;;  %s436_s4 = inlined_call_operand.vmem [shape: f32[2,16,256], index: 4, kind: output, shape index: {}, may-alias: {1,4}]  }
   0x1 LB: > { %s339_s16 = sadd.s32 4294967295, %s372_s15   ;;  %p343_p0 = scmp.ge.s32.totalorder %s372_s15, 1  ;;  %s372_s15 = sphi %s400_s15, %s14_s15  }
   0x2   : > { %p172_p1 = scmp.lt.s32.totalorder %s372_s15, 3 }
   0x4   : > { %p173_p2 = pnand %p343_p0, %p172_p1 }
   0x5   : > { %v240_v0 = vld [vmem:[%s435_s3] sm:$0xff] (!%p173_p2)  ;;  %v374_v2 = vmov (!%p173_p2), 0   ;;  %v241_v3 = vld [vmem:[%s435_s3 + $0x8] sm:$0xff] (!%p173_p2)  ;;  %p203_p3 = scmp.lt.s32.totalorder (!%p173_p2), %s339_s16, 1 }
   0x6   : > { %176 = sbr.rel (%p173_p2) target bundleno = 148 (0x94), region = 36  ;;  %v224_v1 = vld [vmem:[%s434_s2] sm:$0xff] (!%p173_p2)  ;;  %365 = vset.pattern.permute.xlu1 (!%p173_p2), %v374_v2  ;;  %364 = vset.pattern.permute.xlu0 (!%p173_p2), %v374_v2  ;;  %v225_v4 = vld [vmem:[%s434_s2 + $0x8] sm:$0xff] (!%p173_p2) }
   0x7   : > { %244 = vperm.xlu1 (!%p173_p2), %365, %v240_v0   ;;  %228 = vperm.xlu0 (!%p173_p2), %364, %v224_v1  }
   0xb   : > { %249 = vperm.xlu1 (!%p173_p2), %365, %v241_v3   ;;  %233 = vperm.xlu0 (!%p173_p2), %364, %v225_v4  }
   0xd   : > { %s438_s16 = smov (!%p203_p3, %s339_s16), 1 }
   0xe   : > { %s352_s25 = sshll.u32 %s438_s16, 4  ;;  %s353_s29 = sshll.u32 %s438_s16, 5 }
   0xf   : > { %s207_s28 = scalar_lea.vmem %s432_s0, %s352_s25  ;;  %s212_s6 = scalar_lea.vmem %s433_s1, %s353_s29 }
  0x10   : > { %v218_v5 = vld [vmem:[%s207_s28] sm:$0xff]  ;;  %v219_v8 = vld [vmem:[%s207_s28 + $0x8] sm:$0xff]  ;;  %s217_s9 = scalar_lea.vmem %s436_s4, %s353_s29  ;;  %v258_v25 = vld [vmem:[%s212_s6 + $0x10] sm:$0xff] }
  0x11   : > { %v220_v6 = vunpack.c.l.bf16 %v218_v5  ;;  %v221_v7 = vunpack.c.h.bf16 %v218_v5  ;;  %v222_v13 = vunpack.c.l.bf16 %v219_v8  ;;  %v223_v14 = vunpack.c.h.bf16 %v219_v8  ;;  %v256_v15 = vld [vmem:[%s212_s6] sm:$0xff]  ;;  %v257_v16 = vld [vmem:[%s212_s6 + $0x8] sm:$0xff]  ;;  %v259_v26 = vld [vmem:[%s212_s6 + $0x18] sm:$0xff] }
  0x86   : > { %v245_v9 = vpop.permute.xlu1 %244  ;;  %v229_v10 = vpop.permute.xlu0 %228 }
  0x87   : > { %v236_v11 = vmul.f32 %v229_v10, %v220_v6  ;;  %v237_v12 = vmul.f32 %v229_v10, %v221_v7 }
  0x89   : > { %v252_v17 = vadd.f32 %v245_v9, %v236_v11  ;;  %v253_v18 = vadd.f32 %v245_v9, %v237_v12 }
  0x8a   : > { %v234_v19 = vpop.permute.xlu0 %233  ;;  %v250_v24 = vpop.permute.xlu1 %249 }
  0x8b   : > { %v260_v20 = vadd.f32 %v256_v15, %v252_v17  ;;  %v261_v21 = vadd.f32 %v257_v16, %v253_v18  ;;  %v238_v22 = vmul.f32 %v234_v19, %v222_v13  ;;  %v239_v23 = vmul.f32 %v234_v19, %v223_v14 }
  0x8d   : > { %v264_v27 = vmax.f32 %v260_v20, 0.0  ;;  %v265_v28 = vmax.f32 %v261_v21, 0.0  ;;  %v254_v29 = vadd.f32 %v250_v24, %v238_v22  ;;  %v255_v30 = vadd.f32 %v250_v24, %v239_v23 }
  0x8f   : > { %v262_v31 = vadd.f32 %v258_v25, %v254_v29  ;;  %v263_v32 = vadd.f32 %v259_v26, %v255_v30  ;;  %268 = vst [vmem:[%s217_s9] sm:$0xff] %v264_v27  ;;  %269 = vst [vmem:[%s217_s9 + $0x8] sm:$0xff] %v265_v28 }
  0x91   : > { %v266_v33 = vmax.f32 %v262_v31, 0.0  ;;  %v267_v34 = vmax.f32 %v263_v32, 0.0 }
  0x93   : > { %270 = vst [vmem:[%s217_s9 + $0x10] sm:$0xff] %v266_v33  ;;  %271 = vst [vmem:[%s217_s9 + $0x18] sm:$0xff] %v267_v34 }
  0x94 PF: > { %s14_s15 = sadd.s32 1, %s372_s15  }
  0x95   : > { %p11_p4 = scmp.ge.s32.totalorder %s14_s15, 4  }
  0x97   :  { %13 = sbr.rel (!%p11_p4) target bundleno = 1 (0x1), region = 69 }

// kernel: bottleneck_forward.5
= control target key start
LH: loop header
LB: loop body
LE: loop exit
PB: predicated region body
PF: predicated region fallthrough
CT: control target
= control target key end

     0   :  { %s2565_s18 = smov 0   ;;  %s3273_s0 = inlined_call_operand.vmem [shape: bf16[512,4], index: 0, kind: input, shape index: {}]   ;;  %s3274_s1 = inlined_call_operand.vmem [shape: f32[1,4], index: 1, kind: input, shape index: {}]   ;;  %s3275_s2 = inlined_call_operand.vmem [shape: f32[1,4], index: 2, kind: input, shape index: {}]   ;;  %s3276_s3 = inlined_call_operand.vmem [shape: bf16[36,4], index: 3, kind: input, shape index: {}]   ;;  %s3277_s4 = inlined_call_operand.vmem [shape: bf16[512,4], index: 4, kind: output, shape index: {0}]   ;;  %s3278_s5 = inlined_call_operand.vmem [shape: f32[2,2,4], index: 5, kind: output, shape index: {1}]  }
   0x1 LB: > { %s2571_s19 = sadd.s32 4294967295, %s2524_s18   ;;  %p2261_p0 = scmp.ge.s32.totalorder %s2524_s18, 1  ;;  %s2524_s18 = sphi %s2565_s18, %s16_s18  }
   0x2   : > { %p191_p1 = scmp.lt.s32.totalorder %s2524_s18, 3 }
   0x4   : > { %p192_p2 = pnand %p2261_p0, %p191_p1 }
   0x5   : > { %vm415_vm0 = vcmask (!%p192_p2), 31744   ;;  %vm450_vm1 = vcmask (!%p192_p2), 25600   ;;  %vm456_vm2 = vcmask (!%p192_p2), 24576   ;;  %v2526_v0 = vmov (!%p192_p2), 0.0   ;;  %s2262_s20 = sshll.u32 (!%p192_p2), %s2571_s19, 5  ;;  %s2527_s27 = smov (!%p192_p2), 4  }
   0x6   : > { %195 = sbr.rel (%p192_p2) target bundleno = 646 (0x286), region = 36  ;;  %448 = vst.msk [vmem:[#allocation2] sm:$0xff] (!%p192_p2), %vm415_vm0, %v2526_v0  ;;  %449 = vst.msk [vmem:[#allocation2 + $0x8] sm:$0xff] (!%p192_p2), %vm415_vm0, %v2526_v0  ;;  %p224_p3 = scmp.lt.s32.totalorder (!%p192_p2), %s2262_s20, 63  ;;  %v2631_v1 = vld [vmem:[%s3274_s1] ss:$0 sm:$0xff] (!%p192_p2) }
   0x7   : > { %451 = vst.msk [vmem:[#allocation2 + $0x10] sm:$0x3] (!%p192_p2), %vm450_vm1, %v2526_v0  ;;  %455 = vst.msk [vmem:[#allocation2 + $0x1a8] sm:$0x3] (!%p192_p2), %vm450_vm1, %v2526_v0  ;;  %v2641_v15 = vld [vmem:[%s3275_s2] ss:$0 sm:$0xff] (!%p192_p2) }
   0x8   : > { %453 = vst.msk [vmem:[#allocation2 + $0x198] sm:$0xff] (!%p192_p2), %vm415_vm0, %v2526_v0  ;;  %454 = vst.msk [vmem:[#allocation2 + $0x1a0] sm:$0xff] (!%p192_p2), %vm415_vm0, %v2526_v0  ;;  %s2528_s30 = smov (!%p192_p2), 8   ;;  %s2529_s6 = smov (!%p192_p2), 12   ;;  %vm1671_vm3 = vcmask (!%p192_p2), 1041408   ;;  %vm665_vm4 = vcmask (!%p192_p2), 64544  }
   0x9   : > { %473 = vst.msk [vmem:[#allocation2 + $0x29] sm:$0x1] (!%p192_p2), %vm456_vm2, %v2526_v0  ;;  %457 = vst.msk [vmem:[#allocation2 + $0x18] sm:$0x1] (!%p192_p2), %vm456_vm2, %v2526_v0  ;;  %s2530_s7 = smov (!%p192_p2), 16   ;;  %s2531_s8 = smov (!%p192_p2), 20  }
   0xa   : > { %458 = vst.msk [vmem:[#allocation2 + $0x30] sm:$0x1] (!%p192_p2), %vm456_vm2, %v2526_v0  ;;  %459 = vst.msk [vmem:[#allocation2 + $0x48] sm:$0x1] (!%p192_p2), %vm456_vm2, %v2526_v0  ;;  %s2532_s13 = smov (!%p192_p2), 24   ;;  %s2533_s16 = smov (!%p192_p2), 28  }
   0xb   : > { %460 = vst.msk [vmem:[#allocation2 + $0x60] sm:$0x1] (!%p192_p2), %vm456_vm2, %v2526_v0  ;;  %461 = vst.msk [vmem:[#allocation2 + $0x78] sm:$0x1] (!%p192_p2), %vm456_vm2, %v2526_v0  ;;  %s2534_s17 = smov (!%p192_p2), 32   ;;  %vm794_vm5 = vcmask (!%p192_p2), 97344  }
   0xc   : > { %462 = vst.msk [vmem:[#allocation2 + $0x90] sm:$0x1] (!%p192_p2), %vm456_vm2, %v2526_v0  ;;  %463 = vst.msk [vmem:[#allocation2 + $0xa8] sm:$0x1] (!%p192_p2), %vm456_vm2, %v2526_v0  ;;  %vm923_vm6 = vcmask (!%p192_p2), 130144   ;;  %vm1052_vm7 = vcmask (!%p192_p2), 162944  }
   0xd   : > { %464 = vst.msk [vmem:[#allocation2 + $0xc0] sm:$0x1] %vm456_vm2, %v2526_v0  ;;  %465 = vst.msk [vmem:[#allocation2 + $0xd8] sm:$0x1] %vm456_vm2, %v2526_v0  ;;  %s3280_s20 = smov (!%p224_p3, %s2262_s20), 63  ;;  %v553_v2 = vld [vmem:[#allocation2 + $0x1] sm:$0xff] }
   0xe   : > { %466 = vst.msk [vmem:[#allocation2 + $0xf0] sm:$0x1] %vm456_vm2, %v2526_v0  ;;  %467 = vst.msk [vmem:[#allocation2 + $0x108] sm:$0x1] %vm456_vm2, %v2526_v0  ;;  %s2263_s21 = sshll.u32 %s3280_s20, 2  ;;  %v554_v3 = vld [vmem:[#allocation2 + $0x9] sm:$0xff] }
   0xf   : > { %468 = vst.msk [vmem:[#allocation2 + $0x120] sm:$0x1] %vm456_vm2, %v2526_v0  ;;  %469 = vst.msk [vmem:[#allocation2 + $0x138] sm:$0x1] %vm456_vm2, %v2526_v0  ;;  %s2626_s24 = scalar_lea.vmem %s3273_s0, %s2263_s21  ;;  %v682_v4 = vld [vmem:[#allocation2 + $0x2] sm:$0xff]  ;;  %v585_v5 = vpack.c.bf16 %v554_v3, %v553_v2  ;;  %v683_v6 = vld [vmem:[#allocation2 + $0xa] sm:$0xff] }
  0x10   : > { %470 = vst.msk [vmem:[#allocation2 + $0x150] sm:$0x1] %vm456_vm2, %v2526_v0  ;;  %471 = vst.msk [vmem:[#allocation2 + $0x168] sm:$0x1] %vm456_vm2, %v2526_v0  ;;  %v2355_v7 = vld [vmem:[%s2626_s24] sm:$0xff]   ;;  %v2418_v8 = vld [vmem:[%s2626_s24 + $0x8] sm:$0xff]   ;;  %v714_v9 = vpack.c.bf16 %v683_v6, %v682_v4 }
  0x11   : > { %472 = vst.msk [vmem:[#allocation2 + $0x180] sm:$0x1] %vm456_vm2, %v2526_v0  ;;  %474 = vst.msk [vmem:[#allocation2 + $0x41] sm:$0x1] %vm456_vm2, %v2526_v0  ;;  %v2356_v10 = vunpack.c.l.bf16 %v2355_v7  ;;  %v2357_v11 = vunpack.c.h.bf16 %v2355_v7  ;;  %v2360_v12 = vunpack.c.l.bf16 %v2418_v8  ;;  %v2419_v13 = vld [vmem:[%s2626_s24 + $0x10] sm:$0xff]   ;;  %v2420_v14 = vld [vmem:[%s2626_s24 + $0x18] sm:$0xff]   ;;  %617 = vrot.lane.b32.xlu0 %v585_v5, %s2527_s27  ;;  %v2361_v16 = vunpack.c.h.bf16 %v2418_v8 }
  0x12   : > { %475 = vst.msk [vmem:[#allocation2 + $0x59] sm:$0x1] %vm456_vm2, %v2526_v0  ;;  %476 = vst.msk [vmem:[#allocation2 + $0x71] sm:$0x1] %vm456_vm2, %v2526_v0  ;;  %v2364_v17 = vunpack.c.l.bf16 %v2419_v13  ;;  %v2365_v18 = vunpack.c.h.bf16 %v2419_v13  ;;  %v2368_v19 = vunpack.c.l.bf16 %v2420_v14  ;;  %746 = vrot.lane.b32.xlu1 %v714_v9, %s2528_s30  ;;  %v2369_v23 = vunpack.c.h.bf16 %v2420_v14  ;;  %v2421_v36 = vld [vmem:[%s2626_s24 + $0x20] sm:$0xff]   ;;  %v2422_v37 = vld [vmem:[%s2626_s24 + $0x28] sm:$0xff]  }
  0x13   : > { %477 = vst.msk [vmem:[#allocation2 + $0x89] sm:$0x1] %vm456_vm2, %v2526_v0  ;;  %478 = vst.msk [vmem:[#allocation2 + $0xa1] sm:$0x1] %vm456_vm2, %v2526_v0  ;;  %v311_v20 = vmul.f32 %v2356_v10, %v2631_v1  ;;  %v312_v21 = vmul.f32 %v2357_v11, %v2631_v1  ;;  %v313_v22 = vmul.f32 %v2360_v12, %v2631_v1  ;;  %v2423_v42 = vld [vmem:[%s2626_s24 + $0x30] sm:$0xff]   ;;  %v2424_v43 = vld [vmem:[%s2626_s24 + $0x38] sm:$0xff]   ;;  %v2372_v49 = vunpack.c.l.bf16 %v2421_v36 }
  0x14   : > { %479 = vst.msk [vmem:[#allocation2 + $0xb9] sm:$0x1] %vm456_vm2, %v2526_v0  ;;  %480 = vst.msk [vmem:[#allocation2 + $0xd1] sm:$0x1] %vm456_vm2, %v2526_v0  ;;  %v314_v24 = vmul.f32 %v2361_v16, %v2631_v1  ;;  %v315_v25 = vmul.f32 %v2364_v17, %v2631_v1  ;;  %v316_v26 = vmul.f32 %v2365_v18, %v2631_v1  ;;  %v2373_v50 = vunpack.c.h.bf16 %v2421_v36  ;;  %v490_v5 = vld [vmem:[#allocation2 + $0x8] sm:$0xff]  ;;  %v489_v6 = vld [vmem:[#allocation2] sm:$0xff] }
  0x15   : > { %481 = vst.msk [vmem:[#allocation2 + $0xe9] sm:$0x1] %vm456_vm2, %v2526_v0  ;;  %482 = vst.msk [vmem:[#allocation2 + $0x101] sm:$0x1] %vm456_vm2, %v2526_v0  ;;  %v317_v27 = vmul.f32 %v2368_v19, %v2631_v1  ;;  %v350_v28 = vadd.f32 %v2641_v15, %v311_v20  ;;  %v351_v29 = vadd.f32 %v2641_v15, %v312_v21  ;;  %v2376_v51 = vunpack.c.l.bf16 %v2422_v37  ;;  %v2425_v11 = vld [vmem:[%s2626_s24 + $0x40] sm:$0xff]   ;;  %v2426_v36 = vld [vmem:[%s2626_s24 + $0x48] sm:$0xff]  }
  0x16   : > { %483 = vst.msk [vmem:[#allocation2 + $0x119] sm:$0x1] %vm456_vm2, %v2526_v0  ;;  %484 = vst.msk [vmem:[#allocation2 + $0x131] sm:$0x1] %vm456_vm2, %v2526_v0  ;;  %v352_v30 = vadd.f32 %v2641_v15, %v313_v22  ;;  %v318_v31 = vmul.f32 %v2369_v23, %v2631_v1  ;;  %v353_v32 = vadd.f32 %v2641_v15, %v314_v24  ;;  %v2377_v52 = vunpack.c.h.bf16 %v2422_v37  ;;  %p235_p4 = scmp.lt.s32.totalorder %s2571_s19, 1 }
  0x17   : > { %485 = vst.msk [vmem:[#allocation2 + $0x149] sm:$0x1] %vm456_vm2, %v2526_v0  ;;  %486 = vst.msk [vmem:[#allocation2 + $0x161] sm:$0x1] %vm456_vm2, %v2526_v0  ;;  %v354_v33 = vadd.f32 %v2641_v15, %v315_v25  ;;  %v355_v34 = vadd.f32 %v2641_v15, %v316_v26  ;;  %v356_v35 = vadd.f32 %v2641_v15, %v317_v27  ;;  %v382_v38 = vmax.f32 %v350_v28, 0.0 }
  0x18   : > { %487 = vst.msk [vmem:[#allocation2 + $0x179] sm:$0x1] %vm456_vm2, %v2526_v0  ;;  %488 = vst.msk [vmem:[#allocation2 + $0x191] sm:$0x1] %vm456_vm2, %v2526_v0  ;;  %v383_v39 = vmax.f32 %v351_v29, 0.0  ;;  %v384_v40 = vmax.f32 %v352_v30, 0.0  ;;  %v357_v41 = vadd.f32 %v2641_v15, %v318_v31  ;;  %v2380_v53 = vunpack.c.l.bf16 %v2423_v42 }
  0x19   : > { %v385_v44 = vmax.f32 %v353_v32, 0.0  ;;  %v386_v45 = vmax.f32 %v354_v33, 0.0  ;;  %v387_v46 = vmax.f32 %v355_v34, 0.0  ;;  %v388_v47 = vmax.f32 %v356_v35, 0.0  ;;  %416 = vst.msk [vmem:[#allocation2 + $0x19] sm:$0xff] %vm415_vm0, %v382_v38  ;;  %s3282_s19 = smov (!%p235_p4, %s2571_s19), 1 }
  0x1a   : > { %417 = vst.msk [vmem:[#allocation2 + $0x21] sm:$0xff] %vm415_vm0, %v383_v39  ;;  %418 = vst.msk [vmem:[#allocation2 + $0x31] sm:$0xff] %vm415_vm0, %v384_v40  ;;  %v389_v48 = vmax.f32 %v357_v41, 0.0  ;;  %v2381_v54 = vunpack.c.h.bf16 %v2423_v42  ;;  %v2384_v55 = vunpack.c.l.bf16 %v2424_v43  ;;  %v319_v56 = vmul.f32 %v2372_v49, %v2631_v1  ;;  %s2266_s20 = sshll.u32 %s3282_s19, 1 }
  0x1b   : > { %419 = vst.msk [vmem:[#allocation2 + $0x39] sm:$0xff] %vm415_vm0, %v385_v44  ;;  %420 = vst.msk [vmem:[#allocation2 + $0x49] sm:$0xff] %vm415_vm0, %v386_v45  ;;  %v320_v57 = vmul.f32 %v2373_v50, %v2631_v1  ;;  %v321_v58 = vmul.f32 %v2376_v51, %v2631_v1  ;;  %v2385_v59 = vunpack.c.h.bf16 %v2424_v43  ;;  %v322_v60 = vmul.f32 %v2377_v52, %v2631_v1  ;;  %s238_s26 = scalar_lea.vmem %s3278_s5, %s2266_s20 }
  0x1c   : > { %421 = vst.msk [vmem:[#allocation2 + $0x51] sm:$0xff] %vm415_vm0, %v387_v46  ;;  %422 = vst.msk [vmem:[#allocation2 + $0x61] sm:$0xff] %vm415_vm0, %v388_v47  ;;  %v323_v61 = vmul.f32 %v2380_v53, %v2631_v1  ;;  %v324_v62 = vmul.f32 %v2381_v54, %v2631_v1  ;;  %v325_v63 = vmul.f32 %v2384_v55, %v2631_v1  ;;  %v2388_v30 = vunpack.c.l.bf16 %v2425_v11 }
  0x1d   : > { %423 = vst.msk [vmem:[#allocation2 + $0x69] sm:$0xff] %vm415_vm0, %v389_v48  ;;  %v358_v0 = vadd.f32 %v2641_v15, %v319_v56  ;;  %v359_v2 = vadd.f32 %v2641_v15, %v320_v57  ;;  %v360_v3 = vadd.f32 %v2641_v15, %v321_v58  ;;  %v326_v4 = vmul.f32 %v2385_v59, %v2631_v1 }
  0x1e   : > { %v361_v7 = vadd.f32 %v2641_v15, %v322_v60  ;;  %v362_v8 = vadd.f32 %v2641_v15, %v323_v61  ;;  %v363_v9 = vadd.f32 %v2641_v15, %v324_v62  ;;  %v364_v10 = vadd.f32 %v2641_v15, %v325_v63 }
  0x1f   : > { %v390_v12 = vmax.f32 %v358_v0, 0.0  ;;  %v391_v13 = vmax.f32 %v359_v2, 0.0  ;;  %v392_v14 = vmax.f32 %v360_v3, 0.0  ;;  %v365_v16 = vadd.f32 %v2641_v15, %v326_v4 }
  0x20   : > { %v555_v17 = vld [vmem:[#allocation2 + $0x19] sm:$0xff]  ;;  %v393_v20 = vmax.f32 %v361_v7, 0.0  ;;  %v394_v21 = vmax.f32 %v362_v8, 0.0  ;;  %v395_v22 = vmax.f32 %v363_v9, 0.0  ;;  %v521_v23 = vpack.c.bf16 %v490_v5, %v489_v6 }
  0x21   : > { %v556_v18 = vld [vmem:[#allocation2 + $0x21] sm:$0xff]  ;;  %v811_v26 = vld [vmem:[#allocation2 + $0x18] sm:$0xff]  ;;  %424 = vst.msk [vmem:[#allocation2 + $0x79] sm:$0xff] %vm415_vm0, %v390_v12  ;;  %425 = vst.msk [vmem:[#allocation2 + $0x81] sm:$0xff] %vm415_vm0, %v391_v13  ;;  %v396_v28 = vmax.f32 %v364_v10, 0.0  ;;  %v397_v29 = vmax.f32 %v365_v16, 0.0  ;;  %v2389_v35 = vunpack.c.h.bf16 %v2425_v11  ;;  %v327_v38 = vmul.f32 %v2388_v30, %v2631_v1 }
  0x22   : > { %v684_v19 = vld [vmem:[#allocation2 + $0x1a] sm:$0xff]  ;;  %v586_v24 = vpack.c.bf16 %v556_v18, %v555_v17  ;;  %v685_v25 = vld [vmem:[#allocation2 + $0x22] sm:$0xff]  ;;  %426 = vst.msk [vmem:[#allocation2 + $0x91] sm:$0xff] %vm415_vm0, %v392_v14  ;;  %v813_v33 = vld [vmem:[#allocation2 + $0x30] sm:$0xff]  ;;  %v2392_v46 = vunpack.c.l.bf16 %v2426_v36  ;;  %v2393_v47 = vunpack.c.h.bf16 %v2426_v36  ;;  %vm1181_vm8 = vcmask 195744  }
  0x23   : > { %v812_v27 = vld [vmem:[#allocation2 + $0x20] sm:$0xff]  ;;  %v2692_v31 = vpack.c.bf16 %v685_v25, %v684_v19  ;;  %v814_v34 = vld [vmem:[#allocation2 + $0x38] sm:$0xff]  ;;  %427 = vst.msk [vmem:[#allocation2 + $0x99] sm:$0xff] %vm415_vm0, %v393_v20  ;;  %428 = vst.msk [vmem:[#allocation2 + $0xa9] sm:$0xff] %vm415_vm0, %v394_v21  ;;  %v328_v41 = vmul.f32 %v2389_v35, %v2631_v1  ;;  %v366_v45 = vadd.f32 %v2641_v15, %v327_v38  ;;  %vm1311_vm9 = vcmask 228544  }
  0x24   : > { %v843_v32 = vpack.c.bf16 %v812_v27, %v811_v26  ;;  %429 = vst.msk [vmem:[#allocation2 + $0xb1] sm:$0xff] %vm415_vm0, %v395_v22  ;;  %537 = vst.msk [vmem:[#allocation3] sm:$0xff] %vm415_vm0, %v521_v23  ;;  %619 = vrot.lane.b32.xlu0 %v586_v24, %s2527_s27  ;;  %v2700_v37 = vpack.c.bf16 %v814_v34, %v813_v33  ;;  %v1201_v39 = vld [vmem:[#allocation2 + $0x48] sm:$0xff]  ;;  %v1202_v40 = vld [vmem:[#allocation2 + $0x50] sm:$0xff]  ;;  %v329_v53 = vmul.f32 %v2392_v46, %v2631_v1  ;;  %vm1440_vm10 = vcmask 261344  }
  0x25   : > { %430 = vst.msk [vmem:[#allocation2 + $0xc1] sm:$0xff] %vm415_vm0, %v396_v28  ;;  %431 = vst.msk [vmem:[#allocation2 + $0xc9] sm:$0xff] %vm415_vm0, %v397_v29  ;;  %748 = vrot.lane.b32.xlu1 %v2692_v31, %s2528_s30  ;;  %v942_v42 = vld [vmem:[#allocation2 + $0x31] sm:$0xff]  ;;  %v943_v43 = vld [vmem:[#allocation2 + $0x39] sm:$0xff]  ;;  %v2709_v44 = vpack.c.bf16 %v1202_v40, %v1201_v39  ;;  %v367_v50 = vadd.f32 %v2641_v15, %v328_v41  ;;  %v398_v52 = vmax.f32 %v366_v45, 0.0  ;;  %vm1569_vm11 = vcmask 294144  }
  0x26   : > { %538 = vst.msk [vmem:[#allocation3 + $0x8] sm:$0xff] %vm415_vm0, %v843_v32  ;;  %539 = vst.msk [vmem:[#allocation3 + $0x10] sm:$0xff] %vm415_vm0, %v2700_v37  ;;  %v817_v48 = vld [vmem:[#allocation2 + $0x60] sm:$0xff]  ;;  %v818_v49 = vld [vmem:[#allocation2 + $0x68] sm:$0xff]  ;;  %v330_v54 = vmul.f32 %v2393_v47, %v2631_v1  ;;  %v2724_v55 = vpack.c.bf16 %v943_v43, %v942_v42  ;;  %v368_v62 = vadd.f32 %v2641_v15, %v329_v53  ;;  %vm1622_vm12 = vcmask 293888  }
  0x27   : > { %v2716_v51 = vpack.c.bf16 %v818_v49, %v817_v48  ;;  %540 = vst.msk [vmem:[#allocation3 + $0x18] sm:$0xff] %vm415_vm0, %v2709_v44  ;;  %v399_v58 = vmax.f32 %v367_v50, 0.0  ;;  %v1071_v59 = vld [vmem:[#allocation2 + $0x32] sm:$0xff]  ;;  %v1072_v60 = vld [vmem:[#allocation2 + $0x3a] sm:$0xff]  ;;  %432 = vst.msk [vmem:[#allocation2 + $0xd9] sm:$0xff] %vm415_vm0, %v398_v52  ;;  %vm2137_vm13 = vcmask 27648  }
  0x28   : > { %875 = vrot.lane.b32.xlu0 %v843_v32, %s2529_s6  ;;  %v1205_v56 = vld [vmem:[#allocation2 + $0x78] sm:$0xff]  ;;  %v1206_v57 = vld [vmem:[#allocation2 + $0x80] sm:$0xff]  ;;  %v369_v63 = vadd.f32 %v2641_v15, %v330_v54  ;;  %v400_v4 = vmax.f32 %v368_v62, 0.0  ;;  %v2741_v6 = vpack.c.bf16 %v1072_v60, %v1071_v59  ;;  %v1330_v11 = vld [vmem:[#allocation2 + $0x49] sm:$0xff]  ;;  %vm2006_vm14 = vcmask 1040384  }
  0x29   : > { %877 = vrot.lane.b32.xlu1 %v2700_v37, %s2529_s6  ;;  %v2726_v61 = vpack.c.bf16 %v1206_v57, %v1205_v56  ;;  %541 = vst.msk [vmem:[#allocation3 + $0x20] sm:$0xff] %vm415_vm0, %v2716_v51  ;;  %v821_v0 = vld [vmem:[#allocation2 + $0x90] sm:$0xff]  ;;  %433 = vst.msk [vmem:[#allocation2 + $0xe1] sm:$0xff] %vm415_vm0, %v399_v58  ;;  %v2515_v10 = vld [vmem:[%s3276_s3] sm:$0xff]  }
  0x2a   : > { %v822_v2 = vld [vmem:[#allocation2 + $0x98] sm:$0xff]  ;;  %v401_v5 = vmax.f32 %v369_v63, 0.0  ;;  %v1209_v7 = vld [vmem:[#allocation2 + $0xa8] sm:$0xff]  ;;  %434 = vst.msk [vmem:[#allocation2 + $0xf1] sm:$0xff] %vm415_vm0, %v400_v4  ;;  %2452 = vmatprep.subr.bf16.mxu0 %v2515_v10  ;;  %v2427_v14 = vld [vmem:[%s2626_s24 + $0x50] sm:$0xff]   ;;  %2490 = vmatprep.subr.bf16.mxu1 %v2515_v10 }
  0x2b   : > { %v2735_v3 = vpack.c.bf16 %v822_v2, %v821_v0  ;;  %542 = vst.msk [vmem:[#allocation3 + $0x28] sm:$0xff] %vm415_vm0, %v2726_v61  ;;  %v1210_v8 = vld [vmem:[#allocation2 + $0xb0] sm:$0xff]  ;;  %v2516_v13 = vld [vmem:[%s3276_s3 + $0x8] sm:$0xff]   ;;  %2453 = vmatpush3.bf16.msra.mxu0 %v2515_v10  ;;  %v2396_v16 = vunpack.c.l.bf16 %v2427_v14  ;;  %v2397_v17 = vunpack.c.h.bf16 %v2427_v14  ;;  %2493 = vmatpush3.bf16.msra.mxu1 %v2515_v10  ;;  %v2428_v25 = vld [vmem:[%s2626_s24 + $0x58] sm:$0xff]  }
  0x2c   : > { %1004 = vrot.lane.b32.xlu0 %v586_v24, %s2530_s7  ;;  %v2743_v9 = vpack.c.bf16 %v1210_v8, %v1209_v7  ;;  %435 = vst.msk [vmem:[#allocation2 + $0xf9] sm:$0xff] %vm415_vm0, %v401_v5  ;;  %v1331_v12 = vld [vmem:[#allocation2 + $0x51] sm:$0xff]  ;;  %2454 = vmatprep.subr.bf16.mxu0 %v2516_v13  ;;  %v2517_v24 = vld [vmem:[%s3276_s3 + $0x10] ss:$0 sps:$4 sm:$0x33]   ;;  %v2400_v28 = vunpack.c.l.bf16 %v2428_v25  ;;  %v2401_v29 = vunpack.c.h.bf16 %v2428_v25  ;;  %v2429_v42 = vld [vmem:[%s2626_s24 + $0x60] sm:$0xff]  }
  0x2d   : > { %1006 = vrot.lane.b32.xlu1 %v2724_v55, %s2530_s7  ;;  %543 = vst.msk [vmem:[#allocation3 + $0x30] sm:$0xff] %vm415_vm0, %v2735_v3  ;;  %v2766_v18 = vpack.c.bf16 %v1331_v12, %v1330_v11  ;;  %v331_v22 = vmul.f32 %v2396_v16, %v2631_v1  ;;  %v332_v23 = vmul.f32 %v2397_v17, %v2631_v1  ;;  %v1459_v30 = vld [vmem:[#allocation2 + $0x4a] sm:$0xff]  ;;  %v1673_v32 = vsel %vm1671_vm3, %v2517_v24, 0  ;;  %v946_v52 = vld [vmem:[#allocation2 + $0x61] sm:$0xff]  ;;  %v1334_v2 = vld [vmem:[#allocation2 + $0x79] sm:$0xff] }
  0x2e   : > { %544 = vst.msk [vmem:[#allocation3 + $0x38] sm:$0xff] %vm415_vm0, %v2743_v9  ;;  %2491 = vmatprep.subr.bf16.mxu1 %v2516_v13  ;;  %v333_v35 = vmul.f32 %v2400_v28, %v2631_v1  ;;  %v334_v36 = vmul.f32 %v2401_v29, %v2631_v1  ;;  %v2404_v46 = vunpack.c.l.bf16 %v2429_v42  ;;  %v2405_v47 = vunpack.c.h.bf16 %v2429_v42  ;;  %v947_v53 = vld [vmem:[#allocation2 + $0x69] sm:$0xff]  ;;  %v1335_v4 = vld [vmem:[#allocation2 + $0x81] sm:$0xff]  ;;  %v951_v29 = vld [vmem:[#allocation2 + $0x99] sm:$0xff] }
  0x2f   : > { %2455 = vmatpush3.bf16.msra.mxu0 %v2516_v13  ;;  %v370_v26 = vadd.f32 %v2641_v15, %v331_v22  ;;  %v371_v27 = vadd.f32 %v2641_v15, %v332_v23  ;;  %2494 = vmatpush3.bf16.msra.mxu1 %v2516_v13  ;;  %v975_v59 = vpack.c.bf16 %v947_v53, %v946_v52  ;;  %v1075_v63 = vld [vmem:[#allocation2 + $0x62] sm:$0xff]  ;;  %v1076_v0 = vld [vmem:[#allocation2 + $0x6a] sm:$0xff]  ;;  %v1463_v13 = vld [vmem:[#allocation2 + $0x7a] sm:$0xff] }
  0x30   : > { %1133 = vrot.lane.b32.xlu0 %v2692_v31, %s2531_s8  ;;  %v1460_v31 = vld [vmem:[#allocation2 + $0x52] sm:$0xff]  ;;  %2496 = vmatprep.subr.msk.bf16.mxu0 %vm1671_vm3, %v2517_v24  ;;  %v372_v38 = vadd.f32 %v2641_v15, %v333_v35  ;;  %v373_v39 = vadd.f32 %v2641_v15, %v334_v36  ;;  %v335_v49 = vmul.f32 %v2404_v46, %v2631_v1  ;;  %v2430_v10 = vld [vmem:[%s2626_s24 + $0x68] sm:$0xff]  }
  0x31   : > { %1135 = vrot.lane.b32.xlu1 %v2741_v6, %s2531_s8  ;;  %v829_v19 = vld [vmem:[#allocation2 + $0xf0] sm:$0xff]  ;;  %v402_v33 = vmax.f32 %v370_v26, 0.0  ;;  %v403_v34 = vmax.f32 %v371_v27, 0.0  ;;  %2497 = vmatprep.subr.msk.bf16.mxu1 %vm1671_vm3, %v2517_v24  ;;  %v336_v50 = vmul.f32 %v2405_v47, %v2631_v1  ;;  %v1363_v8 = vpack.c.bf16 %v1335_v4, %v1334_v2  ;;  %v1464_v14 = vld [vmem:[#allocation2 + $0x82] sm:$0xff]  ;;  %v2432_v47 = vld [vmem:[%s2626_s24 + $0x78] sm:$0xff]  }
  0x32   : > { %v404_v40 = vmax.f32 %v372_v38, 0.0  ;;  %v405_v41 = vmax.f32 %v373_v39, 0.0  ;;  %v374_v56 = vadd.f32 %v2641_v15, %v335_v49  ;;  %v2408_v11 = vunpack.c.l.bf16 %v2430_v10  ;;  %v2431_v23 = vld [vmem:[%s2626_s24 + $0x70] sm:$0xff]   ;;  %v1080_v39 = vld [vmem:[#allocation2 + $0x9a] sm:$0xff]  ;;  %s3130_s24 = scalar_lea.vmem %s3277_s4, %s2263_s21 }
  0x33   : > { %v830_v20 = vld [vmem:[#allocation2 + $0xf8] sm:$0xff]  ;;  %436 = vst.msk [vmem:[#allocation2 + $0x109] sm:$0xff] %vm415_vm0, %v402_v33  ;;  %437 = vst.msk [vmem:[#allocation2 + $0x111] sm:$0xff] %vm415_vm0, %v403_v34  ;;  %2457 = vmatpush3.bf16.msra.mxu0 %v1673_v32  ;;  %2495 = vmatpush3.bf16.msra.mxu1 %v1673_v32  ;;  %v375_v57 = vadd.f32 %v2641_v15, %v336_v50  ;;  %v2409_v12 = vunpack.c.h.bf16 %v2430_v10  ;;  %v2412_v24 = vunpack.c.l.bf16 %v2431_v23  ;;  %v2413_v25 = vunpack.c.h.bf16 %v2431_v23  ;;  %v1467_v52 = vld [vmem:[#allocation2 + $0xaa] sm:$0xff] }
  0x34   : > { %1263 = vrot.lane.b32.xlu0 %v2700_v37, %s2532_s13  ;;  %v2768_v21 = vpack.c.bf16 %v830_v20, %v829_v19  ;;  %v1490_v37 = vpack.c.bf16 %v1460_v31, %v1459_v30  ;;  %438 = vst.msk [vmem:[#allocation2 + $0x121] sm:$0xff] %vm415_vm0, %v404_v40  ;;  %439 = vst.msk [vmem:[#allocation2 + $0x129] sm:$0xff] %vm415_vm0, %v405_v41  ;;  %v406_v60 = vmax.f32 %v374_v56, 0.0  ;;  %v950_v26 = vld [vmem:[#allocation2 + $0x91] sm:$0xff]  ;;  %v1338_v40 = vld [vmem:[#allocation2 + $0xa9] sm:$0xff]  ;;  %v2416_v49 = vunpack.c.l.bf16 %v2432_v47 }
  0x35   : > { %1265 = vrot.lane.b32.xlu1 %v2709_v44, %s2532_s13  ;;  %v407_v62 = vmax.f32 %v375_v57, 0.0  ;;  %v337_v16 = vmul.f32 %v2408_v11, %v2631_v1  ;;  %v1492_v19 = vpack.c.bf16 %v1464_v14, %v1463_v13  ;;  %v339_v27 = vmul.f32 %v2412_v24, %v2631_v1  ;;  %v1079_v38 = vld [vmem:[#allocation2 + $0x92] sm:$0xff]  ;;  %v506_v10 = vld [vmem:[#allocation2 + $0xc8] sm:$0xff]  ;;  %v1214_v14 = vld [vmem:[#allocation2 + $0xe0] sm:$0xff] }
  0x36   : > { %547 = vst.msk [vmem:[#allocation3 + $0x50] sm:$0xff] %vm415_vm0, %v2768_v21  ;;  %440 = vst.msk [vmem:[#allocation2 + $0x139] sm:$0xff] %vm415_vm0, %v406_v60  ;;  %v340_v28 = vmul.f32 %v2413_v25, %v2631_v1  ;;  %v977_v35 = vpack.c.bf16 %v951_v29, %v950_v26  ;;  %v1339_v41 = vld [vmem:[#allocation2 + $0xb1] sm:$0xff]  ;;  %v2417_v50 = vunpack.c.h.bf16 %v2432_v47  ;;  %v1471_v24 = vld [vmem:[#allocation2 + $0xda] sm:$0xff] }
  0x37   : > { %441 = vst.msk [vmem:[#allocation2 + $0x141] sm:$0xff] %vm415_vm0, %v407_v62  ;;  %v376_v17 = vadd.f32 %v2641_v15, %v337_v16  ;;  %v378_v33 = vadd.f32 %v2641_v15, %v339_v27  ;;  %v1365_v46 = vpack.c.bf16 %v1339_v41, %v1338_v40  ;;  %v1468_v53 = vld [vmem:[#allocation2 + $0xb2] sm:$0xff]  ;;  %v826_v62 = vld [vmem:[#allocation2 + $0xc8] sm:$0xff]  ;;  %v508_v16 = vld [vmem:[#allocation2 + $0xe0] sm:$0xff] }
  0x38   : > { %1392 = vrot.lane.b32.xlu0 %v2724_v55, %s2533_s16  ;;  %v379_v34 = vadd.f32 %v2641_v15, %v340_v28  ;;  %v1494_v57 = vpack.c.bf16 %v1468_v53, %v1467_v52  ;;  %v1213_v13 = vld [vmem:[#allocation2 + $0xd8] sm:$0xff]  ;;  %v1472_v25 = vld [vmem:[#allocation2 + $0xe2] sm:$0xff] }
  0x39   : > { %1394 = vrot.lane.b32.xlu1 %v2766_v18, %s2533_s16  ;;  %v408_v20 = vmax.f32 %v376_v17, 0.0  ;;  %v410_v36 = vmax.f32 %v378_v33, 0.0  ;;  %v1496_v28 = vpack.c.bf16 %v1472_v25, %v1471_v24  ;;  %v1088_v40 = vld [vmem:[#allocation2 + $0xfa] sm:$0xff] }
  0x3a   : > { %v1217_v43 = vld [vmem:[#allocation2 + $0x108] sm:$0xff]  ;;  %v1218_v45 = vld [vmem:[#allocation2 + $0x110] sm:$0xff] }
  0x3b   : > { %v2805_v48 = vpack.c.bf16 %v1218_v45, %v1217_v43  ;;  %v833_v54 = vld [vmem:[#allocation2 + $0x120] sm:$0xff]  ;;  %442 = vst.msk [vmem:[#allocation2 + $0x151] sm:$0xff] %vm415_vm0, %v408_v20  ;;  %444 = vst.msk [vmem:[#allocation2 + $0x169] sm:$0xff] %vm415_vm0, %v410_v36 }
  0x3c   : > { %1521 = vrot.lane.b32.xlu0 %v2741_v6, %s2534_s17  ;;  %v959_v36 = vld [vmem:[#allocation2 + $0xf9] sm:$0xff] }
  0x3d   : > { %621 = vrot.lane.b32.xlu1 %v2724_v55, %s2527_s27  ;;  %548 = vst.msk [vmem:[#allocation3 + $0x58] sm:$0xff] %vm415_vm0, %v2805_v48  ;;  %v834_v55 = vld [vmem:[#allocation2 + $0x128] sm:$0xff]  ;;  %v1221_v5 = vld [vmem:[#allocation2 + $0x138] sm:$0xff] }
  0x3e   : > { %v2816_v58 = vpack.c.bf16 %v834_v55, %v833_v54  ;;  %v341_v54 = vmul.f32 %v2416_v49, %v2631_v1  ;;  %v1346_v49 = vld [vmem:[#allocation2 + $0x109] sm:$0xff] }
  0x3f   : > { %v1480_v24 = vld [vmem:[#allocation2 + $0x142] sm:$0xff] }
  0x40   : > { %1523 = vrot.lane.b32.xlu0 %v1490_v37, %s2534_s17  ;;  %549 = vst.msk [vmem:[#allocation3 + $0x60] sm:$0xff] %vm415_vm0, %v2816_v58  ;;  %v380_v55 = vadd.f32 %v2641_v15, %v341_v54 }
  0x41   : > { %623 = vrot.lane.b32.xlu1 %v2766_v18, %s2527_s27 }
  0x42   : > { %v837_v30 = vld [vmem:[#allocation2 + $0x150] sm:$0xff]  ;;  %v1225_v42 = vld [vmem:[#allocation2 + $0x168] sm:$0xff] }
  0x44   : > { %750 = vrot.lane.b32.xlu0 %v2741_v6, %s2528_s30  ;;  %v1222_v6 = vld [vmem:[#allocation2 + $0x140] sm:$0xff] }
  0x45   : > { %752 = vrot.lane.b32.xlu1 %v1490_v37, %s2528_s30  ;;  %v2829_v7 = vpack.c.bf16 %v1222_v6, %v1221_v5  ;;  %v1083_v5 = vld [vmem:[#allocation2 + $0xc2] sm:$0xff]  ;;  %v1084_v6 = vld [vmem:[#allocation2 + $0xca] sm:$0xff] }
  0x46   : > { %v1108_v11 = vpack.c.bf16 %v1084_v6, %v1083_v5 }
  0x47   : > { %550 = vst.msk [vmem:[#allocation3 + $0x68] sm:$0xff] %vm415_vm0, %v2829_v7 }
  0x48   : > { %879 = vrot.lane.b32.xlu0 %v2709_v44, %s2529_s6  ;;  %v1104_v44 = vpack.c.bf16 %v1076_v0, %v1075_v63  ;;  %v954_v0 = vld [vmem:[#allocation2 + $0xc1] sm:$0xff] }
  0x49   : > { %881 = vrot.lane.b32.xlu1 %v2716_v51, %s2529_s6 }
  0x4c   : > { %1008 = vrot.lane.b32.xlu0 %v2766_v18, %s2530_s7 }
  0x4d   : > { %1010 = vrot.lane.b32.xlu1 %v975_v59, %s2530_s7 }
  0x50   : > { %1137 = vrot.lane.b32.xlu0 %v1490_v37, %s2531_s8  ;;  %v411_v37 = vmax.f32 %v379_v34, 0.0 }
  0x51   : > { %1139 = vrot.lane.b32.xlu1 %v1104_v44, %s2531_s8 }
  0x52   : > { %445 = vst.msk [vmem:[#allocation2 + $0x171] sm:$0xff] %vm415_vm0, %v411_v37 }
  0x54   : > { %1267 = vrot.lane.b32.xlu0 %v2716_v51, %s2532_s13  ;;  %v338_v51 = vmul.f32 %v2409_v12, %v2631_v1 }
  0x55   : > { %1269 = vrot.lane.b32.xlu1 %v2726_v61, %s2532_s13 }
  0x56   : > { %v377_v18 = vadd.f32 %v2641_v15, %v338_v51  ;;  %v1238_v51 = vpack.c.bf16 %v1214_v14, %v1213_v13 }
  0x58   : > { %1396 = vrot.lane.b32.xlu0 %v975_v59, %s2533_s16  ;;  %v409_v22 = vmax.f32 %v377_v18, 0.0  ;;  %v1342_v18 = vld [vmem:[#allocation2 + $0xd9] sm:$0xff] }
  0x59   : > { %1398 = vrot.lane.b32.xlu1 %v1363_v8, %s2533_s16  ;;  %v1226_v43 = vld [vmem:[#allocation2 + $0x170] sm:$0xff] }
  0x5a   : > { %443 = vst.msk [vmem:[#allocation2 + $0x159] sm:$0xff] %vm415_vm0, %v409_v22  ;;  %v2871_v45 = vpack.c.bf16 %v1226_v43, %v1225_v42 }
  0x5c   : > { %1525 = vrot.lane.b32.xlu0 %v1104_v44, %s2534_s17  ;;  %552 = vst.msk [vmem:[#allocation3 + $0x78] sm:$0xff] %vm415_vm0, %v2871_v45 }
  0x5d   : > { %625 = vrot.lane.b32.xlu1 %v975_v59, %s2527_s27  ;;  %v412_v59 = vmax.f32 %v380_v55, 0.0 }
  0x5f   : > { %446 = vst.msk [vmem:[#allocation2 + $0x181] sm:$0xff] %vm415_vm0, %v412_v59 }
  0x60   : > { %1527 = vrot.lane.b32.xlu0 %v1492_v19, %s2534_s17 }
  0x61   : > { %627 = vrot.lane.b32.xlu1 %v1363_v8, %s2527_s27  ;;  %v838_v31 = vld [vmem:[#allocation2 + $0x158] sm:$0xff] }
  0x62   : > { %v2855_v32 = vpack.c.bf16 %v838_v31, %v837_v30 }
  0x64   : > { %754 = vrot.lane.b32.xlu0 %v1104_v44, %s2528_s30  ;;  %551 = vst.msk [vmem:[#allocation3 + $0x70] sm:$0xff] %vm415_vm0, %v2855_v32  ;;  %v955_v44 = vld [vmem:[#allocation2 + $0xc9] sm:$0xff] }
  0x65   : > { %756 = vrot.lane.b32.xlu1 %v1492_v19, %s2528_s30  ;;  %v979_v4 = vpack.c.bf16 %v955_v44, %v954_v0 }
  0x68   : > { %883 = vrot.lane.b32.xlu0 %v2726_v61, %s2529_s6  ;;  %v1106_v61 = vpack.c.bf16 %v1080_v39, %v1079_v38 }
  0x69   : > { %885 = vrot.lane.b32.xlu1 %v2735_v3, %s2529_s6 }
  0x6c   : > { %1012 = vrot.lane.b32.xlu0 %v1363_v8, %s2530_s7  ;;  %v505_v8 = vld [vmem:[#allocation2 + $0xc0] sm:$0xff] }
  0x6d   : > { %1014 = vrot.lane.b32.xlu1 %v977_v35, %s2530_s7  ;;  %v529_v12 = vpack.c.bf16 %v506_v10, %v505_v8  ;;  %v1091_v10 = vld [vmem:[#allocation2 + $0x122] sm:$0xff] }
  0x6f   : > { %545 = vst.msk [vmem:[#allocation3 + $0x40] sm:$0xff] %vm415_vm0, %v529_v12 }
  0x70   : > { %1141 = vrot.lane.b32.xlu0 %v1492_v19, %s2531_s8  ;;  %v1343_v19 = vld [vmem:[#allocation2 + $0xe1] sm:$0xff] }
  0x71   : > { %1143 = vrot.lane.b32.xlu1 %v1106_v61, %s2531_s8  ;;  %v1367_v20 = vpack.c.bf16 %v1343_v19, %v1342_v18 }
  0x74   : > { %1271 = vrot.lane.b32.xlu0 %v2735_v3, %s2532_s13  ;;  %v342_v3 = vmul.f32 %v2417_v50, %v2631_v1  ;;  %v825_v1 = vld [vmem:[#allocation2 + $0xc0] sm:$0xff]  ;;  %v1347_v50 = vld [vmem:[#allocation2 + $0x111] sm:$0xff] }
  0x75   : > { %1273 = vrot.lane.b32.xlu1 %v2743_v9, %s2532_s13  ;;  %v1369_v53 = vpack.c.bf16 %v1347_v50, %v1346_v49 }
  0x76   : > { %v381_v56 = vadd.f32 %v2641_v15, %v342_v3  ;;  %v850_v15 = vpack.c.bf16 %v826_v62, %v825_v1 }
  0x78   : > { %1400 = vrot.lane.b32.xlu0 %v977_v35, %s2533_s16  ;;  %v413_v60 = vmax.f32 %v381_v56, 0.0  ;;  %v1475_v56 = vld [vmem:[#allocation2 + $0x10a] sm:$0xff] }
  0x79   : > { %1402 = vrot.lane.b32.xlu1 %v1365_v46, %s2533_s16 }
  0x7a   : > { %447 = vst.msk [vmem:[#allocation2 + $0x189] sm:$0xff] %vm415_vm0, %v413_v60 }
  0x7c   : > { %1529 = vrot.lane.b32.xlu0 %v1106_v61, %s2534_s17 }
  0x7d   : > { %629 = vrot.lane.b32.xlu1 %v977_v35, %s2527_s27  ;;  %v958_v35 = vld [vmem:[#allocation2 + $0xf1] sm:$0xff] }
  0x7e   : > { %v981_v38 = vpack.c.bf16 %v959_v36, %v958_v35  ;;  %v967_v35 = vld [vmem:[#allocation2 + $0x159] sm:$0xff] }
  0x80   : > { %1531 = vrot.lane.b32.xlu0 %v1494_v57, %s2534_s17 }
  0x81   : > { %631 = vrot.lane.b32.xlu1 %v1365_v46, %s2527_s27 }
  0x83   : > { %v618_v63 = vpop.permute.xlu0 %617 }
  0x84   : > { %758 = vrot.lane.b32.xlu0 %v1106_v61, %s2528_s30  ;;  %666 = vst.msk [vmem:[#allocation3] sm:$0xff] %vm665_vm4, %v618_v63  ;;  %v747_v2 = vpop.permute.xlu1 %746  ;;  %v1087_v61 = vld [vmem:[#allocation2 + $0xf2] sm:$0xff] }
  0x85   : > { %760 = vrot.lane.b32.xlu1 %v1494_v57, %s2528_s30  ;;  %795 = vst.msk [vmem:[#allocation3] sm:$0xff] %vm794_vm5, %v747_v2  ;;  %v1110_v42 = vpack.c.bf16 %v1088_v40, %v1087_v61  ;;  %v962_v2 = vld [vmem:[#allocation2 + $0x121] sm:$0xff] }
  0x86   : > { %v1096_v61 = vld [vmem:[#allocation2 + $0x15a] sm:$0xff] }
  0x88   : > { %887 = vrot.lane.b32.xlu0 %v2743_v9, %s2529_s6  ;;  %v507_v9 = vld [vmem:[#allocation2 + $0xd8] sm:$0xff] }
  0x89   : > { %889 = vrot.lane.b32.xlu1 %v850_v15, %s2529_s6  ;;  %v530_v17 = vpack.c.bf16 %v508_v16, %v507_v9  ;;  %v1350_v16 = vld [vmem:[#allocation2 + $0x139] sm:$0xff] }
  0x8b   : > { %546 = vst.msk [vmem:[#allocation3 + $0x48] sm:$0xff] %vm415_vm0, %v530_v17 }
  0x8c   : > { %1016 = vrot.lane.b32.xlu0 %v1365_v46, %s2530_s7 }
  0x8d   : > { %1018 = vrot.lane.b32.xlu1 %v979_v4, %s2530_s7 }
  0x90   : > { %1145 = vrot.lane.b32.xlu0 %v1494_v57, %s2531_s8 }
  0x91   : > { %1147 = vrot.lane.b32.xlu1 %v1108_v11, %s2531_s8 }
  0x94   : > { %1275 = vrot.lane.b32.xlu0 %v850_v15, %s2532_s13 }
  0x95   : > { %1277 = vrot.lane.b32.xlu1 %v1238_v51, %s2532_s13 }
  0x96   : > { %v620_v22 = vpop.permute.xlu0 %619 }
  0x97   : > { %667 = vst.msk [vmem:[#allocation3 + $0x8] sm:$0xff] %vm665_vm4, %v620_v22  ;;  %v749_v23 = vpop.permute.xlu1 %748 }
  0x98   : > { %796 = vst.msk [vmem:[#allocation3 + $0x8] sm:$0xff] %vm794_vm5, %v749_v23  ;;  %1404 = vrot.lane.b32.xlu0 %v979_v4, %s2533_s16  ;;  %v1479_v23 = vld [vmem:[#allocation2 + $0x13a] sm:$0xff] }
  0x99   : > { %1406 = vrot.lane.b32.xlu1 %v1367_v20, %s2533_s16 }
  0x9a   : > { %v876_v26 = vpop.permute.xlu0 %875 }
  0x9b   : > { %924 = vst.msk [vmem:[#allocation3] sm:$0xff] %vm923_vm6, %v876_v26  ;;  %v878_v27 = vpop.permute.xlu1 %877 }
  0x9c   : > { %925 = vst.msk [vmem:[#allocation3 + $0x8] sm:$0xff] %vm923_vm6, %v878_v27  ;;  %1533 = vrot.lane.b32.xlu0 %v1108_v11, %s2534_s17  ;;  %v1500_v27 = vpack.c.bf16 %v1480_v24, %v1479_v23  ;;  %v1487_v24 = vld [vmem:[#allocation2 + $0x19a] sm:$0xff] }
  0x9d   : > { %633 = vrot.lane.b32.xlu1 %v979_v4, %s2527_s27  ;;  %v963_v4 = vld [vmem:[#allocation2 + $0x129] sm:$0xff] }
  0x9e   : > { %v1005_v29 = vpop.permute.xlu0 %1004  ;;  %v983_v6 = vpack.c.bf16 %v963_v4, %v962_v2  ;;  %v970_v2 = vld [vmem:[#allocation2 + $0x181] sm:$0xff]  ;;  %v971_v4 = vld [vmem:[#allocation2 + $0x189] sm:$0xff] }
  0x9f   : > { %1053 = vst.msk [vmem:[#allocation3] sm:$0xff] %vm1052_vm7, %v1005_v29  ;;  %v1007_v30 = vpop.permute.xlu1 %1006 }
  0xa0   : > { %1054 = vst.msk [vmem:[#allocation3 + $0x8] sm:$0xff] %vm1052_vm7, %v1007_v30  ;;  %1535 = vrot.lane.b32.xlu0 %v1496_v28, %s2534_s17 }
  0xa1   : > { %635 = vrot.lane.b32.xlu1 %v1367_v20, %s2527_s27 }
  0xa2   : > { %v1134_v31 = vpop.permute.xlu0 %1133 }
  0xa3   : > { %1182 = vst.msk [vmem:[#allocation3] sm:$0xff] %vm1181_vm8, %v1134_v31  ;;  %v1136_v33 = vpop.permute.xlu1 %1135 }
  0xa4   : > { %1183 = vst.msk [vmem:[#allocation3 + $0x8] sm:$0xff] %vm1181_vm8, %v1136_v33  ;;  %762 = vrot.lane.b32.xlu0 %v1108_v11, %s2528_s30  ;;  %v1092_v11 = vld [vmem:[#allocation2 + $0x12a] sm:$0xff] }
  0xa5   : > { %764 = vrot.lane.b32.xlu1 %v1496_v28, %s2528_s30  ;;  %v1112_v13 = vpack.c.bf16 %v1092_v11, %v1091_v10  ;;  %v1099_v10 = vld [vmem:[#allocation2 + $0x182] sm:$0xff]  ;;  %v1100_v11 = vld [vmem:[#allocation2 + $0x18a] sm:$0xff] }
  0xa6   : > { %v1264_v34 = vpop.permute.xlu0 %1263 }
  0xa7   : > { %1312 = vst.msk [vmem:[#allocation3] sm:$0xff] %vm1311_vm9, %v1264_v34  ;;  %v1266_v37 = vpop.permute.xlu1 %1265  ;;  %v966_v34 = vld [vmem:[#allocation2 + $0x151] sm:$0xff] }
  0xa8   : > { %1313 = vst.msk [vmem:[#allocation3 + $0x8] sm:$0xff] %vm1311_vm9, %v1266_v37  ;;  %891 = vrot.lane.b32.xlu0 %v1238_v51, %s2529_s6  ;;  %v1351_v51 = vld [vmem:[#allocation2 + $0x141] sm:$0xff]  ;;  %v985_v37 = vpack.c.bf16 %v967_v35, %v966_v34 }
  0xa9   : > { %893 = vrot.lane.b32.xlu1 %v2768_v21, %s2529_s6  ;;  %v1371_v18 = vpack.c.bf16 %v1351_v51, %v1350_v16 }
  0xaa   : > { %v1393_v39 = vpop.permute.xlu0 %1392 }
  0xab   : > { %1441 = vst.msk [vmem:[#allocation3] sm:$0xff] %vm1440_vm10, %v1393_v39  ;;  %v1395_v41 = vpop.permute.xlu1 %1394  ;;  %v1095_v39 = vld [vmem:[#allocation2 + $0x152] sm:$0xff] }
  0xac   : > { %1442 = vst.msk [vmem:[#allocation3 + $0x8] sm:$0xff] %vm1440_vm10, %v1395_v41  ;;  %1020 = vrot.lane.b32.xlu0 %v1367_v20, %s2530_s7  ;;  %v1114_v41 = vpack.c.bf16 %v1096_v61, %v1095_v39 }
  0xad   : > { %1022 = vrot.lane.b32.xlu1 %v981_v38, %s2530_s7 }
  0xae   : > { %v1522_v43 = vpop.permute.xlu0 %1521 }
  0xaf   : > { %1570 = vst.msk [vmem:[#allocation3] sm:$0xff] %vm1569_vm11, %v1522_v43  ;;  %v622_v46 = vpop.permute.xlu1 %621 }
  0xb0   : > { %668 = vst.msk [vmem:[#allocation3 + $0x10] sm:$0xff] %vm665_vm4, %v622_v46  ;;  %1149 = vrot.lane.b32.xlu0 %v1496_v28, %s2531_s8  ;;  %v1354_v46 = vld [vmem:[#allocation2 + $0x169] sm:$0xff] }
  0xb1   : > { %1151 = vrot.lane.b32.xlu1 %v1110_v42, %s2531_s8 }
  0xb2   : > { %v1524_v47 = vpop.permute.xlu0 %1523 }
  0xb3   : > { %1571 = vst.msk [vmem:[#allocation3 + $0x8] sm:$0xff] %vm1569_vm11, %v1524_v47  ;;  %v624_v52 = vpop.permute.xlu1 %623  ;;  %v1355_v47 = vld [vmem:[#allocation2 + $0x171] sm:$0xff] }
  0xb4   : > { %669 = vst.msk [vmem:[#allocation3 + $0x18] sm:$0xff] %vm665_vm4, %v624_v52  ;;  %1279 = vrot.lane.b32.xlu0 %v2768_v21, %s2532_s13  ;;  %v1476_v21 = vld [vmem:[#allocation2 + $0x112] sm:$0xff]  ;;  %v1373_v50 = vpack.c.bf16 %v1355_v47, %v1354_v46 }
  0xb5   : > { %1281 = vrot.lane.b32.xlu1 %v2805_v48, %s2532_s13  ;;  %v1498_v1 = vpack.c.bf16 %v1476_v21, %v1475_v56 }
  0xb6   : > { %v751_v54 = vpop.permute.xlu0 %750  ;;  %v1586_v3 = vld [vmem:[#allocation3] sm:$0xff] }
  0xb7   : > { %797 = vst.msk [vmem:[#allocation3 + $0x10] sm:$0xff] %vm794_vm5, %v751_v54  ;;  %v753_v55 = vpop.permute.xlu1 %752  ;;  %2458 = vmatprep.mubr.msk.bf16.mxu0 %vm1622_vm12, %v1586_v3  ;;  %v1483_v3 = vld [vmem:[#allocation2 + $0x16a] sm:$0xff] }
  0xb8   : > { %798 = vst.msk [vmem:[#allocation3 + $0x18] sm:$0xff] %vm794_vm5, %v753_v55  ;;  %1408 = vrot.lane.b32.xlu0 %v981_v38, %s2533_s16  ;;  %v1484_v55 = vld [vmem:[#allocation2 + $0x172] sm:$0xff] }
  0xb9   : > { %1410 = vrot.lane.b32.xlu1 %v1369_v53, %s2533_s16 }
  0xba   : > { %v880_v57 = vpop.permute.xlu0 %879  ;;  %v1587_v59 = vld [vmem:[#allocation3 + $0x8] sm:$0xff] }
  0xbb   : > { %926 = vst.msk [vmem:[#allocation3 + $0x10] sm:$0xff] %vm923_vm6, %v880_v57  ;;  %v882_v60 = vpop.permute.xlu1 %881  ;;  %2459 = vmatmul.mubr.msk.bf16.vlgmr.msra.gmra.mrb[0].mxu0 %vm1622_vm12, %v1587_v59  ;;  %v1502_v57 = vpack.c.bf16 %v1484_v55, %v1483_v3 }
  0xbc   : > { %927 = vst.msk [vmem:[#allocation3 + $0x18] sm:$0xff] %vm923_vm6, %v882_v60  ;;  %1537 = vrot.lane.b32.xlu0 %v1110_v42, %s2534_s17 }
  0xbd   : > { %637 = vrot.lane.b32.xlu1 %v981_v38, %s2527_s27 }
  0xbe   : > { %v1009_v62 = vpop.permute.xlu0 %1008 }
  0xbf   : > { %1055 = vst.msk [vmem:[#allocation3 + $0x10] sm:$0xff] %vm1052_vm7, %v1009_v62  ;;  %v1011_v15 = vpop.permute.xlu1 %1010  ;;  %v841_v62 = vld [vmem:[#allocation2 + $0x180] sm:$0xff] }
  0xc0   : > { %1056 = vst.msk [vmem:[#allocation3 + $0x18] sm:$0xff] %vm1052_vm7, %v1011_v15  ;;  %1539 = vrot.lane.b32.xlu0 %v1498_v1, %s2534_s17  ;;  %v842_v15 = vld [vmem:[#allocation2 + $0x188] sm:$0xff] }
  0xc1   : > { %639 = vrot.lane.b32.xlu1 %v1369_v53, %s2527_s27 }
  0xc2   : > { %v1138_v63 = vpop.permute.xlu0 %1137 }
  0xc3   : > { %1184 = vst.msk [vmem:[#allocation3 + $0x10] sm:$0xff] %vm1181_vm8, %v1138_v63  ;;  %v1140_v0 = vpop.permute.xlu1 %1139 }
  0xc4   : > { %1185 = vst.msk [vmem:[#allocation3 + $0x18] sm:$0xff] %vm1181_vm8, %v1140_v0  ;;  %766 = vrot.lane.b32.xlu0 %v1110_v42, %s2528_s30  ;;  %v858_v0 = vpack.c.bf16 %v842_v15, %v841_v62 }
  0xc5   : > { %768 = vrot.lane.b32.xlu1 %v1498_v1, %s2528_s30 }
  0xc6   : > { %v1268_v44 = vpop.permute.xlu0 %1267 }
  0xc7   : > { %1314 = vst.msk [vmem:[#allocation3 + $0x10] sm:$0xff] %vm1311_vm9, %v1268_v44  ;;  %v1270_v5 = vpop.permute.xlu1 %1269 }
  0xc8   : > { %1315 = vst.msk [vmem:[#allocation3 + $0x18] sm:$0xff] %vm1311_vm9, %v1270_v5  ;;  %895 = vrot.lane.b32.xlu0 %v2805_v48, %s2529_s6 }
  0xc9   : > { %897 = vrot.lane.b32.xlu1 %v2816_v58, %s2529_s6 }
  0xca   : > { %v1397_v8 = vpop.permute.xlu0 %1396 }
  0xcb   : > { %1443 = vst.msk [vmem:[#allocation3 + $0x10] sm:$0xff] %vm1440_vm10, %v1397_v8  ;;  %v1399_v12 = vpop.permute.xlu1 %1398 }
  0xcc   : > { %1444 = vst.msk [vmem:[#allocation3 + $0x18] sm:$0xff] %vm1440_vm10, %v1399_v12  ;;  %1024 = vrot.lane.b32.xlu0 %v1369_v53, %s2530_s7 }
  0xcd   : > { %1026 = vrot.lane.b32.xlu1 %v983_v6, %s2530_s7 }
  0xce   : > { %v1526_v14 = vpop.permute.xlu0 %1525 }
  0xcf   : > { %1572 = vst.msk [vmem:[#allocation3 + $0x10] sm:$0xff] %vm1569_vm11, %v1526_v14  ;;  %v626_v48 = vpop.permute.xlu1 %625 }
  0xd0   : > { %670 = vst.msk [vmem:[#allocation3 + $0x20] sm:$0xff] %vm665_vm4, %v626_v48  ;;  %1153 = vrot.lane.b32.xlu0 %v1498_v1, %s2531_s8  ;;  %v1229_v48 = vld [vmem:[#allocation2 + $0x198] sm:$0xff] }
  0xd1   : > { %1155 = vrot.lane.b32.xlu1 %v1112_v13, %s2531_s8 }
  0xd2   : > { %v1528_v9 = vpop.permute.xlu0 %1527 }
  0xd3   : > { %1573 = vst.msk [vmem:[#allocation3 + $0x18] sm:$0xff] %vm1569_vm11, %v1528_v9  ;;  %v628_v17 = vpop.permute.xlu1 %627  ;;  %v1230_v9 = vld [vmem:[#allocation2 + $0x1a0] sm:$0xff] }
  0xd4   : > { %671 = vst.msk [vmem:[#allocation3 + $0x28] sm:$0xff] %vm665_vm4, %v628_v17  ;;  %1283 = vrot.lane.b32.xlu0 %v2816_v58, %s2532_s13  ;;  %v1246_v16 = vpack.c.bf16 %v1230_v9, %v1229_v48  ;;  %v1358_v17 = vld [vmem:[#allocation2 + $0x199] sm:$0xff] }
  0xd5   : > { %1285 = vrot.lane.b32.xlu1 %v2829_v7, %s2532_s13 }
  0xd6   : > { %v755_v19 = vpop.permute.xlu0 %754  ;;  %v1588_v20 = vld [vmem:[#allocation3 + $0x10] sm:$0xff] }
  0xd7   : > { %799 = vst.msk [vmem:[#allocation3 + $0x20] sm:$0xff] %vm794_vm5, %v755_v19  ;;  %v757_v22 = vpop.permute.xlu1 %756  ;;  %2462 = vmatprep.mubr.msk.bf16.mxu0 %vm1622_vm12, %v1588_v20 }
  0xd8   : > { %800 = vst.msk [vmem:[#allocation3 + $0x28] sm:$0xff] %vm794_vm5, %v757_v22  ;;  %1412 = vrot.lane.b32.xlu0 %v983_v6, %s2533_s16 }
  0xd9   : > { %1414 = vrot.lane.b32.xlu1 %v1371_v18, %s2533_s16 }
  0xda   : > { %v884_v58 = vpop.permute.xlu0 %883  ;;  %v1589_v25 = vld [vmem:[#allocation3 + $0x18] sm:$0xff] }
  0xdb   : > { %928 = vst.msk [vmem:[#allocation3 + $0x20] sm:$0xff] %vm923_vm6, %v884_v58  ;;  %v886_v26 = vpop.permute.xlu1 %885  ;;  %2463 = vmatmul.mubr.msk.bf16.gmra.mrb[4].mxu0 %vm1622_vm12, %v1589_v25  ;;  %v1488_v58 = vld [vmem:[#allocation2 + $0x1a2] sm:$0xff] }
  0xdc   : > { %929 = vst.msk [vmem:[#allocation3 + $0x28] sm:$0xff] %vm923_vm6, %v886_v26  ;;  %1541 = vrot.lane.b32.xlu0 %v1112_v13, %s2534_s17  ;;  %v1504_v26 = vpack.c.bf16 %v1488_v58, %v1487_v24 }
  0xdd   : > { %641 = vrot.lane.b32.xlu1 %v983_v6, %s2527_s27  ;;  %v987_v6 = vpack.c.bf16 %v971_v4, %v970_v2 }
  0xde   : > { %v1013_v28 = vpop.permute.xlu0 %1012 }
  0xdf   : > { %1057 = vst.msk [vmem:[#allocation3 + $0x20] sm:$0xff] %vm1052_vm7, %v1013_v28  ;;  %v1015_v29 = vpop.permute.xlu1 %1014 }
  0xe0   : > { %1058 = vst.msk [vmem:[#allocation3 + $0x28] sm:$0xff] %vm1052_vm7, %v1015_v29  ;;  %1543 = vrot.lane.b32.xlu0 %v1500_v27, %s2534_s17 }
  0xe1   : > { %643 = vrot.lane.b32.xlu1 %v1371_v18, %s2527_s27 }
  0xe2   : > { %v1142_v30 = vpop.permute.xlu0 %1141 }
  0xe3   : > { %1186 = vst.msk [vmem:[#allocation3 + $0x20] sm:$0xff] %vm1181_vm8, %v1142_v30  ;;  %v1144_v31 = vpop.permute.xlu1 %1143 }
  0xe4   : > { %1187 = vst.msk [vmem:[#allocation3 + $0x28] sm:$0xff] %vm1181_vm8, %v1144_v31  ;;  %770 = vrot.lane.b32.xlu0 %v1112_v13, %s2528_s30  ;;  %v1116_v13 = vpack.c.bf16 %v1100_v11, %v1099_v10 }
  0xe5   : > { %772 = vrot.lane.b32.xlu1 %v1500_v27, %s2528_s30 }
  0xe6   : > { %v1272_v33 = vpop.permute.xlu0 %1271 }
  0xe7   : > { %1316 = vst.msk [vmem:[#allocation3 + $0x20] sm:$0xff] %vm1311_vm9, %v1272_v33  ;;  %v1274_v36 = vpop.permute.xlu1 %1273 }
  0xe8   : > { %1317 = vst.msk [vmem:[#allocation3 + $0x28] sm:$0xff] %vm1311_vm9, %v1274_v36  ;;  %899 = vrot.lane.b32.xlu0 %v2829_v7, %s2529_s6 }
  0xe9   : > { %901 = vrot.lane.b32.xlu1 %v2855_v32, %s2529_s6 }
  0xea   : > { %v1401_v38 = vpop.permute.xlu0 %1400 }
  0xeb   : > { %1445 = vst.msk [vmem:[#allocation3 + $0x20] sm:$0xff] %vm1440_vm10, %v1401_v38  ;;  %v1403_v40 = vpop.permute.xlu1 %1402 }
  0xec   : > { %1446 = vst.msk [vmem:[#allocation3 + $0x28] sm:$0xff] %vm1440_vm10, %v1403_v40  ;;  %1028 = vrot.lane.b32.xlu0 %v1371_v18, %s2530_s7  ;;  %v1359_v18 = vld [vmem:[#allocation2 + $0x1a1] sm:$0xff] }
  0xed   : > { %1030 = vrot.lane.b32.xlu1 %v985_v37, %s2530_s7  ;;  %v1375_v20 = vpack.c.bf16 %v1359_v18, %v1358_v17 }
  0xee   : > { %v1530_v42 = vpop.permute.xlu0 %1529 }
  0xef   : > { %1574 = vst.msk [vmem:[#allocation3 + $0x20] sm:$0xff] %vm1569_vm11, %v1530_v42  ;;  %v630_v7 = vpop.permute.xlu1 %629 }
  0xf0   : > { %672 = vst.msk [vmem:[#allocation3 + $0x30] sm:$0xff] %vm665_vm4, %v630_v7  ;;  %1157 = vrot.lane.b32.xlu0 %v1500_v27, %s2531_s8 }
  0xf1   : > { %1159 = vrot.lane.b32.xlu1 %v1114_v41, %s2531_s8 }
  0xf2   : > { %v1532_v43 = vpop.permute.xlu0 %1531 }
  0xf3   : > { %1575 = vst.msk [vmem:[#allocation3 + $0x28] sm:$0xff] %vm1569_vm11, %v1532_v43  ;;  %v632_v49 = vpop.permute.xlu1 %631 }
  0xf4   : > { %673 = vst.msk [vmem:[#allocation3 + $0x38] sm:$0xff] %vm665_vm4, %v632_v49  ;;  %1287 = vrot.lane.b32.xlu0 %v2855_v32, %s2532_s13 }
  0xf5   : > { %1289 = vrot.lane.b32.xlu1 %v2871_v45, %s2532_s13 }
  0xf6   : > { %v759_v52 = vpop.permute.xlu0 %758  ;;  %v1590_v53 = vld [vmem:[#allocation3 + $0x20] sm:$0xff] }
  0xf7   : > { %801 = vst.msk [vmem:[#allocation3 + $0x30] sm:$0xff] %vm794_vm5, %v759_v52  ;;  %v761_v54 = vpop.permute.xlu1 %760  ;;  %2466 = vmatprep.mubr.msk.bf16.mxu0 %vm1622_vm12, %v1590_v53 }
  0xf8   : > { %802 = vst.msk [vmem:[#allocation3 + $0x38] sm:$0xff] %vm794_vm5, %v761_v54  ;;  %1416 = vrot.lane.b32.xlu0 %v985_v37, %s2533_s16 }
  0xf9   : > { %1418 = vrot.lane.b32.xlu1 %v1373_v50, %s2533_s16 }
  0xfa   : > { %v888_v32 = vpop.permute.xlu0 %887  ;;  %v1591_v56 = vld [vmem:[#allocation3 + $0x28] sm:$0xff] }
  0xfb   : > { %930 = vst.msk [vmem:[#allocation3 + $0x30] sm:$0xff] %vm923_vm6, %v888_v32  ;;  %v890_v21 = vpop.permute.xlu1 %889  ;;  %2467 = vmatmul.mubr.msk.bf16.gmra.mrb[8].mxu0 %vm1622_vm12, %v1591_v56 }
  0xfc   : > { %931 = vst.msk [vmem:[#allocation3 + $0x38] sm:$0xff] %vm923_vm6, %v890_v21  ;;  %1545 = vrot.lane.b32.xlu0 %v1114_v41, %s2534_s17 }
  0xfd   : > { %645 = vrot.lane.b32.xlu1 %v985_v37, %s2527_s27 }
  0xfe   : > { %v1017_v59 = vpop.permute.xlu0 %1016 }
  0xff   : > { %1059 = vst.msk [vmem:[#allocation3 + $0x30] sm:$0xff] %vm1052_vm7, %v1017_v59  ;;  %v1019_v60 = vpop.permute.xlu1 %1018 }
 0x100   : > { %1060 = vst.msk [vmem:[#allocation3 + $0x38] sm:$0xff] %vm1052_vm7, %v1019_v60  ;;  %1547 = vrot.lane.b32.xlu0 %v1502_v57, %s2534_s17 }
 0x101   : > { %647 = vrot.lane.b32.xlu1 %v1373_v50, %s2527_s27 }
 0x102   : > { %v1146_v1 = vpop.permute.xlu0 %1145 }
 0x103   : > { %1188 = vst.msk [vmem:[#allocation3 + $0x30] sm:$0xff] %vm1181_vm8, %v1146_v1  ;;  %v1148_v63 = vpop.permute.xlu1 %1147 }
 0x104   : > { %1189 = vst.msk [vmem:[#allocation3 + $0x38] sm:$0xff] %vm1181_vm8, %v1148_v63  ;;  %774 = vrot.lane.b32.xlu0 %v1114_v41, %s2528_s30 }
 0x105   : > { %776 = vrot.lane.b32.xlu1 %v1502_v57, %s2528_s30 }
 0x106   : > { %v1276_v44 = vpop.permute.xlu0 %1275 }
 0x107   : > { %1318 = vst.msk [vmem:[#allocation3 + $0x30] sm:$0xff] %vm1311_vm9, %v1276_v44  ;;  %v1278_v5 = vpop.permute.xlu1 %1277 }
 0x108   : > { %1319 = vst.msk [vmem:[#allocation3 + $0x38] sm:$0xff] %vm1311_vm9, %v1278_v5  ;;  %903 = vrot.lane.b32.xlu0 %v2871_v45, %s2529_s6 }
 0x109   : > { %905 = vrot.lane.b32.xlu1 %v858_v0, %s2529_s6 }
 0x10a   : > { %v1405_v8 = vpop.permute.xlu0 %1404 }
 0x10b   : > { %1447 = vst.msk [vmem:[#allocation3 + $0x30] sm:$0xff] %vm1440_vm10, %v1405_v8  ;;  %v1407_v12 = vpop.permute.xlu1 %1406 }
 0x10c   : > { %1448 = vst.msk [vmem:[#allocation3 + $0x38] sm:$0xff] %vm1440_vm10, %v1407_v12  ;;  %1032 = vrot.lane.b32.xlu0 %v1373_v50, %s2530_s7 }
 0x10d   : > { %1034 = vrot.lane.b32.xlu1 %v987_v6, %s2530_s7 }
 0x10e   : > { %v1534_v14 = vpop.permute.xlu0 %1533 }
 0x10f   : > { %1576 = vst.msk [vmem:[#allocation3 + $0x30] sm:$0xff] %vm1569_vm11, %v1534_v14  ;;  %v634_v45 = vpop.permute.xlu1 %633 }
 0x110   : > { %674 = vst.msk [vmem:[#allocation3 + $0x40] sm:$0xff] %vm665_vm4, %v634_v45  ;;  %1161 = vrot.lane.b32.xlu0 %v1502_v57, %s2531_s8 }
 0x111   : > { %1163 = vrot.lane.b32.xlu1 %v1116_v13, %s2531_s8 }
 0x112   : > { %v1536_v51 = vpop.permute.xlu0 %1535 }
 0x113   : > { %1577 = vst.msk [vmem:[#allocation3 + $0x38] sm:$0xff] %vm1569_vm11, %v1536_v51  ;;  %v636_v19 = vpop.permute.xlu1 %635 }
 0x114   : > { %675 = vst.msk [vmem:[#allocation3 + $0x48] sm:$0xff] %vm665_vm4, %v636_v19  ;;  %1291 = vrot.lane.b32.xlu0 %v858_v0, %s2532_s13 }
 0x115   : > { %1293 = vrot.lane.b32.xlu1 %v1246_v16, %s2532_s13 }
 0x116   : > { %v763_v22 = vpop.permute.xlu0 %762  ;;  %v1592_v23 = vld [vmem:[#allocation3 + $0x30] sm:$0xff] }
 0x117   : > { %803 = vst.msk [vmem:[#allocation3 + $0x40] sm:$0xff] %vm794_vm5, %v763_v22  ;;  %v765_v25 = vpop.permute.xlu1 %764  ;;  %2470 = vmatprep.mubr.msk.bf16.mxu0 %vm1622_vm12, %v1592_v23 }
 0x118   : > { %804 = vst.msk [vmem:[#allocation3 + $0x48] sm:$0xff] %vm794_vm5, %v765_v25  ;;  %1420 = vrot.lane.b32.xlu0 %v987_v6, %s2533_s16 }
 0x119   : > { %1422 = vrot.lane.b32.xlu1 %v1375_v20, %s2533_s16 }
 0x11a   : > { %v892_v27 = vpop.permute.xlu0 %891  ;;  %v1593_v28 = vld [vmem:[#allocation3 + $0x38] sm:$0xff] }
 0x11b   : > { %932 = vst.msk [vmem:[#allocation3 + $0x40] sm:$0xff] %vm923_vm6, %v892_v27  ;;  %v894_v29 = vpop.permute.xlu1 %893  ;;  %2471 = vmatmul.mubr.msk.bf16.gmra.mrb[12].mxu0 %vm1622_vm12, %v1593_v28 }
 0x11c   : > { %933 = vst.msk [vmem:[#allocation3 + $0x48] sm:$0xff] %vm923_vm6, %v894_v29  ;;  %1549 = vrot.lane.b32.xlu0 %v1116_v13, %s2534_s17 }
 0x11d   : > { %1551 = vrot.lane.b32.xlu1 %v1504_v26, %s2534_s17 }
 0x11e   : > { %v1021_v30 = vpop.permute.xlu0 %1020 }
 0x11f   : > { %1061 = vst.msk [vmem:[#allocation3 + $0x40] sm:$0xff] %vm1052_vm7, %v1021_v30  ;;  %v1023_v31 = vpop.permute.xlu1 %1022 }
 0x120   : > { %1062 = vst.msk [vmem:[#allocation3 + $0x48] sm:$0xff] %vm1052_vm7, %v1023_v31 }
 0x122   : > { %v1150_v33 = vpop.permute.xlu0 %1149 }
 0x123   : > { %1190 = vst.msk [vmem:[#allocation3 + $0x40] sm:$0xff] %vm1181_vm8, %v1150_v33  ;;  %v1152_v34 = vpop.permute.xlu1 %1151 }
 0x124   : > { %1191 = vst.msk [vmem:[#allocation3 + $0x48] sm:$0xff] %vm1181_vm8, %v1152_v34 }
 0x126   : > { %v1280_v35 = vpop.permute.xlu0 %1279 }
 0x127   : > { %1320 = vst.msk [vmem:[#allocation3 + $0x40] sm:$0xff] %vm1311_vm9, %v1280_v35  ;;  %v1282_v36 = vpop.permute.xlu1 %1281 }
 0x128   : > { %1321 = vst.msk [vmem:[#allocation3 + $0x48] sm:$0xff] %vm1311_vm9, %v1282_v36 }
 0x12a   : > { %v1409_v37 = vpop.permute.xlu0 %1408 }
 0x12b   : > { %1449 = vst.msk [vmem:[#allocation3 + $0x40] sm:$0xff] %vm1440_vm10, %v1409_v37  ;;  %v1411_v38 = vpop.permute.xlu1 %1410 }
 0x12c   : > { %1450 = vst.msk [vmem:[#allocation3 + $0x48] sm:$0xff] %vm1440_vm10, %v1411_v38 }
 0x12e   : > { %v1538_v39 = vpop.permute.xlu0 %1537 }
 0x12f   : > { %1578 = vst.msk [vmem:[#allocation3 + $0x40] sm:$0xff] %vm1569_vm11, %v1538_v39  ;;  %v638_v61 = vpop.permute.xlu1 %637 }
 0x130   : > { %676 = vst.msk [vmem:[#allocation3 + $0x50] sm:$0xff] %vm665_vm4, %v638_v61 }
 0x132   : > { %v1540_v40 = vpop.permute.xlu0 %1539 }
 0x133   : > { %1579 = vst.msk [vmem:[#allocation3 + $0x48] sm:$0xff] %vm1569_vm11, %v1540_v40  ;;  %v640_v41 = vpop.permute.xlu1 %639 }
 0x134   : > { %677 = vst.msk [vmem:[#allocation3 + $0x58] sm:$0xff] %vm665_vm4, %v640_v41 }
 0x136   : > { %v767_v42 = vpop.permute.xlu0 %766  ;;  %v1594_v7 = vld [vmem:[#allocation3 + $0x40] sm:$0xff] }
 0x137   : > { %805 = vst.msk [vmem:[#allocation3 + $0x50] sm:$0xff] %vm794_vm5, %v767_v42  ;;  %v769_v43 = vpop.permute.xlu1 %768  ;;  %2474 = vmatprep.mubr.msk.bf16.mxu1 %vm1622_vm12, %v1594_v7 }
 0x138   : > { %806 = vst.msk [vmem:[#allocation3 + $0x58] sm:$0xff] %vm794_vm5, %v769_v43 }
 0x13a   : > { %v896_v46 = vpop.permute.xlu0 %895  ;;  %v1595_v47 = vld [vmem:[#allocation3 + $0x48] sm:$0xff] }
 0x13b   : > { %934 = vst.msk [vmem:[#allocation3 + $0x50] sm:$0xff] %vm923_vm6, %v896_v46  ;;  %v898_v49 = vpop.permute.xlu1 %897  ;;  %2475 = vmatmul.mubr.msk.bf16.vlgmr.msra.gmra.mrb[0].mxu1 %vm1622_vm12, %v1595_v47 }
 0x13c   : > { %935 = vst.msk [vmem:[#allocation3 + $0x58] sm:$0xff] %vm923_vm6, %v898_v49 }
 0x13e   : > { %v1025_v50 = vpop.permute.xlu0 %1024 }
 0x13f   : > { %1063 = vst.msk [vmem:[#allocation3 + $0x50] sm:$0xff] %vm1052_vm7, %v1025_v50  ;;  %v1027_v52 = vpop.permute.xlu1 %1026 }
 0x140   : > { %1064 = vst.msk [vmem:[#allocation3 + $0x58] sm:$0xff] %vm1052_vm7, %v1027_v52 }
 0x142   : > { %v1154_v53 = vpop.permute.xlu0 %1153 }
 0x143   : > { %1192 = vst.msk [vmem:[#allocation3 + $0x50] sm:$0xff] %vm1181_vm8, %v1154_v53  ;;  %v1156_v54 = vpop.permute.xlu1 %1155 }
 0x144   : > { %1193 = vst.msk [vmem:[#allocation3 + $0x58] sm:$0xff] %vm1181_vm8, %v1156_v54 }
 0x146   : > { %v1284_v3 = vpop.permute.xlu0 %1283 }
 0x147   : > { %1322 = vst.msk [vmem:[#allocation3 + $0x50] sm:$0xff] %vm1311_vm9, %v1284_v3  ;;  %v1286_v55 = vpop.permute.xlu1 %1285 }
 0x148   : > { %1323 = vst.msk [vmem:[#allocation3 + $0x58] sm:$0xff] %vm1311_vm9, %v1286_v55 }
 0x14a   : > { %v1413_v32 = vpop.permute.xlu0 %1412 }
 0x14b   : > { %1451 = vst.msk [vmem:[#allocation3 + $0x50] sm:$0xff] %vm1440_vm10, %v1413_v32  ;;  %v1415_v56 = vpop.permute.xlu1 %1414 }
 0x14c   : > { %1452 = vst.msk [vmem:[#allocation3 + $0x58] sm:$0xff] %vm1440_vm10, %v1415_v56 }
 0x14e   : > { %v1542_v21 = vpop.permute.xlu0 %1541 }
 0x14f   : > { %1580 = vst.msk [vmem:[#allocation3 + $0x50] sm:$0xff] %vm1569_vm11, %v1542_v21  ;;  %v642_v57 = vpop.permute.xlu1 %641 }
 0x150   : > { %678 = vst.msk [vmem:[#allocation3 + $0x60] sm:$0xff] %vm665_vm4, %v642_v57 }
 0x152   : > { %v1544_v59 = vpop.permute.xlu0 %1543 }
 0x153   : > { %1581 = vst.msk [vmem:[#allocation3 + $0x58] sm:$0xff] %vm1569_vm11, %v1544_v59  ;;  %v644_v60 = vpop.permute.xlu1 %643 }
 0x154   : > { %679 = vst.msk [vmem:[#allocation3 + $0x68] sm:$0xff] %vm665_vm4, %v644_v60 }
 0x156   : > { %v771_v1 = vpop.permute.xlu0 %770  ;;  %v1596_v62 = vld [vmem:[#allocation3 + $0x50] sm:$0xff] }
 0x157   : > { %807 = vst.msk [vmem:[#allocation3 + $0x60] sm:$0xff] %vm794_vm5, %v771_v1  ;;  %v773_v15 = vpop.permute.xlu1 %772  ;;  %2478 = vmatprep.mubr.msk.bf16.mxu1 %vm1622_vm12, %v1596_v62 }
 0x158   : > { %808 = vst.msk [vmem:[#allocation3 + $0x68] sm:$0xff] %vm794_vm5, %v773_v15 }
 0x15a   : > { %v900_v63 = vpop.permute.xlu0 %899  ;;  %v1597_v0 = vld [vmem:[#allocation3 + $0x58] sm:$0xff] }
 0x15b   : > { %936 = vst.msk [vmem:[#allocation3 + $0x60] sm:$0xff] %vm923_vm6, %v900_v63  ;;  %v902_v44 = vpop.permute.xlu1 %901  ;;  %2479 = vmatmul.mubr.msk.bf16.gmra.mrb[4].mxu1 %vm1622_vm12, %v1597_v0 }
 0x15c   : > { %937 = vst.msk [vmem:[#allocation3 + $0x68] sm:$0xff] %vm923_vm6, %v902_v44 }
 0x15e   : > { %v1029_v2 = vpop.permute.xlu0 %1028 }
 0x15f   : > { %1065 = vst.msk [vmem:[#allocation3 + $0x60] sm:$0xff] %vm1052_vm7, %v1029_v2  ;;  %v1031_v4 = vpop.permute.xlu1 %1030 }
 0x160   : > { %1066 = vst.msk [vmem:[#allocation3 + $0x68] sm:$0xff] %vm1052_vm7, %v1031_v4 }
 0x162   : > { %v1158_v5 = vpop.permute.xlu0 %1157 }
 0x163   : > { %1194 = vst.msk [vmem:[#allocation3 + $0x60] sm:$0xff] %vm1181_vm8, %v1158_v5  ;;  %v1160_v6 = vpop.permute.xlu1 %1159 }
 0x164   : > { %1195 = vst.msk [vmem:[#allocation3 + $0x68] sm:$0xff] %vm1181_vm8, %v1160_v6 }
 0x166   : > { %v1288_v8 = vpop.permute.xlu0 %1287 }
 0x167   : > { %1324 = vst.msk [vmem:[#allocation3 + $0x60] sm:$0xff] %vm1311_vm9, %v1288_v8  ;;  %v1290_v10 = vpop.permute.xlu1 %1289 }
 0x168   : > { %1325 = vst.msk [vmem:[#allocation3 + $0x68] sm:$0xff] %vm1311_vm9, %v1290_v10 }
 0x16a   : > { %v1417_v11 = vpop.permute.xlu0 %1416 }
 0x16b   : > { %1453 = vst.msk [vmem:[#allocation3 + $0x60] sm:$0xff] %vm1440_vm10, %v1417_v11  ;;  %v1419_v12 = vpop.permute.xlu1 %1418 }
 0x16c   : > { %1454 = vst.msk [vmem:[#allocation3 + $0x68] sm:$0xff] %vm1440_vm10, %v1419_v12 }
 0x16e   : > { %v1546_v13 = vpop.permute.xlu0 %1545 }
 0x16f   : > { %1582 = vst.msk [vmem:[#allocation3 + $0x60] sm:$0xff] %vm1569_vm11, %v1546_v13  ;;  %v646_v14 = vpop.permute.xlu1 %645 }
 0x170   : > { %680 = vst.msk [vmem:[#allocation3 + $0x70] sm:$0xff] %vm665_vm4, %v646_v14 }
 0x172   : > { %v1548_v48 = vpop.permute.xlu0 %1547 }
 0x173   : > { %1583 = vst.msk [vmem:[#allocation3 + $0x68] sm:$0xff] %vm1569_vm11, %v1548_v48  ;;  %v648_v9 = vpop.permute.xlu1 %647 }
 0x174   : > { %681 = vst.msk [vmem:[#allocation3 + $0x78] sm:$0xff] %vm665_vm4, %v648_v9 }
 0x176   : > { %v775_v45 = vpop.permute.xlu0 %774  ;;  %v1598_v16 = vld [vmem:[#allocation3 + $0x60] sm:$0xff] }
 0x177   : > { %809 = vst.msk [vmem:[#allocation3 + $0x70] sm:$0xff] %vm794_vm5, %v775_v45  ;;  %v777_v51 = vpop.permute.xlu1 %776  ;;  %2482 = vmatprep.mubr.msk.bf16.mxu1 %vm1622_vm12, %v1598_v16 }
 0x178   : > { %810 = vst.msk [vmem:[#allocation3 + $0x78] sm:$0xff] %vm794_vm5, %v777_v51 }
 0x17a   : > { %v904_v17 = vpop.permute.xlu0 %903  ;;  %v1599_v18 = vld [vmem:[#allocation3 + $0x68] sm:$0xff] }
 0x17b   : > { %938 = vst.msk [vmem:[#allocation3 + $0x70] sm:$0xff] %vm923_vm6, %v904_v17  ;;  %v906_v19 = vpop.permute.xlu1 %905  ;;  %2483 = vmatmul.mubr.msk.bf16.gmra.mrb[8].mxu1 %vm1622_vm12, %v1599_v18 }
 0x17c   : > { %939 = vst.msk [vmem:[#allocation3 + $0x78] sm:$0xff] %vm923_vm6, %v906_v19 }
 0x17e   : > { %v1033_v20 = vpop.permute.xlu0 %1032 }
 0x17f   : > { %1067 = vst.msk [vmem:[#allocation3 + $0x70] sm:$0xff] %vm1052_vm7, %v1033_v20  ;;  %v1035_v22 = vpop.permute.xlu1 %1034 }
 0x180   : > { %1068 = vst.msk [vmem:[#allocation3 + $0x78] sm:$0xff] %vm1052_vm7, %v1035_v22 }
 0x182   : > { %v1162_v23 = vpop.permute.xlu0 %1161 }
 0x183   : > { %1196 = vst.msk [vmem:[#allocation3 + $0x70] sm:$0xff] %vm1181_vm8, %v1162_v23  ;;  %v1164_v24 = vpop.permute.xlu1 %1163 }
 0x184   : > { %1197 = vst.msk [vmem:[#allocation3 + $0x78] sm:$0xff] %vm1181_vm8, %v1164_v24 }
 0x186   : > { %v1292_v58 = vpop.permute.xlu0 %1291 }
 0x187   : > { %1326 = vst.msk [vmem:[#allocation3 + $0x70] sm:$0xff] %vm1311_vm9, %v1292_v58  ;;  %v1294_v25 = vpop.permute.xlu1 %1293 }
 0x188   : > { %1327 = vst.msk [vmem:[#allocation3 + $0x78] sm:$0xff] %vm1311_vm9, %v1294_v25 }
 0x18a   : > { %v1421_v26 = vpop.permute.xlu0 %1420 }
 0x18b   : > { %1455 = vst.msk [vmem:[#allocation3 + $0x70] sm:$0xff] %vm1440_vm10, %v1421_v26  ;;  %v1423_v27 = vpop.permute.xlu1 %1422 }
 0x18c   : > { %1456 = vst.msk [vmem:[#allocation3 + $0x78] sm:$0xff] %vm1440_vm10, %v1423_v27 }
 0x18e   : > { %v1550_v28 = vpop.permute.xlu0 %1549  ;;  %v2460_v29 = vpop.f32.mrb[0].mxu0 }
 0x18f   : > { %1584 = vst.msk [vmem:[#allocation3 + $0x70] sm:$0xff] %vm1569_vm11, %v1550_v28  ;;  %v2324_v30 = vpack.c.bf16 %v2460_v29, %v2460_v29  ;;  %v1552_v31 = vpop.permute.xlu1 %1551  ;;  %v1709_v33 = vpop.f32.mrb[1].mxu0  ;;  %v1907_v37 = vmul.f32 %v2460_v29, %v2460_v29  ;;  %v1839_v43 = vsel %vm415_vm0, %v2460_v29, 0.0 }
 0x190   : > { %1585 = vst.msk [vmem:[#allocation3 + $0x78] sm:$0xff] %vm1569_vm11, %v1552_v31  ;;  %v1905_v34 = vmul.f32 %v1709_v33, %v1709_v33  ;;  %v2322_v35 = vpack.c.bf16 %v1709_v33, %v1709_v33  ;;  %v2461_v36 = vpop.f32.mrb[2].mxu0  ;;  %v1836_v61 = vsel %vm415_vm0, %v1709_v33, 0.0 }
 0x191   : > { %2140 = vst.msk [vmem:[%s3130_s24 + $0x8] sm:$0xf] %vm2137_vm13, %v2324_v30  ;;  %v2325_v38 = vpack.c.bf16 %v2461_v36, %v2461_v36  ;;  %v1712_v39 = vpop.f32.mrb[3].mxu0  ;;  %v1908_v47 = vmul.f32 %v2461_v36, %v2461_v36  ;;  %v1940_v53 = vsel %vm415_vm0, %v1907_v37, 0.0  ;;  %v1841_v54 = vsel %vm415_vm0, %v2461_v36, 0.0 }
 0x192   : > { %2138 = vst.msk [vmem:[%s3130_s24] sm:$0xf] %vm2137_vm13, %v2322_v35  ;;  %v1837_v40 = vsel %vm415_vm0, %v1712_v39, 0.0  ;;  %v1906_v41 = vmul.f32 %v1712_v39, %v1712_v39  ;;  %v2323_v42 = vpack.c.bf16 %v1712_v39, %v1712_v39  ;;  %v1937_v46 = vsel %vm415_vm0, %v1905_v34, 0.0 }
 0x193   : > { %2141 = vst.msk [vmem:[%s3130_s24 + $0xc] sm:$0xf] %vm2137_vm13, %v2325_v38  ;;  %v1838_v7 = vadd.f32 %v1837_v40, %v1836_v61  ;;  %v1942_v21 = vsel %vm415_vm0, %v1908_v47, 0.0 }
 0x194   : > { %v1938_v49 = vsel %vm415_vm0, %v1906_v41, 0.0  ;;  %2139 = vst.msk [vmem:[%s3130_s24 + $0x4] sm:$0xf] %vm2137_vm13, %v2323_v42 }
 0x195   : > { %v1840_v50 = vadd.f32 %v1839_v43, %v1838_v7  ;;  %v1939_v52 = vadd.f32 %v1938_v49, %v1937_v46 }
 0x196   : > { %v1600_v3 = vld [vmem:[#allocation3 + $0x70] sm:$0xff] }
 0x197   : > { %v1941_v55 = vadd.f32 %v1940_v53, %v1939_v52  ;;  %2486 = vmatprep.mubr.msk.bf16.mxu1 %vm1622_vm12, %v1600_v3  ;;  %v1601_v32 = vld [vmem:[#allocation3 + $0x78] sm:$0xff]  ;;  %v1842_v56 = vadd.f32 %v1841_v54, %v1840_v50 }
 0x198   : > { %2487 = vmatmul.mubr.msk.bf16.gmra.mrb[12].mxu1 %vm1622_vm12, %v1601_v32 }
 0x199   : > { %v1943_v57 = vadd.f32 %v1942_v21, %v1941_v55 }
 0x1ae   : > { %v2464_v59 = vpop.f32.mrb[4].mxu0 }
 0x1af   : > { %v2328_v60 = vpack.c.bf16 %v2464_v59, %v2464_v59  ;;  %v1725_v1 = vpop.f32.mrb[5].mxu0  ;;  %v1911_v44 = vmul.f32 %v2464_v59, %v2464_v59  ;;  %v1847_v14 = vsel %vm415_vm0, %v2464_v59, 0.0 }
 0x1b0   : > { %v1843_v62 = vsel %vm415_vm0, %v1725_v1, 0.0  ;;  %v1909_v15 = vmul.f32 %v1725_v1, %v1725_v1  ;;  %v2326_v63 = vpack.c.bf16 %v1725_v1, %v1725_v1  ;;  %v2465_v0 = vpop.f32.mrb[6].mxu0 }
 0x1b1   : > { %2144 = vst.msk [vmem:[%s3130_s24 + $0x18] sm:$0xf] %vm2137_vm13, %v2328_v60  ;;  %v1844_v2 = vadd.f32 %v1843_v62, %v1842_v56  ;;  %v1728_v4 = vpop.f32.mrb[7].mxu0  ;;  %v2329_v6 = vpack.c.bf16 %v2465_v0, %v2465_v0  ;;  %v1912_v48 = vmul.f32 %v2465_v0, %v2465_v0  ;;  %v1948_v51 = vsel %vm415_vm0, %v1911_v44, 0.0 }
 0x1b2   : > { %v1944_v5 = vsel %vm415_vm0, %v1909_v15, 0.0  ;;  %2142 = vst.msk [vmem:[%s3130_s24 + $0x10] sm:$0xf] %vm2137_vm13, %v2326_v63  ;;  %v1845_v8 = vsel %vm415_vm0, %v1728_v4, 0.0  ;;  %v1910_v10 = vmul.f32 %v1728_v4, %v1728_v4  ;;  %v2327_v13 = vpack.c.bf16 %v1728_v4, %v1728_v4 }
 0x1b3   : > { %v1945_v11 = vadd.f32 %v1944_v5, %v1943_v57  ;;  %v1846_v12 = vadd.f32 %v1845_v8, %v1844_v2  ;;  %2145 = vst.msk [vmem:[%s3130_s24 + $0x1c] sm:$0xf] %vm2137_vm13, %v2329_v6  ;;  %v1849_v17 = vsel %vm415_vm0, %v2465_v0, 0.0  ;;  %v1950_v20 = vsel %vm415_vm0, %v1912_v48, 0.0 }
 0x1b4   : > { %v1946_v9 = vsel %vm415_vm0, %v1910_v10, 0.0  ;;  %2143 = vst.msk [vmem:[%s3130_s24 + $0x14] sm:$0xf] %vm2137_vm13, %v2327_v13 }
 0x1b5   : > { %v1848_v45 = vadd.f32 %v1847_v14, %v1846_v12  ;;  %v1947_v16 = vadd.f32 %v1946_v9, %v1945_v11 }
 0x1b7   : > { %v1949_v18 = vadd.f32 %v1948_v51, %v1947_v16  ;;  %v1850_v19 = vadd.f32 %v1849_v17, %v1848_v45 }
 0x1b9   : > { %v1951_v22 = vadd.f32 %v1950_v20, %v1949_v18 }
 0x1ce   : > { %v2468_v23 = vpop.f32.mrb[8].mxu0 }
 0x1cf   : > { %v2332_v24 = vpack.c.bf16 %v2468_v23, %v2468_v23  ;;  %v1741_v58 = vpop.f32.mrb[9].mxu0  ;;  %v1915_v29 = vmul.f32 %v2468_v23, %v2468_v23  ;;  %v1855_v61 = vsel %vm415_vm0, %v2468_v23, 0.0 }
 0x1d0   : > { %v1851_v25 = vsel %vm415_vm0, %v1741_v58, 0.0  ;;  %v1913_v26 = vmul.f32 %v1741_v58, %v1741_v58  ;;  %v2330_v27 = vpack.c.bf16 %v1741_v58, %v1741_v58  ;;  %v2469_v28 = vpop.f32.mrb[10].mxu0 }
 0x1d1   : > { %2148 = vst.msk [vmem:[%s3130_s24 + $0x28] sm:$0xf] %vm2137_vm13, %v2332_v24  ;;  %v1852_v30 = vadd.f32 %v1851_v25, %v1850_v19  ;;  %v1744_v31 = vpop.f32.mrb[11].mxu0  ;;  %v2333_v34 = vpack.c.bf16 %v2469_v28, %v2469_v28  ;;  %v1916_v40 = vmul.f32 %v2469_v28, %v2469_v28  ;;  %v1956_v43 = vsel %vm415_vm0, %v1915_v29, 0.0 }
 0x1d2   : > { %v1952_v33 = vsel %vm415_vm0, %v1913_v26, 0.0  ;;  %2146 = vst.msk [vmem:[%s3130_s24 + $0x20] sm:$0xf] %vm2137_vm13, %v2330_v27  ;;  %v1853_v35 = vsel %vm415_vm0, %v1744_v31, 0.0  ;;  %v1914_v36 = vmul.f32 %v1744_v31, %v1744_v31  ;;  %v2331_v39 = vpack.c.bf16 %v1744_v31, %v1744_v31 }
 0x1d3   : > { %v1953_v37 = vadd.f32 %v1952_v33, %v1951_v22  ;;  %v1854_v38 = vadd.f32 %v1853_v35, %v1852_v30  ;;  %2149 = vst.msk [vmem:[%s3130_s24 + $0x2c] sm:$0xf] %vm2137_vm13, %v2333_v34  ;;  %v1857_v46 = vsel %vm415_vm0, %v2469_v28, 0.0  ;;  %v1958_v50 = vsel %vm415_vm0, %v1916_v40, 0.0 }
 0x1d4   : > { %v1954_v41 = vsel %vm415_vm0, %v1914_v36, 0.0  ;;  %2147 = vst.msk [vmem:[%s3130_s24 + $0x24] sm:$0xf] %vm2137_vm13, %v2331_v39 }
 0x1d5   : > { %v1856_v42 = vadd.f32 %v1855_v61, %v1854_v38  ;;  %v1955_v7 = vadd.f32 %v1954_v41, %v1953_v37 }
 0x1d7   : > { %v1957_v47 = vadd.f32 %v1956_v43, %v1955_v7  ;;  %v1858_v49 = vadd.f32 %v1857_v46, %v1856_v42 }
 0x1d9   : > { %v1959_v52 = vadd.f32 %v1958_v50, %v1957_v47 }
 0x1ee   : > { %v2472_v53 = vpop.f32.mrb[12].mxu0 }
 0x1ef   : > { %v2336_v54 = vpack.c.bf16 %v2472_v53, %v2472_v53  ;;  %v1757_v3 = vpop.f32.mrb[13].mxu0  ;;  %v1919_v57 = vmul.f32 %v2472_v53, %v2472_v53  ;;  %v1863_v4 = vsel %vm415_vm0, %v2472_v53, 0.0 }
 0x1f0   : > { %v1859_v55 = vsel %vm415_vm0, %v1757_v3, 0.0  ;;  %v1917_v32 = vmul.f32 %v1757_v3, %v1757_v3  ;;  %v2334_v56 = vpack.c.bf16 %v1757_v3, %v1757_v3  ;;  %v2473_v21 = vpop.f32.mrb[14].mxu0 }
 0x1f1   : > { %2152 = vst.msk [vmem:[%s3130_s24 + $0x38] sm:$0xf] %vm2137_vm13, %v2336_v54  ;;  %v1860_v59 = vadd.f32 %v1859_v55, %v1858_v49  ;;  %v1760_v60 = vpop.f32.mrb[15].mxu0  ;;  %v2337_v62 = vpack.c.bf16 %v2473_v21, %v2473_v21  ;;  %v1920_v5 = vmul.f32 %v2473_v21, %v2473_v21  ;;  %v1964_v11 = vsel %vm415_vm0, %v1919_v57, 0.0 }
 0x1f2   : > { %v1960_v1 = vsel %vm415_vm0, %v1917_v32, 0.0  ;;  %2150 = vst.msk [vmem:[%s3130_s24 + $0x30] sm:$0xf] %vm2137_vm13, %v2334_v56  ;;  %v1861_v15 = vsel %vm415_vm0, %v1760_v60, 0.0  ;;  %v1918_v63 = vmul.f32 %v1760_v60, %v1760_v60  ;;  %v2335_v2 = vpack.c.bf16 %v1760_v60, %v1760_v60 }
 0x1f3   : > { %v1961_v0 = vadd.f32 %v1960_v1, %v1959_v52  ;;  %v1862_v44 = vadd.f32 %v1861_v15, %v1860_v59  ;;  %2153 = vst.msk [vmem:[%s3130_s24 + $0x3c] sm:$0xf] %vm2137_vm13, %v2337_v62  ;;  %v1865_v12 = vsel %vm415_vm0, %v2473_v21, 0.0  ;;  %v1966_v48 = vsel %vm415_vm0, %v1920_v5, 0.0 }
 0x1f4   : > { %v1962_v6 = vsel %vm415_vm0, %v1918_v63, 0.0  ;;  %2151 = vst.msk [vmem:[%s3130_s24 + $0x34] sm:$0xf] %vm2137_vm13, %v2335_v2 }
 0x1f5   : > { %v1864_v8 = vadd.f32 %v1863_v4, %v1862_v44  ;;  %v1963_v10 = vadd.f32 %v1962_v6, %v1961_v0 }
 0x1f7   : > { %v1965_v13 = vadd.f32 %v1964_v11, %v1963_v10  ;;  %v1866_v14 = vadd.f32 %v1865_v12, %v1864_v8 }
 0x1f9   : > { %v1967_v9 = vadd.f32 %v1966_v48, %v1965_v13 }
 0x20e   : > { %v2476_v45 = vpop.f32.mrb[0].mxu1 }
 0x20f   : > { %v2340_v16 = vpack.c.bf16 %v2476_v45, %v2476_v45  ;;  %v1773_v51 = vpop.f32.mrb[1].mxu1  ;;  %v1923_v22 = vmul.f32 %v2476_v45, %v2476_v45  ;;  %v1871_v31 = vsel %vm415_vm0, %v2476_v45, 0.0 }
 0x210   : > { %v1867_v17 = vsel %vm415_vm0, %v1773_v51, 0.0  ;;  %v1921_v18 = vmul.f32 %v1773_v51, %v1773_v51  ;;  %v2338_v19 = vpack.c.bf16 %v1773_v51, %v1773_v51  ;;  %v2477_v20 = vpop.f32.mrb[2].mxu1 }
 0x211   : > { %2156 = vst.msk [vmem:[%s3130_s24 + $0x48] sm:$0xf] %vm2137_vm13, %v2340_v16  ;;  %v1868_v23 = vadd.f32 %v1867_v17, %v1866_v14  ;;  %v1776_v24 = vpop.f32.mrb[3].mxu1  ;;  %v2341_v25 = vpack.c.bf16 %v2477_v20, %v2477_v20  ;;  %v1924_v33 = vmul.f32 %v2477_v20, %v2477_v20  ;;  %v1972_v37 = vsel %vm415_vm0, %v1923_v22, 0.0 }
 0x212   : > { %v1968_v58 = vsel %vm415_vm0, %v1921_v18, 0.0  ;;  %2154 = vst.msk [vmem:[%s3130_s24 + $0x40] sm:$0xf] %vm2137_vm13, %v2338_v19  ;;  %v1869_v26 = vsel %vm415_vm0, %v1776_v24, 0.0  ;;  %v1922_v27 = vmul.f32 %v1776_v24, %v1776_v24  ;;  %v2339_v30 = vpack.c.bf16 %v1776_v24, %v1776_v24 }
 0x213   : > { %v1969_v28 = vadd.f32 %v1968_v58, %v1967_v9  ;;  %v1870_v29 = vadd.f32 %v1869_v26, %v1868_v23  ;;  %2157 = vst.msk [vmem:[%s3130_s24 + $0x4c] sm:$0xf] %vm2137_vm13, %v2341_v25  ;;  %v1873_v38 = vsel %vm415_vm0, %v2477_v20, 0.0  ;;  %v1974_v40 = vsel %vm415_vm0, %v1924_v33, 0.0 }
 0x214   : > { %v1970_v34 = vsel %vm415_vm0, %v1922_v27, 0.0  ;;  %2155 = vst.msk [vmem:[%s3130_s24 + $0x44] sm:$0xf] %vm2137_vm13, %v2339_v30 }
 0x215   : > { %v1872_v35 = vadd.f32 %v1871_v31, %v1870_v29  ;;  %v1971_v36 = vadd.f32 %v1970_v34, %v1969_v28 }
 0x217   : > { %v1973_v39 = vadd.f32 %v1972_v37, %v1971_v36  ;;  %v1874_v61 = vadd.f32 %v1873_v38, %v1872_v35 }
 0x219   : > { %v1975_v41 = vadd.f32 %v1974_v40, %v1973_v39 }
 0x22e   : > { %v2480_v42 = vpop.f32.mrb[4].mxu1 }
 0x22f   : > { %v2344_v7 = vpack.c.bf16 %v2480_v42, %v2480_v42  ;;  %v1789_v43 = vpop.f32.mrb[5].mxu1  ;;  %v1927_v52 = vmul.f32 %v2480_v42, %v2480_v42  ;;  %v1879_v60 = vsel %vm415_vm0, %v2480_v42, 0.0 }
 0x230   : > { %v1875_v46 = vsel %vm415_vm0, %v1789_v43, 0.0  ;;  %v1925_v47 = vmul.f32 %v1789_v43, %v1789_v43  ;;  %v2342_v49 = vpack.c.bf16 %v1789_v43, %v1789_v43  ;;  %v2481_v50 = vpop.f32.mrb[6].mxu1 }
 0x231   : > { %2160 = vst.msk [vmem:[%s3130_s24 + $0x58] sm:$0xf] %vm2137_vm13, %v2344_v7  ;;  %v1876_v53 = vadd.f32 %v1875_v46, %v1874_v61  ;;  %v1792_v54 = vpop.f32.mrb[7].mxu1  ;;  %v2345_v55 = vpack.c.bf16 %v2481_v50, %v2481_v50  ;;  %v1928_v1 = vmul.f32 %v2481_v50, %v2481_v50  ;;  %v1980_v0 = vsel %vm415_vm0, %v1927_v52, 0.0 }
 0x232   : > { %v1976_v3 = vsel %vm415_vm0, %v1925_v47, 0.0  ;;  %2158 = vst.msk [vmem:[%s3130_s24 + $0x50] sm:$0xf] %vm2137_vm13, %v2342_v49  ;;  %v1877_v32 = vsel %vm415_vm0, %v1792_v54, 0.0  ;;  %v1926_v56 = vmul.f32 %v1792_v54, %v1792_v54  ;;  %v2343_v59 = vpack.c.bf16 %v1792_v54, %v1792_v54 }
 0x233   : > { %v1977_v21 = vadd.f32 %v1976_v3, %v1975_v41  ;;  %v1878_v57 = vadd.f32 %v1877_v32, %v1876_v53  ;;  %2161 = vst.msk [vmem:[%s3130_s24 + $0x5c] sm:$0xf] %vm2137_vm13, %v2345_v55  ;;  %v1881_v44 = vsel %vm415_vm0, %v2481_v50, 0.0  ;;  %v1982_v5 = vsel %vm415_vm0, %v1928_v1, 0.0 }
 0x234   : > { %v1978_v62 = vsel %vm415_vm0, %v1926_v56, 0.0  ;;  %2159 = vst.msk [vmem:[%s3130_s24 + $0x54] sm:$0xf] %vm2137_vm13, %v2343_v59 }
 0x235   : > { %v1880_v15 = vadd.f32 %v1879_v60, %v1878_v57  ;;  %v1979_v63 = vadd.f32 %v1978_v62, %v1977_v21 }
 0x237   : > { %v1981_v2 = vadd.f32 %v1980_v0, %v1979_v63  ;;  %v1882_v4 = vadd.f32 %v1881_v44, %v1880_v15 }
 0x239   : > { %v1983_v6 = vadd.f32 %v1982_v5, %v1981_v2 }
 0x24e   : > { %v2484_v8 = vpop.f32.mrb[8].mxu1 }
 0x24f   : > { %v2348_v10 = vpack.c.bf16 %v2484_v8, %v2484_v8  ;;  %v1805_v11 = vpop.f32.mrb[9].mxu1  ;;  %v1931_v9 = vmul.f32 %v2484_v8, %v2484_v8  ;;  %v1887_v24 = vsel %vm415_vm0, %v2484_v8, 0.0 }
 0x250   : > { %v1883_v12 = vsel %vm415_vm0, %v1805_v11, 0.0  ;;  %v1929_v13 = vmul.f32 %v1805_v11, %v1805_v11  ;;  %v2346_v14 = vpack.c.bf16 %v1805_v11, %v1805_v11  ;;  %v2485_v48 = vpop.f32.mrb[10].mxu1 }
 0x251   : > { %2164 = vst.msk [vmem:[%s3130_s24 + $0x68] sm:$0xf] %vm2137_vm13, %v2348_v10  ;;  %v1884_v45 = vadd.f32 %v1883_v12, %v1882_v4  ;;  %v1808_v16 = vpop.f32.mrb[11].mxu1  ;;  %v2349_v17 = vpack.c.bf16 %v2485_v48, %v2485_v48  ;;  %v1932_v58 = vmul.f32 %v2485_v48, %v2485_v48  ;;  %v1988_v28 = vsel %vm415_vm0, %v1931_v9, 0.0 }
 0x252   : > { %v1984_v51 = vsel %vm415_vm0, %v1929_v13, 0.0  ;;  %2162 = vst.msk [vmem:[%s3130_s24 + $0x60] sm:$0xf] %vm2137_vm13, %v2346_v14  ;;  %v1885_v18 = vsel %vm415_vm0, %v1808_v16, 0.0  ;;  %v1930_v19 = vmul.f32 %v1808_v16, %v1808_v16  ;;  %v2347_v23 = vpack.c.bf16 %v1808_v16, %v1808_v16 }
 0x253   : > { %v1985_v20 = vadd.f32 %v1984_v51, %v1983_v6  ;;  %v1886_v22 = vadd.f32 %v1885_v18, %v1884_v45  ;;  %2165 = vst.msk [vmem:[%s3130_s24 + $0x6c] sm:$0xf] %vm2137_vm13, %v2349_v17  ;;  %v1889_v29 = vsel %vm415_vm0, %v2485_v48, 0.0  ;;  %v1990_v33 = vsel %vm415_vm0, %v1932_v58, 0.0 }
 0x254   : > { %v1986_v25 = vsel %vm415_vm0, %v1930_v19, 0.0  ;;  %2163 = vst.msk [vmem:[%s3130_s24 + $0x64] sm:$0xf] %vm2137_vm13, %v2347_v23 }
 0x255   : > { %v1888_v26 = vadd.f32 %v1887_v24, %v1886_v22  ;;  %v1987_v27 = vadd.f32 %v1986_v25, %v1985_v20 }
 0x257   : > { %v1989_v30 = vadd.f32 %v1988_v28, %v1987_v27  ;;  %v1890_v31 = vadd.f32 %v1889_v29, %v1888_v26 }
 0x259   : > { %v1991_v34 = vadd.f32 %v1990_v33, %v1989_v30 }
 0x26b   : > { %v2488_v35 = vpop.f32.mrb[12].mxu1 }
 0x26c   : > { %v2352_v36 = vpack.c.bf16 %v2488_v35, %v2488_v35  ;;  %v1821_v37 = vpop.f32.mrb[13].mxu1  ;;  %v1935_v41 = vmul.f32 %v2488_v35, %v2488_v35  ;;  %v1895_v54 = vsel %vm415_vm0, %v2488_v35, 0.0 }
 0x26d   : > { %v1891_v38 = vsel %vm415_vm0, %v1821_v37, 0.0  ;;  %v1933_v39 = vmul.f32 %v1821_v37, %v1821_v37  ;;  %v2350_v61 = vpack.c.bf16 %v1821_v37, %v1821_v37  ;;  %v2489_v40 = vpop.f32.mrb[14].mxu1 }
 0x26e   : > { %2168 = vst.msk [vmem:[%s3130_s24 + $0x78] sm:$0xf] %vm2137_vm13, %v2352_v36  ;;  %v1892_v42 = vadd.f32 %v1891_v38, %v1890_v31  ;;  %v1824_v7 = vpop.f32.mrb[15].mxu1  ;;  %v2353_v46 = vpack.c.bf16 %v2489_v40, %v2489_v40  ;;  %v1936_v3 = vmul.f32 %v2489_v40, %v2489_v40  ;;  %v1996_v21 = vsel %vm415_vm0, %v1935_v41, 0.0 }
 0x26f   : > { %v1992_v43 = vsel %vm415_vm0, %v1933_v39, 0.0  ;;  %2166 = vst.msk [vmem:[%s3130_s24 + $0x70] sm:$0xf] %vm2137_vm13, %v2350_v61  ;;  %v1893_v47 = vsel %vm415_vm0, %v1824_v7, 0.0  ;;  %v1934_v49 = vmul.f32 %v1824_v7, %v1824_v7  ;;  %v2351_v53 = vpack.c.bf16 %v1824_v7, %v1824_v7 }
 0x270   : > { %v1993_v50 = vadd.f32 %v1992_v43, %v1991_v34  ;;  %v1894_v52 = vadd.f32 %v1893_v47, %v1892_v42  ;;  %2169 = vst.msk [vmem:[%s3130_s24 + $0x7c] sm:$0xf] %vm2137_vm13, %v2353_v46  ;;  %v1897_v57 = vsel %vm415_vm0, %v2489_v40, 0.0  ;;  %v1998_v1 = vsel %vm415_vm0, %v1936_v3, 0.0 }
 0x271   : > { %v1994_v55 = vsel %vm415_vm0, %v1934_v49, 0.0  ;;  %2167 = vst.msk [vmem:[%s3130_s24 + $0x74] sm:$0xf] %vm2137_vm13, %v2351_v53 }
 0x272   : > { %v1896_v32 = vadd.f32 %v1895_v54, %v1894_v52  ;;  %v1995_v56 = vadd.f32 %v1994_v55, %v1993_v50 }
 0x274   : > { %v1898_v59 = vadd.f32 %v1897_v57, %v1896_v32  ;;  %v1997_v60 = vadd.f32 %v1996_v21, %v1995_v56 }
 0x276   : > { %v1899_v62 = vrot.slane %v1898_v59, 4  ;;  %v1999_v15 = vadd.f32 %v1998_v1, %v1997_v60 }
 0x278   : > { %v1900_v63 = vadd.f32 %v1899_v62, %v1898_v59  ;;  %v2000_v0 = vrot.slane %v1999_v15, 4 }
 0x27a   : > { %v1901_v44 = vrot.slane %v1900_v63, 2  ;;  %v2001_v2 = vadd.f32 %v2000_v0, %v1999_v15 }
 0x27c   : > { %v1902_v4 = vadd.f32 %v1901_v44, %v1900_v63  ;;  %v2002_v5 = vrot.slane %v2001_v2, 2 }
 0x27e   : > { %v1903_v6 = vrot.slane %v1902_v4, 1  ;;  %v2003_v8 = vadd.f32 %v2002_v5, %v2001_v2 }
 0x280   : > { %v2004_v10 = vrot.slane %v2003_v8, 1  ;;  %v1904_v11 = vadd.f32 %v1903_v6, %v1902_v4 }
 0x282   : > { %v2005_v12 = vadd.f32 %v2004_v10, %v2003_v8 }
 0x284   : > { %v2007_v13 = vsel %vm2006_vm14, %v1904_v11, %v2005_v12 }
 0x285   : > { %2008 = vst.msk [vmem:[%s238_s26] sm:$0x3] %vm450_vm1, %v2007_v13 }
 0x286 PF: > { %s16_s18 = sadd.s32 1, %s2524_s18  }
 0x287   : > { %p13_p5 = scmp.ge.s32.totalorder %s16_s18, 4  }
 0x289   :  { %15 = sbr.rel (!%p13_p5) target bundleno = 1 (0x1), region = 81 }

</bundles_post_ra>
